<compile_context>
chip_gen: v5e
topology: v5e:2x2
jax: 0.10.0
libtpu: 0.0.40
codegen_flags: <defaults>
</compile_context>

<pallas_src>
import functools

import jax
import jax.numpy as jnp
import numpy as np
from jax import lax
from jax.experimental import pallas as pl
from jax.experimental.pallas import tpu as pltpu


def _round_up(x, m):
    return ((x + m - 1) // m) * m


# ---------------------------------------------------------------------------
# Kernel 1: main EdgeGatedGraphConv pass, grid over edge tiles (reduction axis)
# ---------------------------------------------------------------------------
def _egc_main_kernel(
    h_ref, e_ref, src_ref, dst_ref,
    wf_ref, bf_ref,          # fused node projections [F, 4F], [1, 4F]
    weg_ref, beg_ref,        # edge_gate
    gn_ref, betan_ref,       # bn_nodes affine
    x_out_ref, m_out_ref, stats_ref,
    gat_scr, upd_scr, acc_scr, sum_scr, sq_scr,
    *, n_nodes, n_pad, feat, tile_e, n_edges,
):
    k = pl.program_id(0)
    F, N, Np = feat, n_nodes, n_pad

    @pl.when(k == 0)
    def _init():
        h = h_ref[...]
        # fused projection columns: [src_gate | dst_gate | dst_update(Bh) | src_update]
        proj = jnp.dot(h, wf_ref[...], preferred_element_type=jnp.float32) + bf_ref[...]
        gat_scr[...] = jnp.zeros_like(gat_scr)
        gat_scr[0:N, 0:F] = proj[:, 0:F].astype(jnp.bfloat16)              # e_src
        gat_scr[0:N, F:2 * F] = proj[:, 2 * F:3 * F].astype(jnp.bfloat16)  # Bh (dst_update)
        gat_scr[Np:Np + N, 0:F] = proj[:, F:2 * F].astype(jnp.bfloat16)    # e_dst
        upd_scr[...] = proj[:, 3 * F:4 * F]                                # src_update
        acc_scr[...] = jnp.zeros_like(acc_scr)
        sum_scr[...] = jnp.zeros_like(sum_scr)
        sq_scr[...] = jnp.zeros_like(sq_scr)

    # ---- per edge tile ----
    e_tile = e_ref[...]                                                        # (tE, F)
    m_eg = jnp.dot(e_tile, weg_ref[...], preferred_element_type=jnp.float32) + beg_ref[...]

    src_ids = src_ref[...]                                                     # (tE, 1) int32
    dst_ids = dst_ref[...]                                                     # (tE, 1) int32
    iota2 = lax.broadcasted_iota(jnp.int32, (tile_e, 2 * Np), 1)
    hit = jnp.logical_or(src_ids == iota2, (dst_ids + Np) == iota2)
    oh_cat = jnp.where(hit, 1.0, 0.0).astype(jnp.bfloat16)                     # (tE, 2Np)
    # one matmul: cols [0:F] = e_src[src] + e_dst[dst], cols [F:2F] = Bh[src]
    gath = jnp.dot(oh_cat, gat_scr[...], preferred_element_type=jnp.float32)   # (tE, 2F)

    m = gath[:, 0:F] + m_eg                                                    # (tE, F)
    sigma = jax.nn.sigmoid(m)
    bh_src = gath[:, F:2 * F]

    # mask padded edge rows (zero contribution to scatter + BN statistics)
    row = k * tile_e + lax.broadcasted_iota(jnp.int32, (tile_e, 1), 0)
    valid = jnp.where(row < n_edges, 1.0, 0.0)                                 # (tE, 1)

    # scatter-sum to destination nodes: acc += onehot_dst^T @ [sigma*Bh_src | sigma]
    iota1 = lax.broadcasted_iota(jnp.int32, (tile_e, Np), 1)
    oh_dst = jnp.where(dst_ids == iota1, 1.0, 0.0).astype(jnp.bfloat16)        # (tE, Np)
    edge_cat = (jnp.concatenate([sigma * bh_src, sigma], axis=1) * valid).astype(jnp.bfloat16)
    acc_scr[...] += lax.dot_general(
        oh_dst, edge_cat, (((0,), (0,)), ((), ())),
        preferred_element_type=jnp.float32)                                    # (Np, 2F)

    # edge-side raw gate value + running BN statistics (single pass: E[x], E[x^2])
    m_out_ref[...] = m
    m_v = m * valid
    sum_scr[...] += jnp.sum(m_v, axis=0, keepdims=True)
    sq_scr[...] += jnp.sum(m_v * m, axis=0, keepdims=True)

    @pl.when(k == pl.num_programs(0) - 1)
    def _finalize():
        sum_sh = acc_scr[0:N, 0:F]
        sum_s = acc_scr[0:N, F:2 * F]
        h_agg = sum_sh * pl.reciprocal(sum_s + 1e-6, approx=True)
        x_pre = upd_scr[...] + h_agg
        # node BatchNorm (training-mode batch stats, biased var) + SiLU + residual
        mean = jnp.mean(x_pre, axis=0, keepdims=True)
        var = jnp.mean(x_pre * x_pre, axis=0, keepdims=True) - mean * mean
        xb = (x_pre - mean) * lax.rsqrt(var + 1e-5) * gn_ref[...] + betan_ref[...]
        x_out_ref[...] = h_ref[...] + xb * jax.nn.sigmoid(xb)
        stats_ref[...] = jnp.concatenate([sum_scr[...], sq_scr[...]], axis=0)  # (2, F)


# ---------------------------------------------------------------------------
# Kernel 2: edge-side BatchNorm + SiLU + residual (embarrassingly parallel tiles)
# ---------------------------------------------------------------------------
def _edge_bn_silu_kernel(m_ref, y_ref, stats_ref, g_ref, b_ref, y_out_ref, *, n_edges):
    inv_e = 1.0 / float(n_edges)
    s = stats_ref[...]                                # (2, F): [sum(m); sum(m*m)]
    mean = s[0:1, :] * inv_e
    var = s[1:2, :] * inv_e - mean * mean
    m = m_ref[...]
    vbn = (m - mean) * lax.rsqrt(var + 1e-5) * g_ref[...] + b_ref[...]
    y_out_ref[...] = y_ref[...] + vbn * jax.nn.sigmoid(vbn)


# ---------------------------------------------------------------------------
# Wrapper: one EdgeGatedGraphConv forward
# ---------------------------------------------------------------------------
def edge_gated_graph_conv(params, node_feats, edge_feats, src_idx, dst_idx, *, tile_e=256):
    N, F = node_feats.shape
    E = edge_feats.shape[0]
    Fo = params["w_fused"].shape[1] // 4
    assert Fo == F, "residual connection requires in_features == out_features"
    assert F % 128 == 0, "feature dim must be padded to a multiple of 128 (lane-dense)"

    tE = min(int(tile_e), _round_up(E, 8))
    Ep = _round_up(E, tE)
    Np = _round_up(N, 8)
    n_tiles = Ep // tE
    pad = Ep - E

    e_pad = jnp.pad(edge_feats, ((0, pad), (0, 0)))
    src_pad = jnp.pad(src_idx.astype(jnp.int32), (0, pad)).reshape(Ep, 1)
    dst_pad = jnp.pad(dst_idx.astype(jnp.int32), (0, pad)).reshape(Ep, 1)

    resident = lambda k: (0, 0)
    tiled = lambda k: (k, 0)

    kernel1 = functools.partial(
        _egc_main_kernel, n_nodes=N, n_pad=Np, feat=F, tile_e=tE, n_edges=E)

    x_out, m_raw, stats = pl.pallas_call(
        kernel1,
        out_shape=(
            jax.ShapeDtypeStruct((N, F), jnp.float32),
            jax.ShapeDtypeStruct((Ep, F), jnp.float32),
            jax.ShapeDtypeStruct((2, F), jnp.float32),
        ),
        grid_spec=pltpu.PrefetchScalarGridSpec(
            num_scalar_prefetch=0,
            grid=(n_tiles,),
            in_specs=[
                pl.BlockSpec((N, F), resident),       # node features (resident)
                pl.BlockSpec((tE, F), tiled),         # edge features tile
                pl.BlockSpec((tE, 1), tiled),         # src index tile
                pl.BlockSpec((tE, 1), tiled),         # dst index tile
                pl.BlockSpec((F, 4 * F), resident),   # fused node-projection W
                pl.BlockSpec((1, 4 * F), resident),   # fused node-projection b
                pl.BlockSpec((F, F), resident),       # edge_gate W
                pl.BlockSpec((1, F), resident),       # edge_gate b
                pl.BlockSpec((1, F), resident),       # bn_nodes gamma
                pl.BlockSpec((1, F), resident),       # bn_nodes beta
            ],
            out_specs=(
                pl.BlockSpec((N, F), resident),       # x_out (written at last tile)
                pl.BlockSpec((tE, F), tiled),         # raw m per tile
                pl.BlockSpec((2, F), resident),       # edge BN sums
            ),
            scratch_shapes=[
                pltpu.VMEM((2 * Np, 2 * F), jnp.bfloat16),  # gather table [e_src,Bh ; e_dst,0]
                pltpu.VMEM((N, F), jnp.float32),            # src_update projection
                pltpu.VMEM((Np, 2 * F), jnp.float32),       # scatter accumulator
                pltpu.VMEM((1, F), jnp.float32),            # sum(m)
                pltpu.VMEM((1, F), jnp.float32),            # sum(m*m)
            ],
        ),
        compiler_params=pltpu.CompilerParams(
            dimension_semantics=("arbitrary",),
            vmem_limit_bytes=64 * 1024 * 1024),
    )(node_feats, e_pad, src_pad, dst_pad,
      params["w_fused"], params["b_fused"],
      params["w_edge_gate"], params["b_edge_gate"],
      params["bn_nodes_gamma"], params["bn_nodes_beta"])

    kernel2 = functools.partial(_edge_bn_silu_kernel, n_edges=E)
    y_out = pl.pallas_call(
        kernel2,
        out_shape=jax.ShapeDtypeStruct((Ep, F), jnp.float32),
        grid_spec=pltpu.PrefetchScalarGridSpec(
            num_scalar_prefetch=0,
            grid=(n_tiles,),
            in_specs=[
                pl.BlockSpec((tE, F), tiled),         # raw m
                pl.BlockSpec((tE, F), tiled),         # edge features (residual)
                pl.BlockSpec((2, F), resident),       # BN sums
                pl.BlockSpec((1, F), resident),       # bn_edges gamma
                pl.BlockSpec((1, F), resident),       # bn_edges beta
            ],
            out_specs=pl.BlockSpec((tE, F), tiled),
        ),
        compiler_params=pltpu.CompilerParams(
            dimension_semantics=("parallel",),
            vmem_limit_bytes=64 * 1024 * 1024),
    )(m_raw, e_pad, stats, params["bn_edges_gamma"], params["bn_edges_beta"])

    return x_out, y_out[:E]


# ---------------------------------------------------------------------------
# ALIGNNConv: node_update on g, then edge_update on the line graph lg
# ---------------------------------------------------------------------------
def alignn_conv(params, g_src, g_dst, lg_src, lg_dst, x, y, z, *, tile_e=256):
    x_new, m = edge_gated_graph_conv(params["node_update"], x, y, g_src, g_dst,
                                     tile_e=tile_e)
    y_new, z_new = edge_gated_graph_conv(params["edge_update"], m, z, lg_src, lg_dst,
                                         tile_e=tile_e)
    return x_new, y_new, z_new


# ---------------------------------------------------------------------------
# Deterministic parameter initialization (shapes mirror the torch module;
# the four node-side Linear layers are fused into one [F, 4F] weight).
# ---------------------------------------------------------------------------
def _init_linear(key, fin, fout):
    k1, k2 = jax.random.split(key)
    bound = 1.0 / np.sqrt(fin)
    w = jax.random.uniform(k1, (fin, fout), jnp.float32, -bound, bound)
    b = jax.random.uniform(k2, (1, fout), jnp.float32, -bound, bound)
    return w, b


def _init_egc(key, fin, fout):
    names = ["src_gate", "dst_gate", "dst_update", "src_update", "edge_gate"]
    lin = {n: _init_linear(k, fin, fout) for k, n in zip(jax.random.split(key, 5), names)}
    fuse = ("src_gate", "dst_gate", "dst_update", "src_update")
    return {
        "w_fused": jnp.concatenate([lin[n][0] for n in fuse], axis=1),
        "b_fused": jnp.concatenate([lin[n][1] for n in fuse], axis=1),
        "w_edge_gate": lin["edge_gate"][0],
        "b_edge_gate": lin["edge_gate"][1],
        "bn_nodes_gamma": jnp.ones((1, fout), jnp.float32),
        "bn_nodes_beta": jnp.zeros((1, fout), jnp.float32),
        "bn_edges_gamma": jnp.ones((1, fout), jnp.float32),
        "bn_edges_beta": jnp.zeros((1, fout), jnp.float32),
    }


def init_alignn_conv(key, in_features, out_features):
    k1, k2 = jax.random.split(key)
    return {
        "node_update": _init_egc(k1, in_features, out_features),
        "edge_update": _init_egc(k2, out_features, out_features),
    }


if __name__ == "__main__":
    key = jax.random.PRNGKey(0)
    # nodes, graph edges, line-graph edges, hidden dim (multiple of 128 for lane-dense)
    N, E, E2, F = 16, 48, 96, 128

    k_param, k_x, k_y, k_z, k_gs, k_gd, k_ls, k_ld = jax.random.split(key, 8)
    params = init_alignn_conv(k_param, F, F)

    x = jax.random.normal(k_x, (N, F), jnp.float32)    # node features
    y = jax.random.normal(k_y, (E, F), jnp.float32)    # edge features
    z = jax.random.normal(k_z, (E2, F), jnp.float32)   # edge-pair (line-graph) features

    g_src = jax.random.randint(k_gs, (E,), 0, N, dtype=jnp.int32)
    g_dst = jax.random.randint(k_gd, (E,), 0, N, dtype=jnp.int32)
    lg_src = jax.random.randint(k_ls, (E2,), 0, E, dtype=jnp.int32)
    lg_dst = jax.random.randint(k_ld, (E2,), 0, E, dtype=jnp.int32)

    # small tile so the demo exercises multi-tile grids + padded-edge masking
    fwd = jax.jit(functools.partial(alignn_conv, params, tile_e=32))
    x_out, y_out, z_out = fwd(g_src, g_dst, lg_src, lg_dst, x, y, z)
    jax.block_until_ready((x_out, y_out, z_out))

    assert x_out.shape == (N, F) and y_out.shape == (E, F) and z_out.shape == (E2, F)
    assert all(bool(jnp.all(jnp.isfinite(a))) for a in (x_out, y_out, z_out))
    print("KERNEL_OK")
</pallas_src>

<mosaic_0001>
module attributes {stable_mosaic.version = 11 : i64} {
  func.func @_edge_bn_silu_kernel(%arg0: i32, %arg1: memref<32x128xf32, #tpu.memory_space<vmem>>, %arg2: memref<32x128xf32, #tpu.memory_space<vmem>>, %arg3: memref<2x128xf32, #tpu.memory_space<vmem>>, %arg4: memref<1x128xf32, #tpu.memory_space<vmem>>, %arg5: memref<1x128xf32, #tpu.memory_space<vmem>>, %arg6: memref<32x128xf32, #tpu.memory_space<vmem>>) attributes {dimension_semantics = [#tpu.dimension_semantics<parallel>], iteration_bounds = array<i64: 3>, scalar_prefetch = 0 : i64, scratch_operands = 0 : i64, tpu.core_type = #tpu.core_type<tc>, window_params = [{transform_indices = @transform_0, window_bounds = array<i64: 32, 128>}, {transform_indices = @transform_1, window_bounds = array<i64: 32, 128>}, {pipeline_mode = #tpu.pipeline_mode<synchronous>, transform_indices = @transform_2, window_bounds = array<i64: 2, 128>}, {pipeline_mode = #tpu.pipeline_mode<synchronous>, transform_indices = @transform_3, window_bounds = array<i64: 1, 128>}, {pipeline_mode = #tpu.pipeline_mode<synchronous>, transform_indices = @transform_4, window_bounds = array<i64: 1, 128>}, {transform_indices = @transform_5, window_bounds = array<i64: 32, 128>}]} {
    %c0 = arith.constant 0 : index
    %c0_0 = arith.constant 0 : index
    %0 = vector.load %arg3[%c0, %c0_0] : memref<2x128xf32, #tpu.memory_space<vmem>>, vector<2x128xf32>
    %1 = vector.extract_strided_slice %0 {offsets = [0, 0], sizes = [1, 128], strides = [1, 1]} : vector<2x128xf32> to vector<1x128xf32>
    %cst = arith.constant 0.010416667 : f32
    %2 = vector.broadcast %cst : f32 to vector<1x128xf32>
    %3 = arith.mulf %1, %2 : vector<1x128xf32>
    %4 = vector.extract_strided_slice %0 {offsets = [1, 0], sizes = [1, 128], strides = [1, 1]} : vector<2x128xf32> to vector<1x128xf32>
    %cst_1 = arith.constant 0.010416667 : f32
    %5 = vector.broadcast %cst_1 : f32 to vector<1x128xf32>
    %6 = arith.mulf %4, %5 : vector<1x128xf32>
    %7 = arith.mulf %3, %3 : vector<1x128xf32>
    %8 = arith.subf %6, %7 : vector<1x128xf32>
    %c0_2 = arith.constant 0 : index
    %c0_3 = arith.constant 0 : index
    %9 = vector.load %arg1[%c0_2, %c0_3] : memref<32x128xf32, #tpu.memory_space<vmem>>, vector<32x128xf32>
    %10 = vector.broadcast %3 : vector<1x128xf32> to vector<32x128xf32>
    %11 = arith.subf %9, %10 : vector<32x128xf32>
    %cst_4 = arith.constant 9.99999974E-6 : f32
    %12 = vector.broadcast %cst_4 : f32 to vector<1x128xf32>
    %13 = arith.addf %8, %12 : vector<1x128xf32>
    %14 = math.rsqrt %13 : vector<1x128xf32>
    %15 = vector.broadcast %14 : vector<1x128xf32> to vector<32x128xf32>
    %16 = arith.mulf %11, %15 : vector<32x128xf32>
    %c0_5 = arith.constant 0 : index
    %c0_6 = arith.constant 0 : index
    %17 = vector.load %arg4[%c0_5, %c0_6] : memref<1x128xf32, #tpu.memory_space<vmem>>, vector<1x128xf32>
    %18 = vector.broadcast %17 : vector<1x128xf32> to vector<32x128xf32>
    %19 = arith.mulf %16, %18 : vector<32x128xf32>
    %c0_7 = arith.constant 0 : index
    %c0_8 = arith.constant 0 : index
    %20 = vector.load %arg5[%c0_7, %c0_8] : memref<1x128xf32, #tpu.memory_space<vmem>>, vector<1x128xf32>
    %21 = vector.broadcast %20 : vector<1x128xf32> to vector<32x128xf32>
    %22 = arith.addf %19, %21 : vector<32x128xf32>
    %c0_9 = arith.constant 0 : index
    %c0_10 = arith.constant 0 : index
    %23 = vector.load %arg2[%c0_9, %c0_10] : memref<32x128xf32, #tpu.memory_space<vmem>>, vector<32x128xf32>
    %24 = arith.negf %22 : vector<32x128xf32>
    %25 = math.exp %24 : vector<32x128xf32>
    %cst_11 = arith.constant 1.000000e+00 : f32
    %26 = vector.broadcast %cst_11 : f32 to vector<32x128xf32>
    %27 = arith.addf %26, %25 : vector<32x128xf32>
    %28 = arith.divf %26, %27 : vector<32x128xf32>
    %29 = arith.mulf %22, %28 : vector<32x128xf32>
    %30 = arith.addf %23, %29 : vector<32x128xf32>
    %c0_12 = arith.constant 0 : index
    %c0_13 = arith.constant 0 : index
    %31 = vector.load %arg6[%c0_12, %c0_13] : memref<32x128xf32, #tpu.memory_space<vmem>>, vector<32x128xf32>
    tpu.vector_store %arg6[%c0_12, %c0_13], %30 {strides = array<i32>} : memref<32x128xf32, #tpu.memory_space<vmem>>, vector<32x128xf32>,
    return
  }
  func.func @transform_0(%arg0: i32) -> (i32, i32) {
    %c0_i32 = arith.constant 0 : i32
    %c0_i32_0 = arith.constant 0 : i32
    return %arg0, %c0_i32 : i32, i32
  }
  func.func @transform_1(%arg0: i32) -> (i32, i32) {
    %c0_i32 = arith.constant 0 : i32
    %c0_i32_0 = arith.constant 0 : i32
    return %arg0, %c0_i32 : i32, i32
  }
  func.func @transform_2(%arg0: i32) -> (i32, i32) {
    %c0_i32 = arith.constant 0 : i32
    %c0_i32_0 = arith.constant 0 : i32
    %c0_i32_1 = arith.constant 0 : i32
    return %c0_i32, %c0_i32_0 : i32, i32
  }
  func.func @transform_3(%arg0: i32) -> (i32, i32) {
    %c0_i32 = arith.constant 0 : i32
    %c0_i32_0 = arith.constant 0 : i32
    %c0_i32_1 = arith.constant 0 : i32
    return %c0_i32, %c0_i32_0 : i32, i32
  }
  func.func @transform_4(%arg0: i32) -> (i32, i32) {
    %c0_i32 = arith.constant 0 : i32
    %c0_i32_0 = arith.constant 0 : i32
    %c0_i32_1 = arith.constant 0 : i32
    return %c0_i32, %c0_i32_0 : i32, i32
  }
  func.func @transform_5(%arg0: i32) -> (i32, i32) {
    %c0_i32 = arith.constant 0 : i32
    %c0_i32_0 = arith.constant 0 : i32
    return %arg0, %c0_i32 : i32, i32
  }
}

module attributes {stable_mosaic.version = 11 : i64} {
  func.func @_edge_bn_silu_kernel(%arg0: i32, %arg1: memref<32x128xf32, #tpu.memory_space<vmem>>, %arg2: memref<32x128xf32, #tpu.memory_space<vmem>>, %arg3: memref<2x128xf32, #tpu.memory_space<vmem>>, %arg4: memref<1x128xf32, #tpu.memory_space<vmem>>, %arg5: memref<1x128xf32, #tpu.memory_space<vmem>>, %arg6: memref<32x128xf32, #tpu.memory_space<vmem>>) attributes {dimension_semantics = [#tpu.dimension_semantics<parallel>], iteration_bounds = array<i64: 2>, scalar_prefetch = 0 : i64, scratch_operands = 0 : i64, tpu.core_type = #tpu.core_type<tc>, window_params = [{transform_indices = @transform_0, window_bounds = array<i64: 32, 128>}, {transform_indices = @transform_1, window_bounds = array<i64: 32, 128>}, {pipeline_mode = #tpu.pipeline_mode<synchronous>, transform_indices = @transform_2, window_bounds = array<i64: 2, 128>}, {pipeline_mode = #tpu.pipeline_mode<synchronous>, transform_indices = @transform_3, window_bounds = array<i64: 1, 128>}, {pipeline_mode = #tpu.pipeline_mode<synchronous>, transform_indices = @transform_4, window_bounds = array<i64: 1, 128>}, {transform_indices = @transform_5, window_bounds = array<i64: 32, 128>}]} {
    %c0 = arith.constant 0 : index
    %c0_0 = arith.constant 0 : index
    %0 = vector.load %arg3[%c0, %c0_0] : memref<2x128xf32, #tpu.memory_space<vmem>>, vector<2x128xf32>
    %1 = vector.extract_strided_slice %0 {offsets = [0, 0], sizes = [1, 128], strides = [1, 1]} : vector<2x128xf32> to vector<1x128xf32>
    %cst = arith.constant 0.020833334 : f32
    %2 = vector.broadcast %cst : f32 to vector<1x128xf32>
    %3 = arith.mulf %1, %2 : vector<1x128xf32>
    %4 = vector.extract_strided_slice %0 {offsets = [1, 0], sizes = [1, 128], strides = [1, 1]} : vector<2x128xf32> to vector<1x128xf32>
    %cst_1 = arith.constant 0.020833334 : f32
    %5 = vector.broadcast %cst_1 : f32 to vector<1x128xf32>
    %6 = arith.mulf %4, %5 : vector<1x128xf32>
    %7 = arith.mulf %3, %3 : vector<1x128xf32>
    %8 = arith.subf %6, %7 : vector<1x128xf32>
    %c0_2 = arith.constant 0 : index
    %c0_3 = arith.constant 0 : index
    %9 = vector.load %arg1[%c0_2, %c0_3] : memref<32x128xf32, #tpu.memory_space<vmem>>, vector<32x128xf32>
    %10 = vector.broadcast %3 : vector<1x128xf32> to vector<32x128xf32>
    %11 = arith.subf %9, %10 : vector<32x128xf32>
    %cst_4 = arith.constant 9.99999974E-6 : f32
    %12 = vector.broadcast %cst_4 : f32 to vector<1x128xf32>
    %13 = arith.addf %8, %12 : vector<1x128xf32>
    %14 = math.rsqrt %13 : vector<1x128xf32>
    %15 = vector.broadcast %14 : vector<1x128xf32> to vector<32x128xf32>
    %16 = arith.mulf %11, %15 : vector<32x128xf32>
    %c0_5 = arith.constant 0 : index
    %c0_6 = arith.constant 0 : index
    %17 = vector.load %arg4[%c0_5, %c0_6] : memref<1x128xf32, #tpu.memory_space<vmem>>, vector<1x128xf32>
    %18 = vector.broadcast %17 : vector<1x128xf32> to vector<32x128xf32>
    %19 = arith.mulf %16, %18 : vector<32x128xf32>
    %c0_7 = arith.constant 0 : index
    %c0_8 = arith.constant 0 : index
    %20 = vector.load %arg5[%c0_7, %c0_8] : memref<1x128xf32, #tpu.memory_space<vmem>>, vector<1x128xf32>
    %21 = vector.broadcast %20 : vector<1x128xf32> to vector<32x128xf32>
    %22 = arith.addf %19, %21 : vector<32x128xf32>
    %c0_9 = arith.constant 0 : index
    %c0_10 = arith.constant 0 : index
    %23 = vector.load %arg2[%c0_9, %c0_10] : memref<32x128xf32, #tpu.memory_space<vmem>>, vector<32x128xf32>
    %24 = arith.negf %22 : vector<32x128xf32>
    %25 = math.exp %24 : vector<32x128xf32>
    %cst_11 = arith.constant 1.000000e+00 : f32
    %26 = vector.broadcast %cst_11 : f32 to vector<32x128xf32>
    %27 = arith.addf %26, %25 : vector<32x128xf32>
    %28 = arith.divf %26, %27 : vector<32x128xf32>
    %29 = arith.mulf %22, %28 : vector<32x128xf32>
    %30 = arith.addf %23, %29 : vector<32x128xf32>
    %c0_12 = arith.constant 0 : index
    %c0_13 = arith.constant 0 : index
    %31 = vector.load %arg6[%c0_12, %c0_13] : memref<32x128xf32, #tpu.memory_space<vmem>>, vector<32x128xf32>
    tpu.vector_store %arg6[%c0_12, %c0_13], %30 {strides = array<i32>} : memref<32x128xf32, #tpu.memory_space<vmem>>, vector<32x128xf32>,
    return
  }
  func.func @transform_0(%arg0: i32) -> (i32, i32) {
    %c0_i32 = arith.constant 0 : i32
    %c0_i32_0 = arith.constant 0 : i32
    return %arg0, %c0_i32 : i32, i32
  }
  func.func @transform_1(%arg0: i32) -> (i32, i32) {
    %c0_i32 = arith.constant 0 : i32
    %c0_i32_0 = arith.constant 0 : i32
    return %arg0, %c0_i32 : i32, i32
  }
  func.func @transform_2(%arg0: i32) -> (i32, i32) {
    %c0_i32 = arith.constant 0 : i32
    %c0_i32_0 = arith.constant 0 : i32
    %c0_i32_1 = arith.constant 0 : i32
    return %c0_i32, %c0_i32_0 : i32, i32
  }
  func.func @transform_3(%arg0: i32) -> (i32, i32) {
    %c0_i32 = arith.constant 0 : i32
    %c0_i32_0 = arith.constant 0 : i32
    %c0_i32_1 = arith.constant 0 : i32
    return %c0_i32, %c0_i32_0 : i32, i32
  }
  func.func @transform_4(%arg0: i32) -> (i32, i32) {
    %c0_i32 = arith.constant 0 : i32
    %c0_i32_0 = arith.constant 0 : i32
    %c0_i32_1 = arith.constant 0 : i32
    return %c0_i32, %c0_i32_0 : i32, i32
  }
  func.func @transform_5(%arg0: i32) -> (i32, i32) {
    %c0_i32 = arith.constant 0 : i32
    %c0_i32_0 = arith.constant 0 : i32
    return %arg0, %c0_i32 : i32, i32
  }
}

module attributes {stable_mosaic.version = 11 : i64} {
  func.func @_egc_main_kernel(%arg0: i32, %arg1: memref<48x128xf32, #tpu.memory_space<vmem>>, %arg2: memref<32x128xf32, #tpu.memory_space<vmem>>, %arg3: memref<32x1xi32, #tpu.memory_space<vmem>>, %arg4: memref<32x1xi32, #tpu.memory_space<vmem>>, %arg5: memref<128x512xf32, #tpu.memory_space<vmem>>, %arg6: memref<1x512xf32, #tpu.memory_space<vmem>>, %arg7: memref<128x128xf32, #tpu.memory_space<vmem>>, %arg8: memref<1x128xf32, #tpu.memory_space<vmem>>, %arg9: memref<1x128xf32, #tpu.memory_space<vmem>>, %arg10: memref<1x128xf32, #tpu.memory_space<vmem>>, %arg11: memref<48x128xf32, #tpu.memory_space<vmem>>, %arg12: memref<32x128xf32, #tpu.memory_space<vmem>>, %arg13: memref<2x128xf32, #tpu.memory_space<vmem>>, %arg14: memref<96x256xbf16, #tpu.memory_space<vmem>>, %arg15: memref<48x128xf32, #tpu.memory_space<vmem>>, %arg16: memref<48x256xf32, #tpu.memory_space<vmem>>, %arg17: memref<1x128xf32, #tpu.memory_space<vmem>>, %arg18: memref<1x128xf32, #tpu.memory_space<vmem>>) attributes {dimension_semantics = [#tpu.dimension_semantics<arbitrary>], iteration_bounds = array<i64: 3>, scalar_prefetch = 0 : i64, scratch_operands = 5 : i64, tpu.core_type = #tpu.core_type<tc>, window_params = [{pipeline_mode = #tpu.pipeline_mode<synchronous>, transform_indices = @transform_0, window_bounds = array<i64: 48, 128>}, {transform_indices = @transform_1, window_bounds = array<i64: 32, 128>}, {transform_indices = @transform_2, window_bounds = array<i64: 32, 1>}, {transform_indices = @transform_3, window_bounds = array<i64: 32, 1>}, {pipeline_mode = #tpu.pipeline_mode<synchronous>, transform_indices = @transform_4, window_bounds = array<i64: 128, 512>}, {pipeline_mode = #tpu.pipeline_mode<synchronous>, transform_indices = @transform_5, window_bounds = array<i64: 1, 512>}, {pipeline_mode = #tpu.pipeline_mode<synchronous>, transform_indices = @transform_6, window_bounds = array<i64: 128, 128>}, {pipeline_mode = #tpu.pipeline_mode<synchronous>, transform_indices = @transform_7, window_bounds = array<i64: 1, 128>}, {pipeline_mode = #tpu.pipeline_mode<synchronous>, transform_indices = @transform_8, window_bounds = array<i64: 1, 128>}, {pipeline_mode = #tpu.pipeline_mode<synchronous>, transform_indices = @transform_9, window_bounds = array<i64: 1, 128>}, {pipeline_mode = #tpu.pipeline_mode<synchronous>, transform_indices = @transform_10, window_bounds = array<i64: 48, 128>}, {transform_indices = @transform_11, window_bounds = array<i64: 32, 128>}, {pipeline_mode = #tpu.pipeline_mode<synchronous>, transform_indices = @transform_12, window_bounds = array<i64: 2, 128>}]} {
    %c0_i32 = arith.constant 0 : i32
    %0 = arith.cmpi eq, %arg0, %c0_i32 : i32
    %1 = arith.extui %0 : i1 to i32
    %c0_i32_0 = arith.constant 0 : i32
    %2 = arith.cmpi ne, %1, %c0_i32_0 : i32
    scf.if %2 {
      %c0_38 = arith.constant 0 : index
      %c0_39 = arith.constant 0 : index
      %75 = vector.load %arg1[%c0_38, %c0_39] : memref<48x128xf32, #tpu.memory_space<vmem>>, vector<48x128xf32>
      %c0_40 = arith.constant 0 : index
      %c0_41 = arith.constant 0 : index
      %76 = vector.load %arg5[%c0_40, %c0_41] : memref<128x512xf32, #tpu.memory_space<vmem>>, vector<128x512xf32>
      %cst_42 = arith.constant dense<0.000000e+00> : vector<48x512xf32>
      %77 = tpu.matmul %75, %76, %cst_42 {dimension_numbers = #tpu.dot_dimension_numbers<[1], [0], [0], [1], [0, 0, 1, 1], [], []>} : vector<48x128xf32>, vector<128x512xf32>, vector<48x512xf32> -> vector<48x512xf32>
      %c0_43 = arith.constant 0 : index
      %c0_44 = arith.constant 0 : index
      %78 = vector.load %arg6[%c0_43, %c0_44] : memref<1x512xf32, #tpu.memory_space<vmem>>, vector<1x512xf32>
      %79 = vector.broadcast %78 : vector<1x512xf32> to vector<48x512xf32>
      %80 = arith.addf %77, %79 : vector<48x512xf32>
      %cst_45 = arith.constant 0.000000e+00 : bf16
      %81 = vector.broadcast %cst_45 : bf16 to vector<96x256xbf16>
      %c0_46 = arith.constant 0 : index
      %c0_47 = arith.constant 0 : index
      %82 = vector.load %arg14[%c0_46, %c0_47] : memref<96x256xbf16, #tpu.memory_space<vmem>>, vector<96x256xbf16>
      tpu.vector_store %arg14[%c0_46, %c0_47], %81 {strides = array<i32>} : memref<96x256xbf16, #tpu.memory_space<vmem>>, vector<96x256xbf16>,
      %83 = vector.extract_strided_slice %80 {offsets = [0, 0], sizes = [48, 128], strides = [1, 1]} : vector<48x512xf32> to vector<48x128xf32>
      %84 = arith.truncf %83 : vector<48x128xf32> to vector<48x128xbf16>
      %c0_48 = arith.constant 0 : index
      %c0_49 = arith.constant 0 : index
      %85 = vector.load %arg14[%c0_48, %c0_49] : memref<96x256xbf16, #tpu.memory_space<vmem>>, vector<48x128xbf16>
      tpu.vector_store %arg14[%c0_48, %c0_49], %84 {strides = array<i32>} : memref<96x256xbf16, #tpu.memory_space<vmem>>, vector<48x128xbf16>,
      %86 = vector.extract_strided_slice %80 {offsets = [0, 256], sizes = [48, 128], strides = [1, 1]} : vector<48x512xf32> to vector<48x128xf32>
      %87 = arith.truncf %86 : vector<48x128xf32> to vector<48x128xbf16>
      %c0_50 = arith.constant 0 : index
      %c128 = arith.constant 128 : index
      %88 = vector.load %arg14[%c0_50, %c128] : memref<96x256xbf16, #tpu.memory_space<vmem>>, vector<48x128xbf16>
      tpu.vector_store %arg14[%c0_50, %c128], %87 {strides = array<i32>} : memref<96x256xbf16, #tpu.memory_space<vmem>>, vector<48x128xbf16>,
      %89 = vector.extract_strided_slice %80 {offsets = [0, 128], sizes = [48, 128], strides = [1, 1]} : vector<48x512xf32> to vector<48x128xf32>
      %90 = arith.truncf %89 : vector<48x128xf32> to vector<48x128xbf16>
      %c48 = arith.constant 48 : index
      %c0_51 = arith.constant 0 : index
      %91 = vector.load %arg14[%c48, %c0_51] : memref<96x256xbf16, #tpu.memory_space<vmem>>, vector<48x128xbf16>
      tpu.vector_store %arg14[%c48, %c0_51], %90 {strides = array<i32>} : memref<96x256xbf16, #tpu.memory_space<vmem>>, vector<48x128xbf16>,
      %92 = vector.extract_strided_slice %80 {offsets = [0, 384], sizes = [48, 128], strides = [1, 1]} : vector<48x512xf32> to vector<48x128xf32>
      %c0_52 = arith.constant 0 : index
      %c0_53 = arith.constant 0 : index
      %93 = vector.load %arg15[%c0_52, %c0_53] : memref<48x128xf32, #tpu.memory_space<vmem>>, vector<48x128xf32>
      tpu.vector_store %arg15[%c0_52, %c0_53], %92 {strides = array<i32>} : memref<48x128xf32, #tpu.memory_space<vmem>>, vector<48x128xf32>,
      %cst_54 = arith.constant 0.000000e+00 : f32
      %94 = vector.broadcast %cst_54 : f32 to vector<48x256xf32>
      %c0_55 = arith.constant 0 : index
      %c0_56 = arith.constant 0 : index
      %95 = vector.load %arg16[%c0_55, %c0_56] : memref<48x256xf32, #tpu.memory_space<vmem>>, vector<48x256xf32>
      tpu.vector_store %arg16[%c0_55, %c0_56], %94 {strides = array<i32>} : memref<48x256xf32, #tpu.memory_space<vmem>>, vector<48x256xf32>,
      %cst_57 = arith.constant 0.000000e+00 : f32
      %96 = vector.broadcast %cst_57 : f32 to vector<1x128xf32>
      %c0_58 = arith.constant 0 : index
      %c0_59 = arith.constant 0 : index
      %97 = vector.load %arg17[%c0_58, %c0_59] : memref<1x128xf32, #tpu.memory_space<vmem>>, vector<1x128xf32>
      tpu.vector_store %arg17[%c0_58, %c0_59], %96 {strides = array<i32>} : memref<1x128xf32, #tpu.memory_space<vmem>>, vector<1x128xf32>,
      %cst_60 = arith.constant 0.000000e+00 : f32
      %98 = vector.broadcast %cst_60 : f32 to vector<1x128xf32>
      %c0_61 = arith.constant 0 : index
      %c0_62 = arith.constant 0 : index
      %99 = vector.load %arg18[%c0_61, %c0_62] : memref<1x128xf32, #tpu.memory_space<vmem>>, vector<1x128xf32>
      tpu.vector_store %arg18[%c0_61, %c0_62], %98 {strides = array<i32>} : memref<1x128xf32, #tpu.memory_space<vmem>>, vector<1x128xf32>,
    } else {
    }
    %c0 = arith.constant 0 : index
    %c0_1 = arith.constant 0 : index
    %3 = vector.load %arg2[%c0, %c0_1] : memref<32x128xf32, #tpu.memory_space<vmem>>, vector<32x128xf32>
    %c0_2 = arith.constant 0 : index
    %c0_3 = arith.constant 0 : index
    %4 = vector.load %arg7[%c0_2, %c0_3] : memref<128x128xf32, #tpu.memory_space<vmem>>, vector<128x128xf32>
    %cst = arith.constant dense<0.000000e+00> : vector<32x128xf32>
    %5 = tpu.matmul %3, %4, %cst {dimension_numbers = #tpu.dot_dimension_numbers<[1], [0], [0], [1], [0, 0, 1, 1], [], []>} : vector<32x128xf32>, vector<128x128xf32>, vector<32x128xf32> -> vector<32x128xf32>
    %c0_4 = arith.constant 0 : index
    %c0_5 = arith.constant 0 : index
    %6 = vector.load %arg8[%c0_4, %c0_5] : memref<1x128xf32, #tpu.memory_space<vmem>>, vector<1x128xf32>
    %7 = vector.broadcast %6 : vector<1x128xf32> to vector<32x128xf32>
    %8 = arith.addf %5, %7 : vector<32x128xf32>
    %c0_6 = arith.constant 0 : index
    %c0_7 = arith.constant 0 : index
    %9 = vector.load %arg3[%c0_6, %c0_7] : memref<32x1xi32, #tpu.memory_space<vmem>>, vector<32x1xi32>
    %c0_8 = arith.constant 0 : index
    %c0_9 = arith.constant 0 : index
    %10 = vector.load %arg4[%c0_8, %c0_9] : memref<32x1xi32, #tpu.memory_space<vmem>>, vector<32x1xi32>
    %11 = tpu.iota {dimensions = array<i32: 1>} : vector<32x96xi32>
    %12 = vector.broadcast %9 : vector<32x1xi32> to vector<32x96xi32>
    %13 = arith.cmpi eq, %12, %11 : vector<32x96xi32>
    %c48_i32 = arith.constant 48 : i32
    %14 = vector.broadcast %c48_i32 : i32 to vector<32x1xi32>
    %15 = arith.addi %10, %14 : vector<32x1xi32>
    %16 = vector.broadcast %15 : vector<32x1xi32> to vector<32x96xi32>
    %17 = arith.cmpi eq, %16, %11 : vector<32x96xi32>
    %18 = arith.ori %13, %17 : vector<32x96xi1>
    %cst_10 = arith.constant 1.000000e+00 : f32
    %cst_11 = arith.constant 0.000000e+00 : f32
    %19 = vector.broadcast %cst_10 : f32 to vector<32x96xf32>
    %20 = vector.broadcast %cst_11 : f32 to vector<32x96xf32>
    %21 = arith.select %18, %19, %20 : vector<32x96xi1>, vector<32x96xf32>
    %22 = arith.truncf %21 : vector<32x96xf32> to vector<32x96xbf16>
    %c0_12 = arith.constant 0 : index
    %c0_13 = arith.constant 0 : index
    %23 = vector.load %arg14[%c0_12, %c0_13] : memref<96x256xbf16, #tpu.memory_space<vmem>>, vector<96x256xbf16>
    %cst_14 = arith.constant dense<0.000000e+00> : vector<32x256xf32>
    %24 = tpu.matmul %22, %23, %cst_14 {dimension_numbers = #tpu.dot_dimension_numbers<[1], [0], [0], [1], [0, 0, 1, 1], [], []>} : vector<32x96xbf16>, vector<96x256xbf16>, vector<32x256xf32> -> vector<32x256xf32>
    %25 = vector.extract_strided_slice %24 {offsets = [0, 0], sizes = [32, 128], strides = [1, 1]} : vector<32x256xf32> to vector<32x128xf32>
    %26 = arith.addf %25, %8 : vector<32x128xf32>
    %27 = arith.negf %26 : vector<32x128xf32>
    %28 = math.exp %27 : vector<32x128xf32>
    %cst_15 = arith.constant 1.000000e+00 : f32
    %29 = vector.broadcast %cst_15 : f32 to vector<32x128xf32>
    %30 = arith.addf %29, %28 : vector<32x128xf32>
    %31 = arith.divf %29, %30 : vector<32x128xf32>
    %32 = vector.extract_strided_slice %24 {offsets = [0, 128], sizes = [32, 128], strides = [1, 1]} : vector<32x256xf32> to vector<32x128xf32>
    %c32_i32 = arith.constant 32 : i32
    %33 = arith.muli %arg0, %c32_i32 : i32
    %34 = tpu.iota {dimensions = array<i32: 0>} : vector<32x1xi32>
    %35 = vector.broadcast %33 : i32 to vector<32x1xi32>
    %36 = arith.addi %35, %34 : vector<32x1xi32>
    %c96_i32 = arith.constant 96 : i32
    %37 = vector.broadcast %c96_i32 : i32 to vector<32x1xi32>
    %38 = arith.cmpi slt, %36, %37 : vector<32x1xi32>
    %cst_16 = arith.constant 1.000000e+00 : f32
    %cst_17 = arith.constant 0.000000e+00 : f32
    %39 = vector.broadcast %cst_16 : f32 to vector<32x1xf32>
    %40 = vector.broadcast %cst_17 : f32 to vector<32x1xf32>
    %41 = arith.select %38, %39, %40 : vector<32x1xi1>, vector<32x1xf32>
    %42 = tpu.iota {dimensions = array<i32: 1>} : vector<32x48xi32>
    %43 = vector.broadcast %10 : vector<32x1xi32> to vector<32x48xi32>
    %44 = arith.cmpi eq, %43, %42 : vector<32x48xi32>
    %cst_18 = arith.constant 1.000000e+00 : f32
    %cst_19 = arith.constant 0.000000e+00 : f32
    %45 = vector.broadcast %cst_18 : f32 to vector<32x48xf32>
    %46 = vector.broadcast %cst_19 : f32 to vector<32x48xf32>
    %47 = arith.select %44, %45, %46 : vector<32x48xi1>, vector<32x48xf32>
    %48 = arith.truncf %47 : vector<32x48xf32> to vector<32x48xbf16>
    %49 = arith.mulf %31, %32 : vector<32x128xf32>
    %50 = tpu.concatenate %49, %31 in 1 : vector<32x128xf32>, vector<32x128xf32> -> vector<32x256xf32>
    %51 = vector.broadcast %41 : vector<32x1xf32> to vector<32x256xf32>
    %52 = arith.mulf %50, %51 : vector<32x256xf32>
    %53 = arith.truncf %52 : vector<32x256xf32> to vector<32x256xbf16>
    %c0_20 = arith.constant 0 : index
    %c0_21 = arith.constant 0 : index
    %54 = vector.load %arg16[%c0_20, %c0_21] : memref<48x256xf32, #tpu.memory_space<vmem>>, vector<48x256xf32>
    %cst_22 = arith.constant dense<0.000000e+00> : vector<48x256xf32>
    %55 = tpu.matmul %48, %53, %cst_22 {dimension_numbers = #tpu.dot_dimension_numbers<[0], [0], [1], [1], [0, 1, 1, 1], [], []>} : vector<32x48xbf16>, vector<32x256xbf16>, vector<48x256xf32> -> vector<48x256xf32>
    %56 = arith.addf %54, %55 : vector<48x256xf32>
    %c0_23 = arith.constant 0 : index
    %c0_24 = arith.constant 0 : index
    %57 = vector.load %arg16[%c0_23, %c0_24] : memref<48x256xf32, #tpu.memory_space<vmem>>, vector<48x256xf32>
    tpu.vector_store %arg16[%c0_23, %c0_24], %56 {strides = array<i32>} : memref<48x256xf32, #tpu.memory_space<vmem>>, vector<48x256xf32>,
    %c0_25 = arith.constant 0 : index
    %c0_26 = arith.constant 0 : index
    %58 = vector.load %arg12[%c0_25, %c0_26] : memref<32x128xf32, #tpu.memory_space<vmem>>, vector<32x128xf32>
    tpu.vector_store %arg12[%c0_25, %c0_26], %26 {strides = array<i32>} : memref<32x128xf32, #tpu.memory_space<vmem>>, vector<32x128xf32>,
    %59 = vector.broadcast %41 : vector<32x1xf32> to vector<32x128xf32>
    %60 = arith.mulf %26, %59 : vector<32x128xf32>
    %c0_27 = arith.constant 0 : index
    %c0_28 = arith.constant 0 : index
    %61 = vector.load %arg17[%c0_27, %c0_28] : memref<1x128xf32, #tpu.memory_space<vmem>>, vector<1x128xf32>
    %cst_29 = arith.constant dense<0.000000e+00> : vector<128xf32>
    %62 = vector.multi_reduction <add>, %60, %cst_29 [0] : vector<32x128xf32> to vector<128xf32>
    %63 = vector.shape_cast %62 : vector<128xf32> to vector<1x128xf32>
    %64 = arith.addf %61, %63 : vector<1x128xf32>
    %c0_30 = arith.constant 0 : index
    %c0_31 = arith.constant 0 : index
    %65 = vector.load %arg17[%c0_30, %c0_31] : memref<1x128xf32, #tpu.memory_space<vmem>>, vector<1x128xf32>
    tpu.vector_store %arg17[%c0_30, %c0_31], %64 {strides = array<i32>} : memref<1x128xf32, #tpu.memory_space<vmem>>, vector<1x128xf32>,
    %c0_32 = arith.constant 0 : index
    %c0_33 = arith.constant 0 : index
    %66 = vector.load %arg18[%c0_32, %c0_33] : memref<1x128xf32, #tpu.memory_space<vmem>>, vector<1x128xf32>
    %67 = arith.mulf %60, %26 : vector<32x128xf32>
    %cst_34 = arith.constant dense<0.000000e+00> : vector<128xf32>
    %68 = vector.multi_reduction <add>, %67, %cst_34 [0] : vector<32x128xf32> to vector<128xf32>
    %69 = vector.shape_cast %68 : vector<128xf32> to vector<1x128xf32>
    %70 = arith.addf %66, %69 : vector<1x128xf32>
    %c0_35 = arith.constant 0 : index
    %c0_36 = arith.constant 0 : index
    %71 = vector.load %arg18[%c0_35, %c0_36] : memref<1x128xf32, #tpu.memory_space<vmem>>, vector<1x128xf32>
    tpu.vector_store %arg18[%c0_35, %c0_36], %70 {strides = array<i32>} : memref<1x128xf32, #tpu.memory_space<vmem>>, vector<1x128xf32>,
    %c2_i32 = arith.constant 2 : i32
    %72 = arith.cmpi eq, %arg0, %c2_i32 : i32
    %73 = arith.extui %72 : i1 to i32
    %c0_i32_37 = arith.constant 0 : i32
    %74 = arith.cmpi ne, %73, %c0_i32_37 : i32
    scf.if %74 {
      %c0_38 = arith.constant 0 : index
      %c0_39 = arith.constant 0 : index
      %75 = vector.load %arg16[%c0_38, %c0_39] : memref<48x256xf32, #tpu.memory_space<vmem>>, vector<48x128xf32>
      %c0_40 = arith.constant 0 : index
      %c128 = arith.constant 128 : index
      %76 = vector.load %arg16[%c0_40, %c128] : memref<48x256xf32, #tpu.memory_space<vmem>>, vector<48x128xf32>
      %cst_41 = arith.constant 9.99999997E-7 : f32
      %77 = vector.broadcast %cst_41 : f32 to vector<48x128xf32>
      %78 = arith.addf %76, %77 : vector<48x128xf32>
      %79 = tpu.reciprocal %78 {approx = true} : vector<48x128xf32> -> vector<48x128xf32>
      %80 = arith.mulf %75, %79 : vector<48x128xf32>
      %c0_42 = arith.constant 0 : index
      %c0_43 = arith.constant 0 : index
      %81 = vector.load %arg15[%c0_42, %c0_43] : memref<48x128xf32, #tpu.memory_space<vmem>>, vector<48x128xf32>
      %82 = arith.addf %81, %80 : vector<48x128xf32>
      %cst_44 = arith.constant dense<0.000000e+00> : vector<128xf32>
      %83 = vector.multi_reduction <add>, %82, %cst_44 [0] : vector<48x128xf32> to vector<128xf32>
      %84 = vector.shape_cast %83 : vector<128xf32> to vector<1x128xf32>
      %cst_45 = arith.constant 4.800000e+01 : f32
      %85 = vector.broadcast %cst_45 : f32 to vector<1x128xf32>
      %86 = arith.divf %84, %85 : vector<1x128xf32>
      %87 = arith.mulf %82, %82 : vector<48x128xf32>
      %cst_46 = arith.constant dense<0.000000e+00> : vector<128xf32>
      %88 = vector.multi_reduction <add>, %87, %cst_46 [0] : vector<48x128xf32> to vector<128xf32>
      %89 = vector.shape_cast %88 : vector<128xf32> to vector<1x128xf32>
      %cst_47 = arith.constant 4.800000e+01 : f32
      %90 = vector.broadcast %cst_47 : f32 to vector<1x128xf32>
      %91 = arith.divf %89, %90 : vector<1x128xf32>
      %92 = arith.mulf %86, %86 : vector<1x128xf32>
      %93 = arith.subf %91, %92 : vector<1x128xf32>
      %94 = vector.broadcast %86 : vector<1x128xf32> to vector<48x128xf32>
      %95 = arith.subf %82, %94 : vector<48x128xf32>
      %cst_48 = arith.constant 9.99999974E-6 : f32
      %96 = vector.broadcast %cst_48 : f32 to vector<1x128xf32>
      %97 = arith.addf %93, %96 : vector<1x128xf32>
      %98 = math.rsqrt %97 : vector<1x128xf32>
      %99 = vector.broadcast %98 : vector<1x128xf32> to vector<48x128xf32>
      %100 = arith.mulf %95, %99 : vector<48x128xf32>
      %c0_49 = arith.constant 0 : index
      %c0_50 = arith.constant 0 : index
      %101 = vector.load %arg9[%c0_49, %c0_50] : memref<1x128xf32, #tpu.memory_space<vmem>>, vector<1x128xf32>
      %102 = vector.broadcast %101 : vector<1x128xf32> to vector<48x128xf32>
      %103 = arith.mulf %100, %102 : vector<48x128xf32>
      %c0_51 = arith.constant 0 : index
      %c0_52 = arith.constant 0 : index
      %104 = vector.load %arg10[%c0_51, %c0_52] : memref<1x128xf32, #tpu.memory_space<vmem>>, vector<1x128xf32>
      %105 = vector.broadcast %104 : vector<1x128xf32> to vector<48x128xf32>
      %106 = arith.addf %103, %105 : vector<48x128xf32>
      %c0_53 = arith.constant 0 : index
      %c0_54 = arith.constant 0 : index
      %107 = vector.load %arg1[%c0_53, %c0_54] : memref<48x128xf32, #tpu.memory_space<vmem>>, vector<48x128xf32>
      %108 = arith.negf %106 : vector<48x128xf32>
      %109 = math.exp %108 : vector<48x128xf32>
      %cst_55 = arith.constant 1.000000e+00 : f32
      %110 = vector.broadcast %cst_55 : f32 to vector<48x128xf32>
      %111 = arith.addf %110, %109 : vector<48x128xf32>
      %112 = arith.divf %110, %111 : vector<48x128xf32>
      %113 = arith.mulf %106, %112 : vector<48x128xf32>
      %114 = arith.addf %107, %113 : vector<48x128xf32>
      %c0_56 = arith.constant 0 : index
      %c0_57 = arith.constant 0 : index
      %115 = vector.load %arg11[%c0_56, %c0_57] : memref<48x128xf32, #tpu.memory_space<vmem>>, vector<48x128xf32>
      tpu.vector_store %arg11[%c0_56, %c0_57], %114 {strides = array<i32>} : memref<48x128xf32, #tpu.memory_space<vmem>>, vector<48x128xf32>,
      %c0_58 = arith.constant 0 : index
      %c0_59 = arith.constant 0 : index
      %116 = vector.load %arg17[%c0_58, %c0_59] : memref<1x128xf32, #tpu.memory_space<vmem>>, vector<1x128xf32>
      %c0_60 = arith.constant 0 : index
      %c0_61 = arith.constant 0 : index
      %117 = vector.load %arg18[%c0_60, %c0_61] : memref<1x128xf32, #tpu.memory_space<vmem>>, vector<1x128xf32>
      %118 = tpu.concatenate %116, %117 in 0 : vector<1x128xf32>, vector<1x128xf32> -> vector<2x128xf32>
      %c0_62 = arith.constant 0 : index
      %c0_63 = arith.constant 0 : index
      %119 = vector.load %arg13[%c0_62, %c0_63] : memref<2x128xf32, #tpu.memory_space<vmem>>, vector<2x128xf32>
      tpu.vector_store %arg13[%c0_62, %c0_63], %118 {strides = array<i32>} : memref<2x128xf32, #tpu.memory_space<vmem>>, vector<2x128xf32>,
    } else {
    }
    return
  }
  func.func @transform_0(%arg0: i32) -> (i32, i32) {
    %c0_i32 = arith.constant 0 : i32
    %c0_i32_0 = arith.constant 0 : i32
    %c0_i32_1 = arith.constant 0 : i32
    return %c0_i32, %c0_i32_0 : i32, i32
  }
  func.func @transform_1(%arg0: i32) -> (i32, i32) {
    %c0_i32 = arith.constant 0 : i32
    %c0_i32_0 = arith.constant 0 : i32
    return %arg0, %c0_i32 : i32, i32
  }
  func.func @transform_2(%arg0: i32) -> (i32, i32) {
    %c0_i32 = arith.constant 0 : i32
    %c0_i32_0 = arith.constant 0 : i32
    return %arg0, %c0_i32 : i32, i32
  }
  func.func @transform_3(%arg0: i32) -> (i32, i32) {
    %c0_i32 = arith.constant 0 : i32
    %c0_i32_0 = arith.constant 0 : i32
    return %arg0, %c0_i32 : i32, i32
  }
  func.func @transform_4(%arg0: i32) -> (i32, i32) {
    %c0_i32 = arith.constant 0 : i32
    %c0_i32_0 = arith.constant 0 : i32
    %c0_i32_1 = arith.constant 0 : i32
    return %c0_i32, %c0_i32_0 : i32, i32
  }
  func.func @transform_5(%arg0: i32) -> (i32, i32) {
    %c0_i32 = arith.constant 0 : i32
    %c0_i32_0 = arith.constant 0 : i32
    %c0_i32_1 = arith.constant 0 : i32
    return %c0_i32, %c0_i32_0 : i32, i32
  }
  func.func @transform_6(%arg0: i32) -> (i32, i32) {
    %c0_i32 = arith.constant 0 : i32
    %c0_i32_0 = arith.constant 0 : i32
    %c0_i32_1 = arith.constant 0 : i32
    return %c0_i32, %c0_i32_0 : i32, i32
  }
  func.func @transform_7(%arg0: i32) -> (i32, i32) {
    %c0_i32 = arith.constant 0 : i32
    %c0_i32_0 = arith.constant 0 : i32
    %c0_i32_1 = arith.constant 0 : i32
    return %c0_i32, %c0_i32_0 : i32, i32
  }
  func.func @transform_8(%arg0: i32) -> (i32, i32) {
    %c0_i32 = arith.constant 0 : i32
    %c0_i32_0 = arith.constant 0 : i32
    %c0_i32_1 = arith.constant 0 : i32
    return %c0_i32, %c0_i32_0 : i32, i32
  }
  func.func @transform_9(%arg0: i32) -> (i32, i32) {
    %c0_i32 = arith.constant 0 : i32
    %c0_i32_0 = arith.constant 0 : i32
    %c0_i32_1 = arith.constant 0 : i32
    return %c0_i32, %c0_i32_0 : i32, i32
  }
  func.func @transform_10(%arg0: i32) -> (i32, i32) {
    %c0_i32 = arith.constant 0 : i32
    %c0_i32_0 = arith.constant 0 : i32
    %c0_i32_1 = arith.constant 0 : i32
    return %c0_i32, %c0_i32_0 : i32, i32
  }
  func.func @transform_11(%arg0: i32) -> (i32, i32) {
    %c0_i32 = arith.constant 0 : i32
    %c0_i32_0 = arith.constant 0 : i32
    return %arg0, %c0_i32 : i32, i32
  }
  func.func @transform_12(%arg0: i32) -> (i32, i32) {
    %c0_i32 = arith.constant 0 : i32
    %c0_i32_0 = arith.constant 0 : i32
    %c0_i32_1 = arith.constant 0 : i32
    return %c0_i32, %c0_i32_0 : i32, i32
  }
}

module attributes {stable_mosaic.version = 11 : i64} {
  func.func @_egc_main_kernel(%arg0: i32, %arg1: memref<16x128xf32, #tpu.memory_space<vmem>>, %arg2: memref<32x128xf32, #tpu.memory_space<vmem>>, %arg3: memref<32x1xi32, #tpu.memory_space<vmem>>, %arg4: memref<32x1xi32, #tpu.memory_space<vmem>>, %arg5: memref<128x512xf32, #tpu.memory_space<vmem>>, %arg6: memref<1x512xf32, #tpu.memory_space<vmem>>, %arg7: memref<128x128xf32, #tpu.memory_space<vmem>>, %arg8: memref<1x128xf32, #tpu.memory_space<vmem>>, %arg9: memref<1x128xf32, #tpu.memory_space<vmem>>, %arg10: memref<1x128xf32, #tpu.memory_space<vmem>>, %arg11: memref<16x128xf32, #tpu.memory_space<vmem>>, %arg12: memref<32x128xf32, #tpu.memory_space<vmem>>, %arg13: memref<2x128xf32, #tpu.memory_space<vmem>>, %arg14: memref<32x256xbf16, #tpu.memory_space<vmem>>, %arg15: memref<16x128xf32, #tpu.memory_space<vmem>>, %arg16: memref<16x256xf32, #tpu.memory_space<vmem>>, %arg17: memref<1x128xf32, #tpu.memory_space<vmem>>, %arg18: memref<1x128xf32, #tpu.memory_space<vmem>>) attributes {dimension_semantics = [#tpu.dimension_semantics<arbitrary>], iteration_bounds = array<i64: 2>, scalar_prefetch = 0 : i64, scratch_operands = 5 : i64, tpu.core_type = #tpu.core_type<tc>, window_params = [{pipeline_mode = #tpu.pipeline_mode<synchronous>, transform_indices = @transform_0, window_bounds = array<i64: 16, 128>}, {transform_indices = @transform_1, window_bounds = array<i64: 32, 128>}, {transform_indices = @transform_2, window_bounds = array<i64: 32, 1>}, {transform_indices = @transform_3, window_bounds = array<i64: 32, 1>}, {pipeline_mode = #tpu.pipeline_mode<synchronous>, transform_indices = @transform_4, window_bounds = array<i64: 128, 512>}, {pipeline_mode = #tpu.pipeline_mode<synchronous>, transform_indices = @transform_5, window_bounds = array<i64: 1, 512>}, {pipeline_mode = #tpu.pipeline_mode<synchronous>, transform_indices = @transform_6, window_bounds = array<i64: 128, 128>}, {pipeline_mode = #tpu.pipeline_mode<synchronous>, transform_indices = @transform_7, window_bounds = array<i64: 1, 128>}, {pipeline_mode = #tpu.pipeline_mode<synchronous>, transform_indices = @transform_8, window_bounds = array<i64: 1, 128>}, {pipeline_mode = #tpu.pipeline_mode<synchronous>, transform_indices = @transform_9, window_bounds = array<i64: 1, 128>}, {pipeline_mode = #tpu.pipeline_mode<synchronous>, transform_indices = @transform_10, window_bounds = array<i64: 16, 128>}, {transform_indices = @transform_11, window_bounds = array<i64: 32, 128>}, {pipeline_mode = #tpu.pipeline_mode<synchronous>, transform_indices = @transform_12, window_bounds = array<i64: 2, 128>}]} {
    %c0_i32 = arith.constant 0 : i32
    %0 = arith.cmpi eq, %arg0, %c0_i32 : i32
    %1 = arith.extui %0 : i1 to i32
    %c0_i32_0 = arith.constant 0 : i32
    %2 = arith.cmpi ne, %1, %c0_i32_0 : i32
    scf.if %2 {
      %c0_38 = arith.constant 0 : index
      %c0_39 = arith.constant 0 : index
      %75 = vector.load %arg1[%c0_38, %c0_39] : memref<16x128xf32, #tpu.memory_space<vmem>>, vector<16x128xf32>
      %c0_40 = arith.constant 0 : index
      %c0_41 = arith.constant 0 : index
      %76 = vector.load %arg5[%c0_40, %c0_41] : memref<128x512xf32, #tpu.memory_space<vmem>>, vector<128x512xf32>
      %cst_42 = arith.constant dense<0.000000e+00> : vector<16x512xf32>
      %77 = tpu.matmul %75, %76, %cst_42 {dimension_numbers = #tpu.dot_dimension_numbers<[1], [0], [0], [1], [0, 0, 1, 1], [], []>} : vector<16x128xf32>, vector<128x512xf32>, vector<16x512xf32> -> vector<16x512xf32>
      %c0_43 = arith.constant 0 : index
      %c0_44 = arith.constant 0 : index
      %78 = vector.load %arg6[%c0_43, %c0_44] : memref<1x512xf32, #tpu.memory_space<vmem>>, vector<1x512xf32>
      %79 = vector.broadcast %78 : vector<1x512xf32> to vector<16x512xf32>
      %80 = arith.addf %77, %79 : vector<16x512xf32>
      %cst_45 = arith.constant 0.000000e+00 : bf16
      %81 = vector.broadcast %cst_45 : bf16 to vector<32x256xbf16>
      %c0_46 = arith.constant 0 : index
      %c0_47 = arith.constant 0 : index
      %82 = vector.load %arg14[%c0_46, %c0_47] : memref<32x256xbf16, #tpu.memory_space<vmem>>, vector<32x256xbf16>
      tpu.vector_store %arg14[%c0_46, %c0_47], %81 {strides = array<i32>} : memref<32x256xbf16, #tpu.memory_space<vmem>>, vector<32x256xbf16>,
      %83 = vector.extract_strided_slice %80 {offsets = [0, 0], sizes = [16, 128], strides = [1, 1]} : vector<16x512xf32> to vector<16x128xf32>
      %84 = arith.truncf %83 : vector<16x128xf32> to vector<16x128xbf16>
      %c0_48 = arith.constant 0 : index
      %c0_49 = arith.constant 0 : index
      %85 = vector.load %arg14[%c0_48, %c0_49] : memref<32x256xbf16, #tpu.memory_space<vmem>>, vector<16x128xbf16>
      tpu.vector_store %arg14[%c0_48, %c0_49], %84 {strides = array<i32>} : memref<32x256xbf16, #tpu.memory_space<vmem>>, vector<16x128xbf16>,
      %86 = vector.extract_strided_slice %80 {offsets = [0, 256], sizes = [16, 128], strides = [1, 1]} : vector<16x512xf32> to vector<16x128xf32>
      %87 = arith.truncf %86 : vector<16x128xf32> to vector<16x128xbf16>
      %c0_50 = arith.constant 0 : index
      %c128 = arith.constant 128 : index
      %88 = vector.load %arg14[%c0_50, %c128] : memref<32x256xbf16, #tpu.memory_space<vmem>>, vector<16x128xbf16>
      tpu.vector_store %arg14[%c0_50, %c128], %87 {strides = array<i32>} : memref<32x256xbf16, #tpu.memory_space<vmem>>, vector<16x128xbf16>,
      %89 = vector.extract_strided_slice %80 {offsets = [0, 128], sizes = [16, 128], strides = [1, 1]} : vector<16x512xf32> to vector<16x128xf32>
      %90 = arith.truncf %89 : vector<16x128xf32> to vector<16x128xbf16>
      %c16 = arith.constant 16 : index
      %c0_51 = arith.constant 0 : index
      %91 = vector.load %arg14[%c16, %c0_51] : memref<32x256xbf16, #tpu.memory_space<vmem>>, vector<16x128xbf16>
      tpu.vector_store %arg14[%c16, %c0_51], %90 {strides = array<i32>} : memref<32x256xbf16, #tpu.memory_space<vmem>>, vector<16x128xbf16>,
      %92 = vector.extract_strided_slice %80 {offsets = [0, 384], sizes = [16, 128], strides = [1, 1]} : vector<16x512xf32> to vector<16x128xf32>
      %c0_52 = arith.constant 0 : index
      %c0_53 = arith.constant 0 : index
      %93 = vector.load %arg15[%c0_52, %c0_53] : memref<16x128xf32, #tpu.memory_space<vmem>>, vector<16x128xf32>
      tpu.vector_store %arg15[%c0_52, %c0_53], %92 {strides = array<i32>} : memref<16x128xf32, #tpu.memory_space<vmem>>, vector<16x128xf32>,
      %cst_54 = arith.constant 0.000000e+00 : f32
      %94 = vector.broadcast %cst_54 : f32 to vector<16x256xf32>
      %c0_55 = arith.constant 0 : index
      %c0_56 = arith.constant 0 : index
      %95 = vector.load %arg16[%c0_55, %c0_56] : memref<16x256xf32, #tpu.memory_space<vmem>>, vector<16x256xf32>
      tpu.vector_store %arg16[%c0_55, %c0_56], %94 {strides = array<i32>} : memref<16x256xf32, #tpu.memory_space<vmem>>, vector<16x256xf32>,
      %cst_57 = arith.constant 0.000000e+00 : f32
      %96 = vector.broadcast %cst_57 : f32 to vector<1x128xf32>
      %c0_58 = arith.constant 0 : index
      %c0_59 = arith.constant 0 : index
      %97 = vector.load %arg17[%c0_58, %c0_59] : memref<1x128xf32, #tpu.memory_space<vmem>>, vector<1x128xf32>
      tpu.vector_store %arg17[%c0_58, %c0_59], %96 {strides = array<i32>} : memref<1x128xf32, #tpu.memory_space<vmem>>, vector<1x128xf32>,
      %cst_60 = arith.constant 0.000000e+00 : f32
      %98 = vector.broadcast %cst_60 : f32 to vector<1x128xf32>
      %c0_61 = arith.constant 0 : index
      %c0_62 = arith.constant 0 : index
      %99 = vector.load %arg18[%c0_61, %c0_62] : memref<1x128xf32, #tpu.memory_space<vmem>>, vector<1x128xf32>
      tpu.vector_store %arg18[%c0_61, %c0_62], %98 {strides = array<i32>} : memref<1x128xf32, #tpu.memory_space<vmem>>, vector<1x128xf32>,
    } else {
    }
    %c0 = arith.constant 0 : index
    %c0_1 = arith.constant 0 : index
    %3 = vector.load %arg2[%c0, %c0_1] : memref<32x128xf32, #tpu.memory_space<vmem>>, vector<32x128xf32>
    %c0_2 = arith.constant 0 : index
    %c0_3 = arith.constant 0 : index
    %4 = vector.load %arg7[%c0_2, %c0_3] : memref<128x128xf32, #tpu.memory_space<vmem>>, vector<128x128xf32>
    %cst = arith.constant dense<0.000000e+00> : vector<32x128xf32>
    %5 = tpu.matmul %3, %4, %cst {dimension_numbers = #tpu.dot_dimension_numbers<[1], [0], [0], [1], [0, 0, 1, 1], [], []>} : vector<32x128xf32>, vector<128x128xf32>, vector<32x128xf32> -> vector<32x128xf32>
    %c0_4 = arith.constant 0 : index
    %c0_5 = arith.constant 0 : index
    %6 = vector.load %arg8[%c0_4, %c0_5] : memref<1x128xf32, #tpu.memory_space<vmem>>, vector<1x128xf32>
    %7 = vector.broadcast %6 : vector<1x128xf32> to vector<32x128xf32>
    %8 = arith.addf %5, %7 : vector<32x128xf32>
    %c0_6 = arith.constant 0 : index
    %c0_7 = arith.constant 0 : index
    %9 = vector.load %arg3[%c0_6, %c0_7] : memref<32x1xi32, #tpu.memory_space<vmem>>, vector<32x1xi32>
    %c0_8 = arith.constant 0 : index
    %c0_9 = arith.constant 0 : index
    %10 = vector.load %arg4[%c0_8, %c0_9] : memref<32x1xi32, #tpu.memory_space<vmem>>, vector<32x1xi32>
    %11 = tpu.iota {dimensions = array<i32: 1>} : vector<32x32xi32>
    %12 = vector.broadcast %9 : vector<32x1xi32> to vector<32x32xi32>
    %13 = arith.cmpi eq, %12, %11 : vector<32x32xi32>
    %c16_i32 = arith.constant 16 : i32
    %14 = vector.broadcast %c16_i32 : i32 to vector<32x1xi32>
    %15 = arith.addi %10, %14 : vector<32x1xi32>
    %16 = vector.broadcast %15 : vector<32x1xi32> to vector<32x32xi32>
    %17 = arith.cmpi eq, %16, %11 : vector<32x32xi32>
    %18 = arith.ori %13, %17 : vector<32x32xi1>
    %cst_10 = arith.constant 1.000000e+00 : f32
    %cst_11 = arith.constant 0.000000e+00 : f32
    %19 = vector.broadcast %cst_10 : f32 to vector<32x32xf32>
    %20 = vector.broadcast %cst_11 : f32 to vector<32x32xf32>
    %21 = arith.select %18, %19, %20 : vector<32x32xi1>, vector<32x32xf32>
    %22 = arith.truncf %21 : vector<32x32xf32> to vector<32x32xbf16>
    %c0_12 = arith.constant 0 : index
    %c0_13 = arith.constant 0 : index
    %23 = vector.load %arg14[%c0_12, %c0_13] : memref<32x256xbf16, #tpu.memory_space<vmem>>, vector<32x256xbf16>
    %cst_14 = arith.constant dense<0.000000e+00> : vector<32x256xf32>
    %24 = tpu.matmul %22, %23, %cst_14 {dimension_numbers = #tpu.dot_dimension_numbers<[1], [0], [0], [1], [0, 0, 1, 1], [], []>} : vector<32x32xbf16>, vector<32x256xbf16>, vector<32x256xf32> -> vector<32x256xf32>
    %25 = vector.extract_strided_slice %24 {offsets = [0, 0], sizes = [32, 128], strides = [1, 1]} : vector<32x256xf32> to vector<32x128xf32>
    %26 = arith.addf %25, %8 : vector<32x128xf32>
    %27 = arith.negf %26 : vector<32x128xf32>
    %28 = math.exp %27 : vector<32x128xf32>
    %cst_15 = arith.constant 1.000000e+00 : f32
    %29 = vector.broadcast %cst_15 : f32 to vector<32x128xf32>
    %30 = arith.addf %29, %28 : vector<32x128xf32>
    %31 = arith.divf %29, %30 : vector<32x128xf32>
    %32 = vector.extract_strided_slice %24 {offsets = [0, 128], sizes = [32, 128], strides = [1, 1]} : vector<32x256xf32> to vector<32x128xf32>
    %c32_i32 = arith.constant 32 : i32
    %33 = arith.muli %arg0, %c32_i32 : i32
    %34 = tpu.iota {dimensions = array<i32: 0>} : vector<32x1xi32>
    %35 = vector.broadcast %33 : i32 to vector<32x1xi32>
    %36 = arith.addi %35, %34 : vector<32x1xi32>
    %c48_i32 = arith.constant 48 : i32
    %37 = vector.broadcast %c48_i32 : i32 to vector<32x1xi32>
    %38 = arith.cmpi slt, %36, %37 : vector<32x1xi32>
    %cst_16 = arith.constant 1.000000e+00 : f32
    %cst_17 = arith.constant 0.000000e+00 : f32
    %39 = vector.broadcast %cst_16 : f32 to vector<32x1xf32>
    %40 = vector.broadcast %cst_17 : f32 to vector<32x1xf32>
    %41 = arith.select %38, %39, %40 : vector<32x1xi1>, vector<32x1xf32>
    %42 = tpu.iota {dimensions = array<i32: 1>} : vector<32x16xi32>
    %43 = vector.broadcast %10 : vector<32x1xi32> to vector<32x16xi32>
    %44 = arith.cmpi eq, %43, %42 : vector<32x16xi32>
    %cst_18 = arith.constant 1.000000e+00 : f32
    %cst_19 = arith.constant 0.000000e+00 : f32
    %45 = vector.broadcast %cst_18 : f32 to vector<32x16xf32>
    %46 = vector.broadcast %cst_19 : f32 to vector<32x16xf32>
    %47 = arith.select %44, %45, %46 : vector<32x16xi1>, vector<32x16xf32>
    %48 = arith.truncf %47 : vector<32x16xf32> to vector<32x16xbf16>
    %49 = arith.mulf %31, %32 : vector<32x128xf32>
    %50 = tpu.concatenate %49, %31 in 1 : vector<32x128xf32>, vector<32x128xf32> -> vector<32x256xf32>
    %51 = vector.broadcast %41 : vector<32x1xf32> to vector<32x256xf32>
    %52 = arith.mulf %50, %51 : vector<32x256xf32>
    %53 = arith.truncf %52 : vector<32x256xf32> to vector<32x256xbf16>
    %c0_20 = arith.constant 0 : index
    %c0_21 = arith.constant 0 : index
    %54 = vector.load %arg16[%c0_20, %c0_21] : memref<16x256xf32, #tpu.memory_space<vmem>>, vector<16x256xf32>
    %cst_22 = arith.constant dense<0.000000e+00> : vector<16x256xf32>
    %55 = tpu.matmul %48, %53, %cst_22 {dimension_numbers = #tpu.dot_dimension_numbers<[0], [0], [1], [1], [0, 1, 1, 1], [], []>} : vector<32x16xbf16>, vector<32x256xbf16>, vector<16x256xf32> -> vector<16x256xf32>
    %56 = arith.addf %54, %55 : vector<16x256xf32>
    %c0_23 = arith.constant 0 : index
    %c0_24 = arith.constant 0 : index
    %57 = vector.load %arg16[%c0_23, %c0_24] : memref<16x256xf32, #tpu.memory_space<vmem>>, vector<16x256xf32>
    tpu.vector_store %arg16[%c0_23, %c0_24], %56 {strides = array<i32>} : memref<16x256xf32, #tpu.memory_space<vmem>>, vector<16x256xf32>,
    %c0_25 = arith.constant 0 : index
    %c0_26 = arith.constant 0 : index
    %58 = vector.load %arg12[%c0_25, %c0_26] : memref<32x128xf32, #tpu.memory_space<vmem>>, vector<32x128xf32>
    tpu.vector_store %arg12[%c0_25, %c0_26], %26 {strides = array<i32>} : memref<32x128xf32, #tpu.memory_space<vmem>>, vector<32x128xf32>,
    %59 = vector.broadcast %41 : vector<32x1xf32> to vector<32x128xf32>
    %60 = arith.mulf %26, %59 : vector<32x128xf32>
    %c0_27 = arith.constant 0 : index
    %c0_28 = arith.constant 0 : index
    %61 = vector.load %arg17[%c0_27, %c0_28] : memref<1x128xf32, #tpu.memory_space<vmem>>, vector<1x128xf32>
    %cst_29 = arith.constant dense<0.000000e+00> : vector<128xf32>
    %62 = vector.multi_reduction <add>, %60, %cst_29 [0] : vector<32x128xf32> to vector<128xf32>
    %63 = vector.shape_cast %62 : vector<128xf32> to vector<1x128xf32>
    %64 = arith.addf %61, %63 : vector<1x128xf32>
    %c0_30 = arith.constant 0 : index
    %c0_31 = arith.constant 0 : index
    %65 = vector.load %arg17[%c0_30, %c0_31] : memref<1x128xf32, #tpu.memory_space<vmem>>, vector<1x128xf32>
    tpu.vector_store %arg17[%c0_30, %c0_31], %64 {strides = array<i32>} : memref<1x128xf32, #tpu.memory_space<vmem>>, vector<1x128xf32>,
    %c0_32 = arith.constant 0 : index
    %c0_33 = arith.constant 0 : index
    %66 = vector.load %arg18[%c0_32, %c0_33] : memref<1x128xf32, #tpu.memory_space<vmem>>, vector<1x128xf32>
    %67 = arith.mulf %60, %26 : vector<32x128xf32>
    %cst_34 = arith.constant dense<0.000000e+00> : vector<128xf32>
    %68 = vector.multi_reduction <add>, %67, %cst_34 [0] : vector<32x128xf32> to vector<128xf32>
    %69 = vector.shape_cast %68 : vector<128xf32> to vector<1x128xf32>
    %70 = arith.addf %66, %69 : vector<1x128xf32>
    %c0_35 = arith.constant 0 : index
    %c0_36 = arith.constant 0 : index
    %71 = vector.load %arg18[%c0_35, %c0_36] : memref<1x128xf32, #tpu.memory_space<vmem>>, vector<1x128xf32>
    tpu.vector_store %arg18[%c0_35, %c0_36], %70 {strides = array<i32>} : memref<1x128xf32, #tpu.memory_space<vmem>>, vector<1x128xf32>,
    %c1_i32 = arith.constant 1 : i32
    %72 = arith.cmpi eq, %arg0, %c1_i32 : i32
    %73 = arith.extui %72 : i1 to i32
    %c0_i32_37 = arith.constant 0 : i32
    %74 = arith.cmpi ne, %73, %c0_i32_37 : i32
    scf.if %74 {
      %c0_38 = arith.constant 0 : index
      %c0_39 = arith.constant 0 : index
      %75 = vector.load %arg16[%c0_38, %c0_39] : memref<16x256xf32, #tpu.memory_space<vmem>>, vector<16x128xf32>
      %c0_40 = arith.constant 0 : index
      %c128 = arith.constant 128 : index
      %76 = vector.load %arg16[%c0_40, %c128] : memref<16x256xf32, #tpu.memory_space<vmem>>, vector<16x128xf32>
      %cst_41 = arith.constant 9.99999997E-7 : f32
      %77 = vector.broadcast %cst_41 : f32 to vector<16x128xf32>
      %78 = arith.addf %76, %77 : vector<16x128xf32>
      %79 = tpu.reciprocal %78 {approx = true} : vector<16x128xf32> -> vector<16x128xf32>
      %80 = arith.mulf %75, %79 : vector<16x128xf32>
      %c0_42 = arith.constant 0 : index
      %c0_43 = arith.constant 0 : index
      %81 = vector.load %arg15[%c0_42, %c0_43] : memref<16x128xf32, #tpu.memory_space<vmem>>, vector<16x128xf32>
      %82 = arith.addf %81, %80 : vector<16x128xf32>
      %cst_44 = arith.constant dense<0.000000e+00> : vector<128xf32>
      %83 = vector.multi_reduction <add>, %82, %cst_44 [0] : vector<16x128xf32> to vector<128xf32>
      %84 = vector.shape_cast %83 : vector<128xf32> to vector<1x128xf32>
      %cst_45 = arith.constant 1.600000e+01 : f32
      %85 = vector.broadcast %cst_45 : f32 to vector<1x128xf32>
      %86 = arith.divf %84, %85 : vector<1x128xf32>
      %87 = arith.mulf %82, %82 : vector<16x128xf32>
      %cst_46 = arith.constant dense<0.000000e+00> : vector<128xf32>
      %88 = vector.multi_reduction <add>, %87, %cst_46 [0] : vector<16x128xf32> to vector<128xf32>
      %89 = vector.shape_cast %88 : vector<128xf32> to vector<1x128xf32>
      %cst_47 = arith.constant 1.600000e+01 : f32
      %90 = vector.broadcast %cst_47 : f32 to vector<1x128xf32>
      %91 = arith.divf %89, %90 : vector<1x128xf32>
      %92 = arith.mulf %86, %86 : vector<1x128xf32>
      %93 = arith.subf %91, %92 : vector<1x128xf32>
      %94 = vector.broadcast %86 : vector<1x128xf32> to vector<16x128xf32>
      %95 = arith.subf %82, %94 : vector<16x128xf32>
      %cst_48 = arith.constant 9.99999974E-6 : f32
      %96 = vector.broadcast %cst_48 : f32 to vector<1x128xf32>
      %97 = arith.addf %93, %96 : vector<1x128xf32>
      %98 = math.rsqrt %97 : vector<1x128xf32>
      %99 = vector.broadcast %98 : vector<1x128xf32> to vector<16x128xf32>
      %100 = arith.mulf %95, %99 : vector<16x128xf32>
      %c0_49 = arith.constant 0 : index
      %c0_50 = arith.constant 0 : index
      %101 = vector.load %arg9[%c0_49, %c0_50] : memref<1x128xf32, #tpu.memory_space<vmem>>, vector<1x128xf32>
      %102 = vector.broadcast %101 : vector<1x128xf32> to vector<16x128xf32>
      %103 = arith.mulf %100, %102 : vector<16x128xf32>
      %c0_51 = arith.constant 0 : index
      %c0_52 = arith.constant 0 : index
      %104 = vector.load %arg10[%c0_51, %c0_52] : memref<1x128xf32, #tpu.memory_space<vmem>>, vector<1x128xf32>
      %105 = vector.broadcast %104 : vector<1x128xf32> to vector<16x128xf32>
      %106 = arith.addf %103, %105 : vector<16x128xf32>
      %c0_53 = arith.constant 0 : index
      %c0_54 = arith.constant 0 : index
      %107 = vector.load %arg1[%c0_53, %c0_54] : memref<16x128xf32, #tpu.memory_space<vmem>>, vector<16x128xf32>
      %108 = arith.negf %106 : vector<16x128xf32>
      %109 = math.exp %108 : vector<16x128xf32>
      %cst_55 = arith.constant 1.000000e+00 : f32
      %110 = vector.broadcast %cst_55 : f32 to vector<16x128xf32>
      %111 = arith.addf %110, %109 : vector<16x128xf32>
      %112 = arith.divf %110, %111 : vector<16x128xf32>
      %113 = arith.mulf %106, %112 : vector<16x128xf32>
      %114 = arith.addf %107, %113 : vector<16x128xf32>
      %c0_56 = arith.constant 0 : index
      %c0_57 = arith.constant 0 : index
      %115 = vector.load %arg11[%c0_56, %c0_57] : memref<16x128xf32, #tpu.memory_space<vmem>>, vector<16x128xf32>
      tpu.vector_store %arg11[%c0_56, %c0_57], %114 {strides = array<i32>} : memref<16x128xf32, #tpu.memory_space<vmem>>, vector<16x128xf32>,
      %c0_58 = arith.constant 0 : index
      %c0_59 = arith.constant 0 : index
      %116 = vector.load %arg17[%c0_58, %c0_59] : memref<1x128xf32, #tpu.memory_space<vmem>>, vector<1x128xf32>
      %c0_60 = arith.constant 0 : index
      %c0_61 = arith.constant 0 : index
      %117 = vector.load %arg18[%c0_60, %c0_61] : memref<1x128xf32, #tpu.memory_space<vmem>>, vector<1x128xf32>
      %118 = tpu.concatenate %116, %117 in 0 : vector<1x128xf32>, vector<1x128xf32> -> vector<2x128xf32>
      %c0_62 = arith.constant 0 : index
      %c0_63 = arith.constant 0 : index
      %119 = vector.load %arg13[%c0_62, %c0_63] : memref<2x128xf32, #tpu.memory_space<vmem>>, vector<2x128xf32>
      tpu.vector_store %arg13[%c0_62, %c0_63], %118 {strides = array<i32>} : memref<2x128xf32, #tpu.memory_space<vmem>>, vector<2x128xf32>,
    } else {
    }
    return
  }
  func.func @transform_0(%arg0: i32) -> (i32, i32) {
    %c0_i32 = arith.constant 0 : i32
    %c0_i32_0 = arith.constant 0 : i32
    %c0_i32_1 = arith.constant 0 : i32
    return %c0_i32, %c0_i32_0 : i32, i32
  }
  func.func @transform_1(%arg0: i32) -> (i32, i32) {
    %c0_i32 = arith.constant 0 : i32
    %c0_i32_0 = arith.constant 0 : i32
    return %arg0, %c0_i32 : i32, i32
  }
  func.func @transform_2(%arg0: i32) -> (i32, i32) {
    %c0_i32 = arith.constant 0 : i32
    %c0_i32_0 = arith.constant 0 : i32
    return %arg0, %c0_i32 : i32, i32
  }
  func.func @transform_3(%arg0: i32) -> (i32, i32) {
    %c0_i32 = arith.constant 0 : i32
    %c0_i32_0 = arith.constant 0 : i32
    return %arg0, %c0_i32 : i32, i32
  }
  func.func @transform_4(%arg0: i32) -> (i32, i32) {
    %c0_i32 = arith.constant 0 : i32
    %c0_i32_0 = arith.constant 0 : i32
    %c0_i32_1 = arith.constant 0 : i32
    return %c0_i32, %c0_i32_0 : i32, i32
  }
  func.func @transform_5(%arg0: i32) -> (i32, i32) {
    %c0_i32 = arith.constant 0 : i32
    %c0_i32_0 = arith.constant 0 : i32
    %c0_i32_1 = arith.constant 0 : i32
    return %c0_i32, %c0_i32_0 : i32, i32
  }
  func.func @transform_6(%arg0: i32) -> (i32, i32) {
    %c0_i32 = arith.constant 0 : i32
    %c0_i32_0 = arith.constant 0 : i32
    %c0_i32_1 = arith.constant 0 : i32
    return %c0_i32, %c0_i32_0 : i32, i32
  }
  func.func @transform_7(%arg0: i32) -> (i32, i32) {
    %c0_i32 = arith.constant 0 : i32
    %c0_i32_0 = arith.constant 0 : i32
    %c0_i32_1 = arith.constant 0 : i32
    return %c0_i32, %c0_i32_0 : i32, i32
  }
  func.func @transform_8(%arg0: i32) -> (i32, i32) {
    %c0_i32 = arith.constant 0 : i32
    %c0_i32_0 = arith.constant 0 : i32
    %c0_i32_1 = arith.constant 0 : i32
    return %c0_i32, %c0_i32_0 : i32, i32
  }
  func.func @transform_9(%arg0: i32) -> (i32, i32) {
    %c0_i32 = arith.constant 0 : i32
    %c0_i32_0 = arith.constant 0 : i32
    %c0_i32_1 = arith.constant 0 : i32
    return %c0_i32, %c0_i32_0 : i32, i32
  }
  func.func @transform_10(%arg0: i32) -> (i32, i32) {
    %c0_i32 = arith.constant 0 : i32
    %c0_i32_0 = arith.constant 0 : i32
    %c0_i32_1 = arith.constant 0 : i32
    return %c0_i32, %c0_i32_0 : i32, i32
  }
  func.func @transform_11(%arg0: i32) -> (i32, i32) {
    %c0_i32 = arith.constant 0 : i32
    %c0_i32_0 = arith.constant 0 : i32
    return %arg0, %c0_i32 : i32, i32
  }
  func.func @transform_12(%arg0: i32) -> (i32, i32) {
    %c0_i32 = arith.constant 0 : i32
    %c0_i32_0 = arith.constant 0 : i32
    %c0_i32_1 = arith.constant 0 : i32
    return %c0_i32, %c0_i32_0 : i32, i32
  }
}

</mosaic_0001>

<bundles_post_ra>
// kernel: alignn_conv.7
= control target key start
LH: loop header
LB: loop body
LE: loop exit
PB: predicated region body
PF: predicated region fallthrough
CT: control target
= control target key end

     0   :  { %10 = vsyncpa [#allocation3], 0  ;;  %s831_s0 = inlined_call_operand.vmem [shape: f32[96,128], index: 0, kind: input, shape index: {}]   ;;  %s832_s1 = inlined_call_operand.vmem [shape: f32[96,128], index: 1, kind: input, shape index: {}]   ;;  %s833_s2 = inlined_call_operand.vmem [shape: f32[2,128], index: 2, kind: input, shape index: {}]   ;;  %s834_s3 = inlined_call_operand.vmem [shape: f32[1,128], index: 3, kind: input, shape index: {}]   ;;  %s835_s4 = inlined_call_operand.vmem [shape: f32[1,128], index: 4, kind: input, shape index: {}]   ;;  %s836_s5 = inlined_call_operand.hbm [shape: f32[96,128], index: 5, kind: output, shape index: {}]  }
   0x1   :  { %12 = vsyncpa [#allocation3 + $0x1], 0  ;;  %s654_s18 = smov 0   ;;  %s656_s19 = smov 0  }
   0x2   :  { %s658_s20 = smov 0   ;;  %s660_s21 = smov 0  }
   0x3 LB: > { %s675_s22 = sadd.s32 4294967295, %s620_s21   ;;  %s478_s23 = sadd.s32 4294967294, %s620_s21   ;;  %s620_s21 = sphi %s660_s21, %s856_s21   ;;  %s616_s20 = sphi %s658_s20, %s855_s20   ;;  %s612_s19 = sphi %s656_s19, %s854_s19   ;;  %s608_s18 = sphi %s654_s18, %s853_s18  }
   0x4   : > { %s679_s24 = sadd.s32 1, %s620_s21   ;;  %s140_s25 = sadd.s32 1, %s616_s20 }
   0x5   : > { %s137_s26 = ssub.s32 %s620_s21, %s679_s24  ;;  %p150_p0 = scmp.ne.s32.totalorder %s616_s20, %s612_s19 }
   0x6   : > { %p138_p1 = scmp.eq.s32.totalorder %s137_s26, 0  ;;  %p151_p2 = scmp.eq.s32.totalorder %s675_s22, 2 }
   0x7   : > { %p156_p3 = scmp.ne.s32.totalorder %s612_s19, %s608_s18  ;;  %p157_p4 = scmp.eq.s32.totalorder %s478_s23, 2 }
   0x8   : > { %s690_s27 = scalar_select %p138_p1, %s616_s20, %s140_s25  }
   0x9   : > { %p692_p5 = por %p151_p2, %p150_p0  ;;  %p696_p6 = por %p157_p4, %p156_p3 }
   0xa   : > { %p481_p7 = scmp.ge.s32.totalorder %s620_s21, 1  ;;  %p202_p8 = scmp.lt.s32.totalorder %s620_s21, 4 }
   0xc   : > { %p203_p9 = pnand %p481_p7, %p202_p8 }
   0xd   : > { %s483_s7 = sshll.u32 (!%p203_p9), %s675_s22, 2  ;;  %s232_s16 = sand.u32 (!%p203_p9), 1, %s612_s19  }
   0xe   : > { %206 = sbr.rel (%p203_p9) target bundleno = 95 (0x5f), region = 40  ;;  %p236_p10 = scmp.lt.s32.totalorder (!%p203_p9), %s483_s7, 11 }
   0xf   : > { %s482_s26 = sshll.u32 (!%p203_p9), %s232_s16, 5  ;;  %s496_s30 = sshll.u32 (!%p203_p9), %s675_s22, 5 }
  0x10   : > { %s578_s17 = scalar_lea.hbm (!%p203_p9), %s836_s5, 96 }
  0x13   : > { %v248_v0 = vld [vmem:[%s833_s2] sm:$0x3]  ;;  %s858_s7 = smov (!%p236_p10, %s483_s7), 11 }
  0x14   : > { %v249_v1 = vmul.f32 0.010416667, %v248_v0  ;;  %s484_s8 = sshll.u32 %s858_s7, 3  ;;  %v538_v23 = vld [vmem:[%s834_s3] ss:$0 sm:$0xff]  ;;  %s400_s7 = scalar_lea.hbm %s836_s5, %s496_s30 }
  0x15   : > { %s239_s11 = scalar_lea.vmem %s831_s0, %s484_s8  ;;  %v539_v25 = vld [vmem:[%s835_s4] ss:$0 sm:$0xff]  ;;  %s751_s25 = scalar_lea.vmem %s832_s1, %s484_s8 }
  0x16   : > { %v250_v2 = vmul.f32 %v249_v1, %v249_v1  ;;  %v255_v10 = vld [vmem:[%s239_s11] sm:$0xff]  ;;  %v259_v11 = vperm.slane %v249_v1, 0  ;;  %v256_v13 = vld [vmem:[%s239_s11 + $0x8] sm:$0xff]  ;;  %v257_v14 = vld [vmem:[%s239_s11 + $0x10] sm:$0xff]  ;;  %s234_s8 = scalar_lea.vmem [#allocation2], %s482_s26  ;;  %s403_s10 = sshll.u32 %s400_s7, 4  ;;  %s404_s10 = int_to_ptr.hbm [resolvable:$true] %s403_s10 }
  0x17   : > { %v258_v15 = vld [vmem:[%s239_s11 + $0x18] sm:$0xff]  ;;  %s401_s9 = sshll.u32 %s234_s8, 4  ;;  %s389_s11 = scalar_lea.sflag [#allocation3], %s232_s16  ;;  %s402_s9 = int_to_ptr.vmem [resolvable:$true] %s401_s9 }
  0x18   : > { %v252_v3 = vrot.slane %v250_v2, 7  ;;  %v260_v17 = vsub.f32 %v255_v10, %v259_v11  ;;  %v261_v18 = vsub.f32 %v256_v13, %v259_v11  ;;  %v262_v19 = vsub.f32 %v257_v14, %v259_v11  ;;  %s572_s12 = sshra.s32 %s404_s10, 4  ;;  %s573_s12 = int_to_ptr.hbm [resolvable:$true] %s572_s12 }
  0x19   : > { %v263_v20 = vsub.f32 %v258_v15, %v259_v11  ;;  %s574_s13 = scalar_lea.hbm %s573_s12, 32  ;;  %p579_p0 = scmp.lt.s32.totalorder %s573_s12, %s836_s5 }
  0x1a   : > { %v254_v4 = vsub.f32 %v249_v1, %v252_v3  ;;  %p575_p11 = scmp.ne.s32.totalorder %s573_s12, %s574_s13  ;;  %p580_p1 = scmp.lt.s32.totalorder %s578_s17, %s574_s13 }
  0x1c   : > { %v264_v5 = vadd.f32 1e-05, %v254_v4  ;;  %p576_p12 = pnand %p575_p11, %p692_p5  ;;  %p581_p2 = por %p580_p1, %p579_p0 }
  0x1e   : > { %540 = vrsqrt.f32 %v264_v5  ;;  %vm271_vm0 = vweird.f32 %v264_v5  ;;  %p577_p13 = pneg %p576_p12 }
  0x20   : > { %p582_p3 = pnand %p581_p2, %p577_p13 }
  0x24   : > { %v541_v6 = vpop.eup %540 }
  0x25   : > { %v266_v7 = vmul.f32 %v541_v6, %v264_v5  ;;  %vm272_vm1 = vweird.f32 %v541_v6 }
  0x26   : > { %vm273_vm2 = vmor %vm271_vm0, %vm272_vm1 }
  0x27   : > { %v267_v8 = vmul.f32 %v541_v6, %v266_v7 }
  0x29   : > { %v268_v9 = vmul.f32 0.5, %v267_v8 }
  0x2b   : > { %v269_v12 = vsub.f32 1.5, %v268_v9 }
  0x2d   : > { %v270_v16 = vmul.f32 %v541_v6, %v269_v12 }
  0x2f   : > { %v274_v21 = vsel %vm273_vm2, %v541_v6, %v270_v16 }
  0x30   : > { %v275_v22 = vperm.slane %v274_v21, 1 }
  0x32   : > { %v276_v24 = vmul.f32 %v275_v22, %v260_v17  ;;  %v277_v26 = vmul.f32 %v275_v22, %v261_v18  ;;  %v278_v27 = vmul.f32 %v275_v22, %v262_v19  ;;  %v279_v28 = vmul.f32 %v275_v22, %v263_v20  ;;  %v296_v18 = vld [vmem:[%s751_s25] sm:$0xff] }
  0x34   : > { %v284_v29 = vmul.f32 %v538_v23, %v276_v24  ;;  %v285_v30 = vmul.f32 %v538_v23, %v277_v26  ;;  %v286_v31 = vmul.f32 %v538_v23, %v278_v27  ;;  %v287_v32 = vmul.f32 %v538_v23, %v279_v28 }
  0x36   : > { %v720_v33 = vadd.f32 %v539_v25, %v284_v29  ;;  %v722_v34 = vadd.f32 %v539_v25, %v285_v30  ;;  %v724_v35 = vadd.f32 %v539_v25, %v286_v31  ;;  %v726_v36 = vadd.f32 %v539_v25, %v287_v32  ;;  %v297_v25 = vld [vmem:[%s751_s25 + $0x8] sm:$0xff] }
  0x38   : > { %v487_v37 = vmul.f32 -1.442695, %v720_v33  ;;  %v488_v38 = vmul.f32 -1.442695, %v722_v34  ;;  %v489_v39 = vmul.f32 -1.442695, %v724_v35 }
  0x39   : > { %v490_v40 = vmul.f32 -1.442695, %v726_v36 }
  0x3a   : > { %542 = vpow2.f32 %v487_v37 }
  0x3b   : > { %544 = vpow2.f32 %v488_v38  ;;  %v298_v38 = vld [vmem:[%s751_s25 + $0x10] sm:$0xff] }
  0x3c   : > { %546 = vpow2.f32 %v489_v39 }
  0x3d   : > { %548 = vpow2.f32 %v490_v40 }
  0x40   : > { %v543_v41 = vpop.eup %542 }
  0x41   : > { %v545_v42 = vpop.eup %544  ;;  %v312_v43 = vadd.f32 1.0, %v543_v41  ;;  %v299_v41 = vld [vmem:[%s751_s25 + $0x18] sm:$0xff] }
  0x42   : > { %v547_v44 = vpop.eup %546  ;;  %v313_v45 = vadd.f32 1.0, %v545_v42 }
  0x43   : > { %v549_v46 = vpop.eup %548  ;;  %550 = vrcp.f32 %v312_v43  ;;  %v314_v47 = vadd.f32 1.0, %v547_v44  ;;  %v325_v49 = vand.u32 2147483647, %v312_v43  ;;  %v327_v50 = vand.u32 2147483648, %v312_v43 }
  0x44   : > { %552 = vrcp.f32 %v313_v45  ;;  %v315_v48 = vadd.f32 1.0, %v549_v46  ;;  %v340_v52 = vand.u32 2147483647, %v313_v45  ;;  %v342_v53 = vand.u32 2147483648, %v313_v45 }
  0x45   : > { %554 = vrcp.f32 %v314_v47  ;;  %vm321_vm3 = vweird.f32 %v312_v43  ;;  %vm336_vm4 = vweird.f32 %v313_v45  ;;  %vm732_vm6 = vcmp.eq.f32.partialorder %v325_v49, 8.507059e+37 }
  0x46   : > { %556 = vrcp.f32 %v315_v48  ;;  %v328_v59 = vor.u32 1.1754944e-38, %v327_v50  ;;  %vm736_vm8 = vcmp.eq.f32.partialorder %v340_v52, 8.507059e+37  ;;  %v343_v63 = vor.u32 1.1754944e-38, %v342_v53 }
  0x47   : > { %vm351_vm9 = vweird.f32 %v314_v47  ;;  %v355_v3 = vand.u32 2147483647, %v314_v47  ;;  %v357_v6 = vand.u32 2147483648, %v314_v47  ;;  %vm366_vm11 = vweird.f32 %v315_v48 }
  0x48   : > { %v372_v11 = vand.u32 2147483648, %v315_v48  ;;  %v370_v14 = vand.u32 2147483647, %v315_v48 }
  0x49   : > { %v551_v51 = vpop.eup %550  ;;  %vm763_vm15 = vcmp.eq.f32.partialorder %v355_v3, 8.507059e+37  ;;  %v358_v22 = vor.u32 1.1754944e-38, %v357_v6 }
  0x4a   : > { %v553_v54 = vpop.eup %552  ;;  %v317_v55 = vmul.f32 %v551_v51, %v312_v43  ;;  %vm322_vm5 = vweird.f32 %v551_v51  ;;  %v373_v29 = vor.u32 1.1754944e-38, %v372_v11  ;;  %vm371_vm2 = vcmp.eq.f32.partialorder %v370_v14, 8.507059e+37 }
  0x4b   : > { %v332_v56 = vmul.f32 %v553_v54, %v313_v45  ;;  %v555_v60 = vpop.eup %554  ;;  %vm337_vm7 = vweird.f32 %v553_v54  ;;  %vm742_vm10 = vmor %vm321_vm3, %vm322_vm5 }
  0x4c   : > { %v318_v57 = vsub.f32 1.0, %v317_v55  ;;  %v557_v0 = vpop.eup %556  ;;  %v347_v2 = vmul.f32 %v555_v60, %v314_v47  ;;  %vm755_vm12 = vmor %vm336_vm4, %vm337_vm7  ;;  %vm352_vm13 = vweird.f32 %v555_v60 }
  0x4d   : > { %v333_v61 = vsub.f32 1.0, %v332_v56  ;;  %v362_v7 = vmul.f32 %v557_v0, %v315_v48  ;;  %vm367_vm14 = vweird.f32 %v557_v0  ;;  %vm774_vm0 = vmor %vm351_vm9, %vm352_vm13 }
  0x4e   : > { %v319_v1 = vmul.f32 %v551_v51, %v318_v57  ;;  %v348_v10 = vsub.f32 1.0, %v347_v2  ;;  %vm784_vm1 = vmor %vm366_vm11, %vm367_vm14 }
  0x4f   : > { %v334_v5 = vmul.f32 %v553_v54, %v333_v61  ;;  %v363_v13 = vsub.f32 1.0, %v362_v7 }
  0x50   : > { %v320_v8 = vadd.f32 %v551_v51, %v319_v1  ;;  %v349_v16 = vmul.f32 %v555_v60, %v348_v10 }
  0x51   : > { %v335_v12 = vadd.f32 %v553_v54, %v334_v5  ;;  %v364_v23 = vmul.f32 %v557_v0, %v363_v13 }
  0x52   : > { %v324_v15 = vsel %vm742_vm10, %v551_v51, %v320_v8  ;;  %v350_v27 = vadd.f32 %v555_v60, %v349_v16 }
  0x53   : > { %v329_v19 = vsel %vm732_vm6, %v328_v59, %v324_v15  ;;  %v339_v20 = vsel %vm755_vm12, %v553_v54, %v335_v12  ;;  %v365_v31 = vadd.f32 %v557_v0, %v364_v23 }
  0x54   : > { %v376_v24 = vmul.f32 %v329_v19, %v720_v33  ;;  %v344_v26 = vsel %vm736_vm8, %v343_v63, %v339_v20  ;;  %v354_v33 = vsel %vm774_vm0, %v555_v60, %v350_v27 }
  0x55   : > { %v377_v30 = vmul.f32 %v344_v26, %v722_v34  ;;  %v359_v39 = vsel %vm763_vm15, %v358_v22, %v354_v33  ;;  %v369_v34 = vsel %vm784_vm1, %v557_v0, %v365_v31 }
  0x56   : > { %v380_v32 = vadd.f32 %v376_v24, %v296_v18  ;;  %v378_v40 = vmul.f32 %v359_v39, %v724_v35  ;;  %v374_v42 = vsel %vm371_vm2, %v373_v29, %v369_v34 }
  0x57   : > { %v381_v37 = vadd.f32 %v377_v30, %v297_v25  ;;  %v379_v43 = vmul.f32 %v374_v42, %v726_v36 }
  0x58   : > { %384 = vst [vmem:[%s234_s8] sm:$0xff] %v380_v32  ;;  %v382_v44 = vadd.f32 %v378_v40, %v298_v38 }
  0x59   : > { %385 = vst [vmem:[%s234_s8 + $0x8] sm:$0xff] %v381_v37  ;;  %v383_v45 = vadd.f32 %v379_v43, %v299_v41 }
  0x5a   : > { %386 = vst [vmem:[%s234_s8 + $0x10] sm:$0xff] %v382_v44 }
  0x5b   : > { %387 = vst [vmem:[%s234_s8 + $0x18] sm:$0xff] %v383_v45 }
  0x5c   : > { %585 = shalt.err (!%p582_p3)
}
  0x5d   : > { %s622_s16 = smov 128   ;;  %s623_s26 = smov 8  }
  0x5e   : > { %497 = dma.vmem_to_hbm [thread:$0]  (%p692_p5), %s402_s9, 512, %s404_s10, %s389_s11, %s622_s16, %s622_s16, %s623_s26  }
  0x5f PF: > { %p503_p4 = scmp.ge.s32.totalorder %s620_s21, 2  ;;  %s418_s30 = sand.u32 1, %s608_s18  }
  0x60   : > { %s419_s22 = scalar_lea.sflag [#allocation3], %s418_s30 }
  0x61   : > { %p500_p7 = pnand %p503_p4, %p696_p6 }
  0x63   : > { %p501_p8 = pneg %p500_p7 }
  0x65   : > { %603 = dma.done.wait (%p501_p8), %s419_s22, 512  }
  0x66   : > { %605 = vsyncadd (%p501_p8), %s419_s22, 4294966784  ;;  %p15_p9 = scmp.ge.s32.totalorder %s679_s24, 5   ;;  %s853_s18 = smov %s612_s19 }
  0x67   : > { %s854_s19 = smov %s616_s20  ;;  %s855_s20 = smov %s690_s27 }
  0x68   : > { %s856_s21 = smov %s679_s24  ;;  %17 = sbr.rel (!%p15_p9) target bundleno = 3 (0x3), region = 78 }
  0x6d   :  { %425 = vsyncpa [#allocation3], 1 }
  0x6e   :  { %427 = vsyncpa [#allocation3 + $0x1], 1 }

// kernel: alignn_conv.5
= control target key start
LH: loop header
LB: loop body
LE: loop exit
PB: predicated region body
PF: predicated region fallthrough
CT: control target
= control target key end

     0   :  { %s541_s18 = smov 0   ;;  %s645_s0 = inlined_call_operand.vmem [shape: f32[64,128], index: 0, kind: input, shape index: {}]   ;;  %s646_s1 = inlined_call_operand.vmem [shape: f32[64,128], index: 1, kind: input, shape index: {}]   ;;  %s647_s2 = inlined_call_operand.vmem [shape: f32[2,128], index: 2, kind: input, shape index: {}]   ;;  %s648_s3 = inlined_call_operand.vmem [shape: f32[1,128], index: 3, kind: input, shape index: {}]   ;;  %s649_s4 = inlined_call_operand.vmem [shape: f32[1,128], index: 4, kind: input, shape index: {}]   ;;  %s650_s5 = inlined_call_operand.vmem [shape: f32[64,128], index: 5, kind: output, shape index: {}]  }
   0x1 LB: > { %s458_s19 = sadd.s32 4294967295, %s509_s18   ;;  %p462_p0 = scmp.ge.s32.totalorder %s509_s18, 1  ;;  %s509_s18 = sphi %s541_s18, %s15_s18  }
   0x2   : > { %p199_p1 = scmp.lt.s32.totalorder %s509_s18, 3 }
   0x4   : > { %p200_p2 = pnand %p462_p0, %p199_p1 }
   0x5   : > { %s463_s22 = sshll.u32 (!%p200_p2), %s458_s19, 2 }
   0x6   : > { %203 = sbr.rel (%p200_p2) target bundleno = 84 (0x54), region = 40  ;;  %p233_p3 = scmp.lt.s32.totalorder (!%p200_p2), %s463_s22, 7 }
   0xb   : > { %v250_v0 = vld [vmem:[%s647_s2] sm:$0x3]  ;;  %s666_s22 = smov (!%p233_p3, %s463_s22), 7 }
   0xc   : > { %v251_v1 = vmul.f32 0.020833334, %v250_v0  ;;  %s552_s23 = sshll.u32 %s666_s22, 3  ;;  %v483_v23 = vld [vmem:[%s648_s3] ss:$0 sm:$0xff] }
   0xd   : > { %s236_s26 = scalar_lea.vmem %s645_s0, %s552_s23  ;;  %v484_v25 = vld [vmem:[%s649_s4] ss:$0 sm:$0xff]  ;;  %s593_s8 = scalar_lea.vmem %s646_s1, %s552_s23 }
   0xe   : > { %v252_v2 = vmul.f32 %v251_v1, %v251_v1  ;;  %v257_v10 = vld [vmem:[%s236_s26] sm:$0xff]  ;;  %v261_v11 = vperm.slane %v251_v1, 0  ;;  %v258_v12 = vld [vmem:[%s236_s26 + $0x8] sm:$0xff]  ;;  %v259_v13 = vld [vmem:[%s236_s26 + $0x10] sm:$0xff]  ;;  %s248_s11 = scalar_lea.vmem %s650_s5, %s552_s23 }
   0xf   : > { %v260_v14 = vld [vmem:[%s236_s26 + $0x18] sm:$0xff] }
  0x10   : > { %v254_v3 = vrot.slane %v252_v2, 7  ;;  %v262_v17 = vsub.f32 %v257_v10, %v261_v11  ;;  %v263_v18 = vsub.f32 %v258_v12, %v261_v11  ;;  %v264_v19 = vsub.f32 %v259_v13, %v261_v11 }
  0x11   : > { %v265_v20 = vsub.f32 %v260_v14, %v261_v11 }
  0x12   : > { %v256_v4 = vsub.f32 %v251_v1, %v254_v3 }
  0x14   : > { %v266_v5 = vadd.f32 1e-05, %v256_v4 }
  0x16   : > { %485 = vrsqrt.f32 %v266_v5  ;;  %vm273_vm0 = vweird.f32 %v266_v5 }
  0x1c   : > { %v486_v6 = vpop.eup %485 }
  0x1d   : > { %v268_v7 = vmul.f32 %v486_v6, %v266_v5  ;;  %vm274_vm1 = vweird.f32 %v486_v6 }
  0x1e   : > { %vm275_vm2 = vmor %vm273_vm0, %vm274_vm1 }
  0x1f   : > { %v269_v8 = vmul.f32 %v486_v6, %v268_v7 }
  0x21   : > { %v270_v9 = vmul.f32 0.5, %v269_v8 }
  0x23   : > { %v271_v15 = vsub.f32 1.5, %v270_v9 }
  0x25   : > { %v272_v16 = vmul.f32 %v486_v6, %v271_v15 }
  0x27   : > { %v276_v21 = vsel %vm275_vm2, %v486_v6, %v272_v16 }
  0x28   : > { %v277_v22 = vperm.slane %v276_v21, 1 }
  0x2a   : > { %v278_v24 = vmul.f32 %v277_v22, %v262_v17  ;;  %v279_v26 = vmul.f32 %v277_v22, %v263_v18  ;;  %v280_v27 = vmul.f32 %v277_v22, %v264_v19  ;;  %v281_v28 = vmul.f32 %v277_v22, %v265_v20  ;;  %v298_v18 = vld [vmem:[%s593_s8] sm:$0xff] }
  0x2c   : > { %v286_v29 = vmul.f32 %v483_v23, %v278_v24  ;;  %v287_v30 = vmul.f32 %v483_v23, %v279_v26  ;;  %v288_v31 = vmul.f32 %v483_v23, %v280_v27  ;;  %v289_v32 = vmul.f32 %v483_v23, %v281_v28 }
  0x2e   : > { %v564_v33 = vadd.f32 %v484_v25, %v286_v29  ;;  %v566_v34 = vadd.f32 %v484_v25, %v287_v30  ;;  %v568_v35 = vadd.f32 %v484_v25, %v288_v31  ;;  %v570_v36 = vadd.f32 %v484_v25, %v289_v32  ;;  %v299_v25 = vld [vmem:[%s593_s8 + $0x8] sm:$0xff] }
  0x30   : > { %v469_v37 = vmul.f32 -1.442695, %v564_v33  ;;  %v470_v38 = vmul.f32 -1.442695, %v566_v34  ;;  %v471_v39 = vmul.f32 -1.442695, %v568_v35 }
  0x31   : > { %v472_v40 = vmul.f32 -1.442695, %v570_v36 }
  0x32   : > { %487 = vpow2.f32 %v469_v37 }
  0x33   : > { %489 = vpow2.f32 %v470_v38  ;;  %v300_v38 = vld [vmem:[%s593_s8 + $0x10] sm:$0xff] }
  0x34   : > { %491 = vpow2.f32 %v471_v39 }
  0x35   : > { %493 = vpow2.f32 %v472_v40 }
  0x38   : > { %v488_v41 = vpop.eup %487 }
  0x39   : > { %v490_v42 = vpop.eup %489  ;;  %v314_v43 = vadd.f32 1.0, %v488_v41 }
  0x3a   : > { %v492_v44 = vpop.eup %491  ;;  %v315_v45 = vadd.f32 1.0, %v490_v42  ;;  %v301_v42 = vld [vmem:[%s593_s8 + $0x18] sm:$0xff] }
  0x3b   : > { %v494_v46 = vpop.eup %493  ;;  %495 = vrcp.f32 %v314_v43  ;;  %v316_v47 = vadd.f32 1.0, %v492_v44  ;;  %v327_v49 = vand.u32 2147483647, %v314_v43  ;;  %v329_v50 = vand.u32 2147483648, %v314_v43 }
  0x3c   : > { %497 = vrcp.f32 %v315_v45  ;;  %v317_v48 = vadd.f32 1.0, %v494_v46  ;;  %v342_v52 = vand.u32 2147483647, %v315_v45  ;;  %v344_v53 = vand.u32 2147483648, %v315_v45 }
  0x3d   : > { %499 = vrcp.f32 %v316_v47  ;;  %vm323_vm3 = vweird.f32 %v314_v43  ;;  %vm338_vm4 = vweird.f32 %v315_v45  ;;  %vm576_vm6 = vcmp.eq.f32.partialorder %v327_v49, 8.507059e+37 }
  0x3e   : > { %501 = vrcp.f32 %v317_v48  ;;  %v330_v59 = vor.u32 1.1754944e-38, %v329_v50  ;;  %vm580_vm8 = vcmp.eq.f32.partialorder %v342_v52, 8.507059e+37  ;;  %v345_v63 = vor.u32 1.1754944e-38, %v344_v53 }
  0x3f   : > { %vm353_vm9 = vweird.f32 %v316_v47  ;;  %v357_v3 = vand.u32 2147483647, %v316_v47  ;;  %v359_v6 = vand.u32 2147483648, %v316_v47  ;;  %vm368_vm11 = vweird.f32 %v317_v48 }
  0x40   : > { %v374_v11 = vand.u32 2147483648, %v317_v48  ;;  %v372_v14 = vand.u32 2147483647, %v317_v48 }
  0x41   : > { %v496_v51 = vpop.eup %495  ;;  %vm603_vm15 = vcmp.eq.f32.partialorder %v357_v3, 8.507059e+37  ;;  %v360_v22 = vor.u32 1.1754944e-38, %v359_v6 }
  0x42   : > { %v498_v54 = vpop.eup %497  ;;  %v319_v55 = vmul.f32 %v496_v51, %v314_v43  ;;  %vm324_vm5 = vweird.f32 %v496_v51  ;;  %v375_v29 = vor.u32 1.1754944e-38, %v374_v11  ;;  %vm373_vm2 = vcmp.eq.f32.partialorder %v372_v14, 8.507059e+37 }
  0x43   : > { %v334_v56 = vmul.f32 %v498_v54, %v315_v45  ;;  %v500_v60 = vpop.eup %499  ;;  %vm339_vm7 = vweird.f32 %v498_v54  ;;  %vm585_vm10 = vmor %vm323_vm3, %vm324_vm5 }
  0x44   : > { %v320_v57 = vsub.f32 1.0, %v319_v55  ;;  %v502_v0 = vpop.eup %501  ;;  %v349_v2 = vmul.f32 %v500_v60, %v316_v47  ;;  %vm597_vm12 = vmor %vm338_vm4, %vm339_vm7  ;;  %vm354_vm13 = vweird.f32 %v500_v60 }
  0x45   : > { %v335_v61 = vsub.f32 1.0, %v334_v56  ;;  %v364_v7 = vmul.f32 %v502_v0, %v317_v48  ;;  %vm369_vm14 = vweird.f32 %v502_v0  ;;  %vm613_vm0 = vmor %vm353_vm9, %vm354_vm13 }
  0x46   : > { %v321_v1 = vmul.f32 %v496_v51, %v320_v57  ;;  %v350_v10 = vsub.f32 1.0, %v349_v2  ;;  %vm623_vm1 = vmor %vm368_vm11, %vm369_vm14 }
  0x47   : > { %v336_v5 = vmul.f32 %v498_v54, %v335_v61  ;;  %v365_v13 = vsub.f32 1.0, %v364_v7 }
  0x48   : > { %v322_v8 = vadd.f32 %v496_v51, %v321_v1  ;;  %v351_v16 = vmul.f32 %v500_v60, %v350_v10 }
  0x49   : > { %v337_v12 = vadd.f32 %v498_v54, %v336_v5  ;;  %v366_v23 = vmul.f32 %v502_v0, %v365_v13 }
  0x4a   : > { %v326_v15 = vsel %vm585_vm10, %v496_v51, %v322_v8  ;;  %v352_v27 = vadd.f32 %v500_v60, %v351_v16 }
  0x4b   : > { %v331_v19 = vsel %vm576_vm6, %v330_v59, %v326_v15  ;;  %v341_v20 = vsel %vm597_vm12, %v498_v54, %v337_v12  ;;  %v367_v31 = vadd.f32 %v502_v0, %v366_v23 }
  0x4c   : > { %v378_v24 = vmul.f32 %v331_v19, %v564_v33  ;;  %v346_v26 = vsel %vm580_vm8, %v345_v63, %v341_v20  ;;  %v356_v33 = vsel %vm613_vm0, %v500_v60, %v352_v27 }
  0x4d   : > { %v379_v30 = vmul.f32 %v346_v26, %v566_v34  ;;  %v361_v39 = vsel %vm603_vm15, %v360_v22, %v356_v33  ;;  %v371_v40 = vsel %vm623_vm1, %v502_v0, %v367_v31 }
  0x4e   : > { %v382_v32 = vadd.f32 %v378_v24, %v298_v18  ;;  %v380_v41 = vmul.f32 %v361_v39, %v568_v35  ;;  %v376_v43 = vsel %vm373_vm2, %v375_v29, %v371_v40 }
  0x4f   : > { %v383_v37 = vadd.f32 %v379_v30, %v299_v25  ;;  %v381_v34 = vmul.f32 %v376_v43, %v570_v36 }
  0x50   : > { %386 = vst [vmem:[%s248_s11] sm:$0xff] %v382_v32  ;;  %v384_v44 = vadd.f32 %v380_v41, %v300_v38 }
  0x51   : > { %387 = vst [vmem:[%s248_s11 + $0x8] sm:$0xff] %v383_v37  ;;  %v385_v45 = vadd.f32 %v381_v34, %v301_v42 }
  0x52   : > { %388 = vst [vmem:[%s248_s11 + $0x10] sm:$0xff] %v384_v44 }
  0x53   : > { %389 = vst [vmem:[%s248_s11 + $0x18] sm:$0xff] %v385_v45 }
  0x54 PF: > { %s15_s18 = sadd.s32 1, %s509_s18  }
  0x55   : > { %p12_p4 = scmp.ge.s32.totalorder %s15_s18, 4  }
  0x57   :  { %14 = sbr.rel (!%p12_p4) target bundleno = 1 (0x1), region = 73 }

// kernel: alignn_conv.4
= control target key start
LH: loop header
LB: loop body
LE: loop exit
PB: predicated region body
PF: predicated region fallthrough
CT: control target
= control target key end

     0   :  { %18 = vsyncpa [#allocation8], 0  ;;  %s1871_s0 = inlined_call_operand.vmem [shape: f32[16,128], index: 0, kind: input, shape index: {}]   ;;  %s1872_s1 = inlined_call_operand.vmem [shape: f32[64,128], index: 1, kind: input, shape index: {}]   ;;  %s1873_s2 = inlined_call_operand.vmem [shape: s32[64,1], index: 2, kind: input, shape index: {}]   ;;  %s1874_s3 = inlined_call_operand.vmem [shape: s32[64,1], index: 3, kind: input, shape index: {}]   ;;  %s1875_s4 = inlined_call_operand.hbm [shape: f32[128,512], index: 4, kind: input, shape index: {}]   ;;  %s1876_s5 = inlined_call_operand.vmem [shape: f32[1,512], index: 5, kind: input, shape index: {}]   ;;  %s1877_s6 = inlined_call_operand.vmem [shape: f32[128,128], index: 6, kind: input, shape index: {}]   ;;  %s1878_s7 = inlined_call_operand.vmem [shape: f32[1,128], index: 7, kind: input, shape index: {}]   ;;  %s1879_s8 = inlined_call_operand.vmem [shape: f32[1,128], index: 8, kind: input, shape index: {}]   ;;  %s1880_s9 = inlined_call_operand.vmem [shape: f32[1,128], index: 9, kind: input, shape index: {}]   ;;  %s1881_s10 = inlined_call_operand.hbm [shape: f32[16,128], index: 10, kind: output, shape index: {0}]   ;;  %s1882_s11 = inlined_call_operand.vmem [shape: f32[64,128], index: 11, kind: output, shape index: {1}]   ;;  %s1883_s12 = inlined_call_operand.vmem [shape: f32[2,128], index: 12, kind: output, shape index: {2}]  }
   0x1   :  { %19 = vsyncpa [#allocation9], 0  ;;  %s1622_s21 = smov 0  }
   0x2 LB: > { %s337_s24 = sshll.u32 %s1875_s4, 4  ;;  %s1631_s25 = sadd.s32 4294967295, %s1544_s21   ;;  %s1544_s21 = sphi %s1622_s21, %s25_s21   ;;  %s338_s24 = int_to_ptr.hbm [resolvable:$true] %s337_s24 }
   0x3   : > { %p1335_p0 = scmp.ge.s32.totalorder %s1544_s21, 1  ;;  %p323_p1 = scmp.lt.s32.totalorder %s1544_s21, 3 }
   0x4   : > { %p1336_p2 = scmp.ne.s32.totalorder %s1631_s25, 0  ;;  %p1410_p3 = scmp.eq.s32.totalorder %s1631_s25, 0 }
   0x5   : > { %p324_p4 = pnand %p1335_p0, %p323_p1  ;;  %s1546_s26 = smov [#allocation7]  }
   0x6   : > { %s339_s27 = sshll.u32 %s1546_s26, 4  ;;  %s1547_s28 = smov 512   ;;  %s340_s27 = int_to_ptr.vmem [resolvable:$true] %s339_s27 }
   0x7   : > { %p1406_p5 = pneg %p324_p4  ;;  %s1548_s29 = smov 32  }
   0x8   : > { %397 = sbr.rel (%p324_p4) target bundleno = 788 (0x314), region = 60 }
   0x9   : > { %p1407_p6 = pnand %p1410_p3, %p1406_p5 }
   0xb   : > { %1409 = dma.hbm_to_vmem [thread:$0]  (!%p1407_p6), %s338_s24, 8192, %s340_s27, [#allocation8], %s1547_s28, %s1547_s28, %s1548_s29  }
   0xd   : > { %1535 = dma.done.wait (%p1410_p3), [#allocation8], 8192  }
   0xe   : > { %1537 = vsyncadd (%p1410_p3), [#allocation8], 4294959104  ;;  %s1340_s30 = sshll.u32 %s1631_s25, 2 }
   0xf   : > { %p451_p7 = scmp.lt.s32.totalorder %s1340_s30, 7 }
  0x10   : > { %478 = sbr.rel (%p1336_p2) target bundleno = 198 (0xc6), region = 68 }
  0x11   : > { %s1891_s30 = smov (!%p451_p7, %s1340_s30), 7 }
  0x12   : > { %s1341_s13 = sshll.u32 %s1891_s30, 3 }
  0x13   : > { %s1641_s16 = scalar_lea.vmem %s1872_s1, %s1341_s13  ;;  %s1646_s19 = scalar_lea.vmem %s1873_s2, %s1341_s13 }
  0x14   : > { %s1651_s23 = scalar_lea.vmem %s1874_s3, %s1341_s13  ;;  %s1656_s27 = scalar_lea.vmem %s1882_s11, %s1341_s13 }
  0x15   : > { %v543_v0 = vld [vmem:[#allocation7 + $0x1f0] sm:$0xff]  ;;  %v544_v2 = vld [vmem:[#allocation7 + $0x1f8] sm:$0xff]  ;;  %v541_v4 = vld [vmem:[#allocation7 + $0x1e0] sm:$0xff] }
  0x16   : > { %v539_v1 = vld [vmem:[#allocation7 + $0x1d0] sm:$0xff]  ;;  %601 = vmatpush.msra.mxu2 %v543_v0  ;;  %624 = vmatpush.msra.mxu3 %v544_v2  ;;  %v540_v3 = vld [vmem:[#allocation7 + $0x1d8] sm:$0xff]  ;;  %v542_v6 = vld [vmem:[#allocation7 + $0x1e8] sm:$0xff]  ;;  %v1549_v2 = vmov 0  }
  0x17   : > { %v535_v5 = vld [vmem:[#allocation7 + $0x1b0] sm:$0xff]  ;;  %555 = vmatpush.msra.mxu0 %v541_v4  ;;  %v536_v7 = vld [vmem:[#allocation7 + $0x1b8] sm:$0xff]  ;;  %v537_v8 = vld [vmem:[#allocation7 + $0x1c0] sm:$0xff]  ;;  %578 = vmatpush.msra.mxu1 %v542_v6  ;;  %649 = vst [vmem:[#allocation2 + $0x10] sm:$0xff] %v1549_v2 }
  0x18   : > { %602 = vmatpush.msra.mxu2 %v539_v1  ;;  %625 = vmatpush.msra.mxu3 %v540_v3  ;;  %v538_v9 = vld [vmem:[#allocation7 + $0x1c8] sm:$0xff]  ;;  %v531_v10 = vld [vmem:[#allocation7 + $0x190] sm:$0xff]  ;;  %v532_v11 = vld [vmem:[#allocation7 + $0x198] sm:$0xff]  ;;  %650 = vst [vmem:[#allocation2 + $0x18] sm:$0xff] %v1549_v2  ;;  %v1550_v3 = vmov 0.0  }
  0x19   : > { %556 = vmatpush.msra.mxu0 %v537_v8  ;;  %v533_v12 = vld [vmem:[#allocation7 + $0x1a0] sm:$0xff]  ;;  %v534_v13 = vld [vmem:[#allocation7 + $0x1a8] sm:$0xff]  ;;  %579 = vmatpush.msra.mxu1 %v538_v9  ;;  %v527_v15 = vld [vmem:[#allocation7 + $0x170] sm:$0xff]  ;;  %665 = vst [vmem:[#allocation4 + $0x8] sm:$0xff] %v1550_v3 }
  0x1a   : > { %603 = vmatpush.msra.mxu2 %v535_v5  ;;  %626 = vmatpush.msra.mxu3 %v536_v7  ;;  %v529_v14 = vld [vmem:[#allocation7 + $0x180] sm:$0xff]  ;;  %v528_v16 = vld [vmem:[#allocation7 + $0x178] sm:$0xff]  ;;  %v530_v17 = vld [vmem:[#allocation7 + $0x188] sm:$0xff]  ;;  %666 = vst [vmem:[#allocation4 + $0x10] sm:$0xff] %v1550_v3 }
  0x1b   : > { %557 = vmatpush.msra.mxu0 %v533_v12  ;;  %v525_v18 = vld [vmem:[#allocation7 + $0x160] sm:$0xff]  ;;  %580 = vmatpush.msra.mxu1 %v534_v13  ;;  %v523_v19 = vld [vmem:[#allocation7 + $0x150] sm:$0xff]  ;;  %v524_v20 = vld [vmem:[#allocation7 + $0x158] sm:$0xff]  ;;  %667 = vst [vmem:[#allocation4] sm:$0xff] %v1550_v3 }
  0x1c   : > { %604 = vmatpush.msra.mxu2 %v531_v10  ;;  %627 = vmatpush.msra.mxu3 %v532_v11  ;;  %v526_v21 = vld [vmem:[#allocation7 + $0x168] sm:$0xff]  ;;  %v521_v22 = vld [vmem:[#allocation7 + $0x140] sm:$0xff]  ;;  %v519_v23 = vld [vmem:[#allocation7 + $0x130] sm:$0xff]  ;;  %668 = vst [vmem:[#allocation4 + $0x18] sm:$0xff] %v1550_v3 }
  0x1d   : > { %558 = vmatpush.msra.mxu0 %v529_v14  ;;  %581 = vmatpush.msra.mxu1 %v530_v17  ;;  %v520_v24 = vld [vmem:[#allocation7 + $0x138] sm:$0xff]  ;;  %v522_v25 = vld [vmem:[#allocation7 + $0x148] sm:$0xff]  ;;  %v517_v26 = vld [vmem:[#allocation7 + $0x120] sm:$0xff]  ;;  %669 = vst [vmem:[#allocation5] sm:$0x1] %v1550_v3 }
  0x1e   : > { %605 = vmatpush.msra.mxu2 %v527_v15  ;;  %628 = vmatpush.msra.mxu3 %v528_v16  ;;  %v515_v27 = vld [vmem:[#allocation7 + $0x110] sm:$0xff]  ;;  %v516_v28 = vld [vmem:[#allocation7 + $0x118] sm:$0xff]  ;;  %v518_v29 = vld [vmem:[#allocation7 + $0x128] sm:$0xff]  ;;  %670 = vst [vmem:[#allocation6] sm:$0x1] %v1550_v3 }
  0x1f   : > { %559 = vmatpush.msra.mxu0 %v525_v18  ;;  %582 = vmatpush.msra.mxu1 %v526_v21  ;;  %v513_v30 = vld [vmem:[#allocation7 + $0x100] sm:$0xff]  ;;  %v511_v31 = vld [vmem:[#allocation7 + $0xf0] sm:$0xff]  ;;  %v512_v32 = vld [vmem:[#allocation7 + $0xf8] sm:$0xff] }
  0x20   : > { %606 = vmatpush.msra.mxu2 %v523_v19  ;;  %629 = vmatpush.msra.mxu3 %v524_v20  ;;  %v514_v33 = vld [vmem:[#allocation7 + $0x108] sm:$0xff]  ;;  %v509_v34 = vld [vmem:[#allocation7 + $0xe0] sm:$0xff]  ;;  %v507_v35 = vld [vmem:[#allocation7 + $0xd0] sm:$0xff] }
  0x21   : > { %560 = vmatpush.msra.mxu0 %v521_v22  ;;  %583 = vmatpush.msra.mxu1 %v522_v25  ;;  %v508_v36 = vld [vmem:[#allocation7 + $0xd8] sm:$0xff]  ;;  %v510_v37 = vld [vmem:[#allocation7 + $0xe8] sm:$0xff]  ;;  %v505_v38 = vld [vmem:[#allocation7 + $0xc0] sm:$0xff] }
  0x22   : > { %607 = vmatpush.msra.mxu2 %v519_v23  ;;  %630 = vmatpush.msra.mxu3 %v520_v24  ;;  %v503_v39 = vld [vmem:[#allocation7 + $0xb0] sm:$0xff]  ;;  %v504_v40 = vld [vmem:[#allocation7 + $0xb8] sm:$0xff]  ;;  %v506_v41 = vld [vmem:[#allocation7 + $0xc8] sm:$0xff] }
  0x23   : > { %561 = vmatpush.msra.mxu0 %v517_v26  ;;  %584 = vmatpush.msra.mxu1 %v518_v29  ;;  %v501_v42 = vld [vmem:[#allocation7 + $0xa0] sm:$0xff]  ;;  %v499_v43 = vld [vmem:[#allocation7 + $0x90] sm:$0xff]  ;;  %v500_v44 = vld [vmem:[#allocation7 + $0x98] sm:$0xff] }
  0x24   : > { %608 = vmatpush.msra.mxu2 %v515_v27  ;;  %631 = vmatpush.msra.mxu3 %v516_v28  ;;  %v502_v45 = vld [vmem:[#allocation7 + $0xa8] sm:$0xff]  ;;  %v497_v46 = vld [vmem:[#allocation7 + $0x80] sm:$0xff]  ;;  %v495_v47 = vld [vmem:[#allocation7 + $0x70] sm:$0xff] }
  0x25   : > { %562 = vmatpush.msra.mxu0 %v513_v30  ;;  %585 = vmatpush.msra.mxu1 %v514_v33  ;;  %v496_v48 = vld [vmem:[#allocation7 + $0x78] sm:$0xff]  ;;  %v498_v49 = vld [vmem:[#allocation7 + $0x88] sm:$0xff]  ;;  %v493_v50 = vld [vmem:[#allocation7 + $0x60] sm:$0xff] }
  0x26   : > { %609 = vmatpush.msra.mxu2 %v511_v31  ;;  %632 = vmatpush.msra.mxu3 %v512_v32  ;;  %v491_v51 = vld [vmem:[#allocation7 + $0x50] sm:$0xff]  ;;  %v492_v52 = vld [vmem:[#allocation7 + $0x58] sm:$0xff]  ;;  %v494_v53 = vld [vmem:[#allocation7 + $0x68] sm:$0xff] }
  0x27   : > { %563 = vmatpush.msra.mxu0 %v509_v34  ;;  %586 = vmatpush.msra.mxu1 %v510_v37  ;;  %v489_v54 = vld [vmem:[#allocation7 + $0x40] sm:$0xff]  ;;  %v487_v55 = vld [vmem:[#allocation7 + $0x30] sm:$0xff]  ;;  %v488_v56 = vld [vmem:[#allocation7 + $0x38] sm:$0xff] }
  0x28   : > { %610 = vmatpush.msra.mxu2 %v507_v35  ;;  %633 = vmatpush.msra.mxu3 %v508_v36  ;;  %v490_v57 = vld [vmem:[#allocation7 + $0x48] sm:$0xff]  ;;  %v485_v58 = vld [vmem:[#allocation7 + $0x20] sm:$0xff]  ;;  %v483_v59 = vld [vmem:[#allocation7 + $0x10] sm:$0xff] }
  0x29   : > { %564 = vmatpush.msra.mxu0 %v505_v38  ;;  %587 = vmatpush.msra.mxu1 %v506_v41  ;;  %v484_v60 = vld [vmem:[#allocation7 + $0x18] sm:$0xff]  ;;  %v479_v61 = vld [vmem:[%s1871_s0] sm:$0xff]  ;;  %v481_v63 = vld [vmem:[#allocation7] sm:$0xff] }
  0x2a   : > { %611 = vmatpush.msra.mxu2 %v503_v39  ;;  %634 = vmatpush.msra.mxu3 %v504_v40  ;;  %v486_v62 = vld [vmem:[#allocation7 + $0x28] sm:$0xff]  ;;  %v480_v1 = vld [vmem:[%s1871_s0 + $0x8] sm:$0xff] }
  0x2b   : > { %565 = vmatpush.msra.mxu0 %v501_v42  ;;  %588 = vmatpush.msra.mxu1 %v502_v45  ;;  %v482_v0 = vld [vmem:[#allocation7 + $0x8] sm:$0xff] }
  0x2c   : > { %612 = vmatpush.msra.mxu2 %v499_v43  ;;  %635 = vmatpush.msra.mxu3 %v500_v44  ;;  %v545_v4 = vld [vmem:[%s1876_s5] sm:$0xf] }
  0x2d   : > { %566 = vmatpush.msra.mxu0 %v497_v46  ;;  %589 = vmatpush.msra.mxu1 %v498_v49  ;;  %v547_v5 = vperm.slane %v545_v4, 0  ;;  %v548_v6 = vperm.slane %v545_v4, 1  ;;  %v549_v8 = vperm.slane %v545_v4, 2  ;;  %v550_v9 = vperm.slane %v545_v4, 3 }
  0x2e   : > { %613 = vmatpush.msra.mxu2 %v495_v47  ;;  %636 = vmatpush.msra.mxu3 %v496_v48 }
  0x2f   : > { %567 = vmatpush.msra.mxu0 %v493_v50  ;;  %590 = vmatpush.msra.mxu1 %v494_v53 }
  0x30   : > { %614 = vmatpush.msra.mxu2 %v491_v51  ;;  %637 = vmatpush.msra.mxu3 %v492_v52 }
  0x31   : > { %568 = vmatpush.msra.mxu0 %v489_v54  ;;  %591 = vmatpush.msra.mxu1 %v490_v57 }
  0x32   : > { %615 = vmatpush.msra.mxu2 %v487_v55  ;;  %638 = vmatpush.msra.mxu3 %v488_v56 }
  0x33   : > { %569 = vmatpush.msra.mxu0 %v485_v58  ;;  %592 = vmatpush.msra.mxu1 %v486_v62 }
  0x34   : > { %616 = vmatpush.msra.mxu2 %v483_v59  ;;  %639 = vmatpush.msra.mxu3 %v484_v60 }
  0x35   : > { %617 = vmatmul.f32.vlgmr.msra.gmra.mxu2 %v479_v61  ;;  %640 = vmatmul.f32.vlgmr.msra.gmra.mxu3 %v479_v61 }
  0x36   : > { %570 = vmatpush.msra.mxu0 %v481_v63  ;;  %593 = vmatpush.msra.mxu1 %v482_v0 }
  0x37   : > { %571 = vmatmul.f32.vlgmr.msra.gmra.mxu0 %v479_v61  ;;  %594 = vmatmul.f32.vlgmr.msra.gmra.mxu1 %v479_v61 }
  0x3d   : > { %620 = vmatmul.f32.gmra.mxu2 %v480_v1  ;;  %643 = vmatmul.f32.gmra.mxu3 %v480_v1 }
  0x3f   : > { %574 = vmatmul.f32.gmra.mxu0 %v480_v1  ;;  %597 = vmatmul.f32.gmra.mxu1 %v480_v1 }
  0xb4   : > { %v572_v7 = vpop.f32.mrf.mxu0  ;;  %v595_v10 = vpop.f32.mrf.mxu1 }
  0xb5   : > { %v573_v11 = vadd.f32 %v572_v7, %v547_v5  ;;  %v596_v12 = vadd.f32 %v595_v10, %v548_v6 }
  0xb7   : > { %v659_v15 = vpack.c.bf16 %v596_v12, %v596_v12 }
  0xb8   : > { %v618_v13 = vpop.f32.mrf.mxu2  ;;  %v641_v14 = vpop.f32.mrf.mxu3 }
  0xb9   : > { %v619_v16 = vadd.f32 %v618_v13, %v549_v8  ;;  %v642_v17 = vadd.f32 %v641_v14, %v550_v9  ;;  %661 = vst [vmem:[#allocation2 + $0x10] sm:$0xf] %v659_v15 }
  0xbb   : > { %v1390_v18 = vpack.c.bf16 %v619_v16, %v573_v11  ;;  %663 = vst [vmem:[#allocation3] sm:$0xff] %v642_v17 }
  0xbc   : > { %v575_v19 = vpop.f32.mrf.mxu0  ;;  %v598_v20 = vpop.f32.mrf.mxu1 }
  0xbd   : > { %1391 = vst [vmem:[#allocation2] sm:$0xff] %v1390_v18   ;;  %v576_v21 = vadd.f32 %v575_v19, %v547_v5  ;;  %v599_v22 = vadd.f32 %v598_v20, %v548_v6 }
  0xbf   : > { %v660_v25 = vpack.c.bf16 %v599_v22, %v599_v22 }
  0xc0   : > { %v621_v23 = vpop.f32.mrf.mxu2  ;;  %v644_v24 = vpop.f32.mrf.mxu3 }
  0xc1   : > { %v622_v26 = vadd.f32 %v621_v23, %v549_v8  ;;  %v645_v27 = vadd.f32 %v644_v24, %v550_v9  ;;  %662 = vst [vmem:[#allocation2 + $0x18] sm:$0xf] %v660_v25 }
  0xc3   : > { %v1395_v28 = vpack.c.bf16 %v622_v26, %v576_v21  ;;  %664 = vst [vmem:[#allocation3 + $0x8] sm:$0xff] %v645_v27 }
  0xc5   : > { %1397 = vst [vmem:[#allocation2 + $0x8] sm:$0xff] %v1395_v28  }
  0xc6 PF: > { %v724_v29 = vld [vmem:[%s1646_s19] sm:$0xff]  ;;  %v1551_v31 = vmov 0   ;;  %v726_v33 = vld [vmem:[%s1646_s19 + $0x10] sm:$0xff]  ;;  %v690_v34 = vld [vmem:[%s1877_s6 + $0x78] sm:$0xff]  ;;  %v732_v9 = vlaneseq  ;;  %v1552_v18 = vmov 0.0   ;;  %vm804_vm6 = vcmask 261120  }
  0xc7   : > { %v728_v30 = vld [vmem:[%s1651_s23] sm:$0xff]  ;;  %1433 = vset.pattern.permute.xlu0 %v1551_v31  ;;  %1434 = vset.pattern.permute.xlu1 %v1551_v31  ;;  %v689_v35 = vld [vmem:[%s1877_s6 + $0x70] sm:$0xff]  ;;  %v729_v36 = vld [vmem:[%s1651_s23 + $0x8] sm:$0xff]  ;;  %s1373_s26 = sshll.u32 %s1631_s25, 5  ;;  %p1376_p8 = scmp.ne.s32.totalorder %s1631_s25, 1 }
  0xc8   : > { %v750_v32 = vadd.s32 16, %v728_v30  ;;  %735 = vperm.xlu0 %1433, %v724_v29   ;;  %1435 = vset.pattern.permute.xlu2 %v1551_v31  ;;  %v688_v37 = vld [vmem:[%s1877_s6 + $0x68] sm:$0xff]  ;;  %v751_v39 = vadd.s32 16, %v729_v36  ;;  %v687_v40 = vld [vmem:[%s1877_s6 + $0x60] sm:$0xff]  ;;  %v727_v41 = vld [vmem:[%s1646_s19 + $0x18] sm:$0xff]  ;;  %v733_v12 = vand.u32 127, %v732_v9 }
  0xc9   : > { %741 = vperm.xlu2 %1435, %v726_v33   ;;  %695 = vmatpush.msra.mxu0 %v690_v34  ;;  %v725_v38 = vld [vmem:[%s1646_s19 + $0x8] sm:$0xff]  ;;  %v730_v42 = vld [vmem:[%s1651_s23 + $0x10] sm:$0xff]  ;;  %v731_v43 = vld [vmem:[%s1651_s23 + $0x18] sm:$0xff] }
  0xca   : > { %755 = vperm.xlu1 %1434, %v750_v32   ;;  %v752_v44 = vadd.s32 16, %v730_v42  ;;  %v753_v45 = vadd.s32 16, %v731_v43  ;;  %v686_v46 = vld [vmem:[%s1877_s6 + $0x58] sm:$0xff]  ;;  %v685_v47 = vld [vmem:[%s1877_s6 + $0x50] sm:$0xff]  ;;  %v684_v48 = vld [vmem:[%s1877_s6 + $0x48] sm:$0xff] }
  0xcb   : > { %696 = vmatpush.msra.mxu0 %v689_v35  ;;  %v683_v49 = vld [vmem:[%s1877_s6 + $0x40] sm:$0xff]  ;;  %v682_v50 = vld [vmem:[%s1877_s6 + $0x38] sm:$0xff]  ;;  %v681_v51 = vld [vmem:[%s1877_s6 + $0x30] sm:$0xff] }
  0xcc   : > { %v680_v52 = vld [vmem:[%s1877_s6 + $0x28] sm:$0xff]  ;;  %v679_v53 = vld [vmem:[%s1877_s6 + $0x20] sm:$0xff]  ;;  %v678_v54 = vld [vmem:[%s1877_s6 + $0x18] sm:$0xff] }
  0xcd   : > { %697 = vmatpush.msra.mxu0 %v688_v37  ;;  %v1359_v55 = vld [vmem:[#allocation2 + $0x10] sm:$0xf]  ;;  %v1386_v56 = vld [vmem:[#allocation2 + $0x14] sm:$0xf0]  ;;  %v1385_v58 = vld [vmem:[#allocation2 + $0x14] sm:$0xf] }
  0xce   : > { %v1360_v57 = vor.u32 %v1386_v56, %v1359_v55  ;;  %v1361_v59 = vld [vmem:[#allocation2 + $0x18] sm:$0xf0]  ;;  %v677_v61 = vld [vmem:[%s1877_s6 + $0x10] sm:$0xff]  ;;  %v676_v62 = vld [vmem:[%s1877_s6 + $0x8] sm:$0xff] }
  0xcf   : > { %698 = vmatpush.msra.mxu0 %v687_v40  ;;  %v1364_v60 = vor.u32 %v1385_v58, %v1361_v59  ;;  %v1351_v63 = vld [vmem:[#allocation2] sm:$0xf]  ;;  %v1384_v0 = vld [vmem:[#allocation2 + $0x4] sm:$0xf0]  ;;  %v1383_v2 = vld [vmem:[#allocation2 + $0x4] sm:$0xf] }
  0xd0   : > { %738 = vperm.xlu0 %1433, %v725_v38   ;;  %817 = vmatpush.bf16.msra.mxu1 %v1360_v57  ;;  %v1352_v1 = vor.u32 %v1384_v0, %v1351_v63  ;;  %v1353_v3 = vld [vmem:[#allocation2 + $0x8] sm:$0xf0]  ;;  %v675_v4 = vld [vmem:[%s1877_s6] sm:$0xff]  ;;  %v673_v8 = vld [vmem:[%s1641_s16 + $0x10] sm:$0xff] }
  0xd1   : > { %744 = vperm.xlu2 %1435, %v727_v41   ;;  %699 = vmatpush.msra.mxu0 %v686_v46  ;;  %v1356_v5 = vor.u32 %v1383_v2, %v1353_v3  ;;  %v671_v6 = vld [vmem:[%s1641_s16] sm:$0xff]  ;;  %v672_v7 = vld [vmem:[%s1641_s16 + $0x8] sm:$0xff]  ;;  %v674_v14 = vld [vmem:[%s1641_s16 + $0x18] sm:$0xff] }
  0xd2   : > { %758 = vperm.xlu1 %1434, %v751_v39   ;;  %836 = vmatpush.bf16.msra.mxu2 %v1364_v60  ;;  %v1436_v38 = vld [vmem:[%s1878_s7] ss:$0 sm:$0xff] }
  0xd3   : > { %700 = vmatpush.msra.mxu0 %v685_v47 }
  0xd4   : > { %818 = vmatpush.bf16.msra.mxu1 %v1352_v1 }
  0xd5   : > { %701 = vmatpush.msra.mxu0 %v684_v48 }
  0xd6   : > { %837 = vmatpush.bf16.msra.mxu2 %v1356_v5 }
  0xd7   : > { %702 = vmatpush.msra.mxu0 %v683_v49 }
  0xd8   : > { %761 = vperm.xlu0 %1433, %v752_v44   ;;  %v931_v44 = vshrl.u32 %v732_v9, 7 }
  0xd9   : > { %949 = vperm.xlu2 %1435, %v728_v30   ;;  %703 = vmatpush.msra.mxu0 %v682_v50  ;;  %v935_v50 = vstv %s1373_s26 }
  0xda   : > { %764 = vperm.xlu1 %1434, %v753_v45   ;;  %v932_v48 = vadd.s32 8, %v931_v44  ;;  %v934_v57 = vadd.s32 24, %v931_v44 }
  0xdb   : > { %704 = vmatpush.msra.mxu0 %v681_v51  ;;  %v933_v51 = vadd.s32 16, %v931_v44 }
  0xdd   : > { %705 = vmatpush.msra.mxu0 %v680_v52  ;;  %v938_v56 = vadd.s32 %v935_v50, %v933_v51 }
  0xdf   : > { %706 = vmatpush.msra.mxu0 %v679_v53  ;;  %v937_v53 = vadd.s32 %v935_v50, %v932_v48 }
  0xe0   : > { %952 = vperm.xlu0 %1433, %v729_v36  }
  0xe1   : > { %958 = vperm.xlu2 %1435, %v731_v43   ;;  %707 = vmatpush.msra.mxu0 %v678_v54  ;;  %v936_v54 = vadd.s32 %v935_v50, %v931_v44 }
  0xe2   : > { %955 = vperm.xlu1 %1434, %v730_v42  }
  0xe3   : > { %708 = vmatpush.msra.mxu0 %v677_v61 }
  0xe5   : > { %709 = vmatpush.msra.mxu0 %v676_v62  ;;  %v939_v62 = vadd.s32 %v935_v50, %v934_v57 }
  0xe7   : > { %710 = vmatpush.msra.mxu0 %v675_v4 }
  0xe8   : > { %711 = vmatmul.f32.vlgmr.msra.gmra.mxu0 %v671_v6 }
  0xf0   : > { %714 = vmatmul.f32.gmra.mxu0 %v672_v7 }
  0xf8   : > { %717 = vmatmul.f32.gmra.mxu0 %v673_v8 }
 0x100   : > { %720 = vmatmul.f32.gmra.mxu0 %v674_v14 }
 0x123   : > { %v742_v13 = vpop.permute.xlu2 %741 }
 0x124   : > { %vm748_vm9 = vcmp.eq.s32.totalorder %v742_v13, %v733_v12 }
 0x12b   : > { %v745_v17 = vpop.permute.xlu2 %744 }
 0x12c   : > { %vm749_vm10 = vcmp.eq.s32.totalorder %v745_v17, %v733_v12 }
 0x133   : > { %v950_v24 = vpop.permute.xlu2 %949 }
 0x134   : > { %vm960_vm12 = vcmp.eq.s32.totalorder %v950_v24, %v733_v12 }
 0x135   : > { %v964_v26 = vsel %vm960_vm12, 1.0, %v1552_v18 }
 0x13a   : > { %v736_v10 = vpop.permute.xlu0 %735 }
 0x13b   : > { %vm746_vm0 = vcmp.eq.s32.totalorder %v736_v10, %v733_v12  ;;  %v959_v33 = vpop.permute.xlu2 %958 }
 0x13c   : > { %v756_v11 = vpop.permute.xlu1 %755 }
 0x13d   : > { %vm766_vm1 = vcmp.eq.s32.totalorder %v756_v11, %v733_v12 }
 0x13e   : > { %vm770_vm2 = vmor %vm746_vm0, %vm766_vm1  ;;  %vm963_vm0 = vcmp.eq.s32.totalorder %v959_v33, %v733_v12  ;;  %vm941_vm1 = vcmp.lt.s32.totalorder %v937_v53, 48 }
 0x13f   : > { %v774_v19 = vsel %vm770_vm2, 1.0, %v1552_v18  ;;  %v967_v35 = vsel %vm963_vm0, 1.0, %v1552_v18  ;;  %vm940_vm2 = vcmp.lt.s32.totalorder %v936_v54, 48  ;;  %v1748_v0 = vsel %vm941_vm1, 1.0, %v1552_v18 }
 0x140   : > { %v1752_v2 = vsel %vm940_vm2, 1.0, %v1552_v18 }
 0x142   : > { %v739_v15 = vpop.permute.xlu0 %738 }
 0x143   : > { %vm747_vm3 = vcmp.eq.s32.totalorder %v739_v15, %v733_v12 }
 0x144   : > { %v759_v16 = vpop.permute.xlu1 %758 }
 0x145   : > { %vm767_vm4 = vcmp.eq.s32.totalorder %v759_v16, %v733_v12 }
 0x146   : > { %vm771_vm5 = vmor %vm747_vm3, %vm767_vm4  ;;  %vm942_vm3 = vcmp.lt.s32.totalorder %v938_v56, 48  ;;  %vm943_vm4 = vcmp.lt.s32.totalorder %v939_v62, 48 }
 0x147   : > { %v775_v20 = vsel %vm771_vm5, 1.0, %v1552_v18  ;;  %v1757_v5 = vsel %vm942_vm3, 1.0, %v1552_v18  ;;  %v1768_v13 = vsel %vm943_vm4, 1.0, %v1552_v18 }
 0x148   : > { %v778_v21 = vpack.c.bf16 %v775_v20, %v774_v19 }
 0x14a   : > { %1365 = vmatmul.msk.bf16.vlgmr.msra.gmra.mxu1 %vm804_vm6, %v778_v21  ;;  %1367 = vmatmul.msk.bf16.vlgmr.msra.gmra.mxu2 %vm804_vm6, %v778_v21  ;;  %v762_v22 = vpop.permute.xlu0 %761 }
 0x14b   : > { %vm768_vm7 = vcmp.eq.s32.totalorder %v762_v22, %v733_v12 }
 0x14c   : > { %v765_v23 = vpop.permute.xlu1 %764  ;;  %vm772_vm11 = vmor %vm748_vm9, %vm768_vm7 }
 0x14d   : > { %vm769_vm8 = vcmp.eq.s32.totalorder %v765_v23, %v733_v12  ;;  %v776_v27 = vsel %vm772_vm11, 1.0, %v1552_v18 }
 0x14e   : > { %vm773_vm13 = vmor %vm749_vm10, %vm769_vm8 }
 0x14f   : > { %v777_v28 = vsel %vm773_vm13, 1.0, %v1552_v18 }
 0x150   : > { %v779_v31 = vpack.c.bf16 %v777_v28, %v776_v27 }
 0x152   : > { %v953_v25 = vpop.permute.xlu0 %952 }
 0x153   : > { %vm961_vm14 = vcmp.eq.s32.totalorder %v953_v25, %v733_v12 }
 0x154   : > { %v965_v29 = vsel %vm961_vm14, 1.0, %v1552_v18  ;;  %v956_v32 = vpop.permute.xlu1 %955 }
 0x155   : > { %v968_v30 = vpack.c.bf16 %v965_v29, %v964_v26  ;;  %vm962_vm15 = vcmp.eq.s32.totalorder %v956_v32, %v733_v12 }
 0x156   : > { %v966_v34 = vsel %vm962_vm15, 1.0, %v1552_v18 }
 0x157   : > { %990 = vxpose.xlu0.c.b16.start [1/2] (short) (narrow) %v968_v30, 16  ;;  %v969_v36 = vpack.c.bf16 %v967_v35, %v966_v34 }
 0x15a   : > { %1366 = vmatmul.msk.bf16.gmra.mxu1 %vm804_vm6, %v779_v31  ;;  %1368 = vmatmul.msk.bf16.gmra.mxu2 %vm804_vm6, %v779_v31 }
 0x165   : > { %v712_v37 = vpop.f32.mrf.mxu0 }
 0x166   : > { %v713_v39 = vadd.f32 %v1436_v38, %v712_v37 }
 0x167   : > { %991 = vxpose.xlu0.c.b16.end [2/2] (short) (narrow) %v969_v36, 16 }
 0x16d   : > { %v715_v40 = vpop.f32.mrf.mxu0 }
 0x16e   : > { %v716_v43 = vadd.f32 %v1436_v38, %v715_v40 }
 0x175   : > { %v718_v47 = vpop.f32.mrf.mxu0 }
 0x176   : > { %v719_v55 = vadd.f32 %v1436_v38, %v718_v47 }
 0x17d   : > { %v721_v61 = vpop.f32.mrf.mxu0 }
 0x17e   : > { %v722_v4 = vadd.f32 %v1436_v38, %v721_v61  ;;  %v1053_v61 = vld [vmem:[#allocation5] sm:$0x1] }
 0x1c7   : > { %v820_v41 = vpop.f32.mrf.mxu1 }
 0x1c8   : > { %v849_v42 = vadd.f32 %v820_v41, %v713_v39 }
 0x1ca   : > { %1045 = vst [vmem:[%s1656_s27] sm:$0xff] %v849_v42  ;;  %v1369_v45 = vmul.f32 -1.442695, %v849_v42  ;;  %v1049_v8 = vmul.f32 %v1752_v2, %v849_v42 }
 0x1cc   : > { %1437 = vpow2.f32 %v1369_v45  ;;  %v1066_v16 = vmul.f32 %v1049_v8, %v849_v42 }
 0x1cd   : > { %v1763_v9 = vpop.f32.mrf.mxu2 }
 0x1cf   : > { %v822_v46 = vpop.f32.mrf.mxu1 }
 0x1d0   : > { %v850_v49 = vadd.f32 %v822_v46, %v716_v43 }
 0x1d2   : > { %v1370_v52 = vmul.f32 -1.442695, %v850_v49  ;;  %1046 = vst [vmem:[%s1656_s27 + $0x8] sm:$0xff] %v850_v49  ;;  %v1438_v60 = vpop.eup %1437  ;;  %v1050_v7 = vmul.f32 %v1748_v0, %v850_v49 }
 0x1d3   : > { %v1759_v6 = vadd.f32 1.0, %v1438_v60 }
 0x1d4   : > { %1439 = vpow2.f32 %v1370_v52  ;;  %v1067_v14 = vmul.f32 %v1050_v7, %v850_v49  ;;  %v1054_v19 = vadd.f32 %v1050_v7, %v1049_v8 }
 0x1d5   : > { %v1782_v30 = vpop.f32.mrf.mxu2  ;;  %vm874_vm5 = vweird.f32 %v1759_v6  ;;  %v878_v45 = vand.u32 2147483647, %v1759_v6  ;;  %v880_v48 = vand.u32 2147483648, %v1759_v6 }
 0x1d6   : > { %v1070_v24 = vadd.f32 %v1067_v14, %v1066_v16 }
 0x1d7   : > { %v825_v58 = vpop.f32.mrf.mxu1  ;;  %vm879_vm4 = vcmp.eq.f32.partialorder %v878_v45, 8.507059e+37 }
 0x1d8   : > { %v851_v59 = vadd.f32 %v825_v58, %v719_v55 }
 0x1da   : > { %v1440_v63 = vpop.eup %1439  ;;  %v1371_v1 = vmul.f32 -1.442695, %v851_v59  ;;  %1047 = vst [vmem:[%s1656_s27 + $0x10] sm:$0xff] %v851_v59  ;;  %v1051_v10 = vmul.f32 %v1757_v5, %v851_v59 }
 0x1db   : > { %v1754_v3 = vadd.f32 1.0, %v1440_v63 }
 0x1dc   : > { %1441 = vpow2.f32 %v1371_v1  ;;  %v1068_v21 = vmul.f32 %v1051_v10, %v851_v59  ;;  %v1055_v18 = vadd.f32 %v1054_v19, %v1051_v10 }
 0x1dd   : > { %1443 = vrcp.f32 %v1754_v3  ;;  %vm889_vm9 = vweird.f32 %v1754_v3  ;;  %v844_v55 = vpop.f32.mrf.mxu2  ;;  %v893_v62 = vand.u32 2147483647, %v1754_v3  ;;  %v895_v63 = vand.u32 2147483648, %v1754_v3 }
 0x1de   : > { %1445 = vrcp.f32 %v1759_v6  ;;  %v1071_v26 = vadd.f32 %v1070_v24, %v1068_v21 }
 0x1df   : > { %v827_v11 = vpop.f32.mrf.mxu1  ;;  %v896_v24 = vor.u32 1.1754944e-38, %v895_v63  ;;  %vm894_vm1 = vcmp.eq.f32.partialorder %v893_v62, 8.507059e+37 }
 0x1e0   : > { %v852_v12 = vadd.f32 %v827_v11, %v722_v4 }
 0x1e2   : > { %v1442_v15 = vpop.eup %1441  ;;  %v1372_v17 = vmul.f32 -1.442695, %v852_v12  ;;  %1048 = vst [vmem:[%s1656_s27 + $0x18] sm:$0xff] %v852_v12  ;;  %v1052_v22 = vmul.f32 %v1768_v13, %v852_v12 }
 0x1e3   : > { %v1772_v20 = vadd.f32 1.0, %v1442_v15  ;;  %v1775_v23 = vpop.eup %1443 }
 0x1e4   : > { %1447 = vpow2.f32 %v1372_v17  ;;  %v1778_v25 = vpop.eup %1445  ;;  %v1056_v27 = vadd.f32 %v1055_v18, %v1052_v22  ;;  %v1069_v28 = vmul.f32 %v1052_v22, %v852_v12  ;;  %v885_v29 = vmul.f32 %v1775_v23, %v1754_v3  ;;  %v1065_v12 = vld [vmem:[#allocation6] sm:$0x1] }
 0x1e5   : > { %1449 = vrcp.f32 %v1772_v20  ;;  %v870_v34 = vmul.f32 %v1778_v25, %v1759_v6  ;;  %vm875_vm7 = vweird.f32 %v1778_v25  ;;  %v908_v53 = vand.u32 2147483647, %v1772_v20 }
 0x1e6   : > { %v1057_v31 = vrot.slane %v1056_v27, 4  ;;  %v1072_v32 = vadd.f32 %v1071_v26, %v1069_v28  ;;  %v886_v39 = vsub.f32 1.0, %v885_v29  ;;  %v910_v56 = vand.u32 2147483648, %v1772_v20  ;;  %vm1828_vm0 = vmor %vm874_vm5, %vm875_vm7 }
 0x1e7   : > { %v871_v41 = vsub.f32 1.0, %v870_v34  ;;  %vm890_vm10 = vweird.f32 %v1775_v23  ;;  %vm904_vm11 = vweird.f32 %v1772_v20  ;;  %vm909_vm13 = vcmp.eq.f32.partialorder %v908_v53, 8.507059e+37  ;;  %v846_v34 = vpop.f32.mrf.mxu2 }
 0x1e8   : > { %v1058_v37 = vadd.f32 %v1057_v31, %v1056_v27  ;;  %v1073_v38 = vrot.slane %v1072_v32, 4  ;;  %v887_v46 = vmul.f32 %v1775_v23, %v886_v39  ;;  %vm1815_vm14 = vmor %vm889_vm9, %vm890_vm10  ;;  %v911_v15 = vor.u32 1.1754944e-38, %v910_v56 }
 0x1e9   : > { %v872_v51 = vmul.f32 %v1778_v25, %v871_v41  ;;  %v881_v28 = vor.u32 1.1754944e-38, %v880_v48 }
 0x1ea   : > { %v1448_v33 = vpop.eup %1447  ;;  %v1059_v43 = vrot.slane %v1058_v37, 2  ;;  %v1074_v44 = vadd.f32 %v1073_v38, %v1072_v32  ;;  %v888_v59 = vadd.f32 %v1775_v23, %v887_v46 }
 0x1eb   : > { %v1450_v35 = vpop.eup %1449  ;;  %v1786_v36 = vadd.f32 1.0, %v1448_v33  ;;  %v873_v8 = vadd.f32 %v1778_v25, %v872_v51 }
 0x1ec   : > { %v900_v40 = vmul.f32 %v1450_v35, %v1772_v20  ;;  %v1060_v49 = vadd.f32 %v1059_v43, %v1058_v37  ;;  %v1075_v50 = vrot.slane %v1074_v44, 2  ;;  %vm905_vm8 = vweird.f32 %v1450_v35 }
 0x1ed   : > { %1451 = vrcp.f32 %v1786_v36  ;;  %vm1806_vm12 = vmor %vm904_vm11, %vm905_vm8  ;;  %v925_v16 = vand.u32 2147483648, %v1786_v36  ;;  %v892_v20 = vsel %vm1815_vm14, %v1775_v23, %v888_v59  ;;  %v923_v22 = vand.u32 2147483647, %v1786_v36 }
 0x1ee   : > { %v901_v42 = vsub.f32 1.0, %v900_v40  ;;  %v1061_v57 = vrot.slane %v1060_v49, 1  ;;  %v1076_v58 = vadd.f32 %v1075_v50, %v1074_v44  ;;  %v877_v23 = vsel %vm1828_vm0, %v1778_v25, %v873_v8 }
 0x1ef   : > { %vm919_vm2 = vweird.f32 %v1786_v36  ;;  %v897_v29 = vsel %vm894_vm1, %v896_v24, %v892_v20  ;;  %v926_v6 = vor.u32 1.1754944e-38, %v925_v16  ;;  %vm924_vm5 = vcmp.eq.f32.partialorder %v923_v22, 8.507059e+37 }
 0x1f0   : > { %v902_v47 = vmul.f32 %v1450_v35, %v901_v42  ;;  %v1062_v4 = vadd.f32 %v1061_v57, %v1060_v49  ;;  %v1077_v7 = vrot.slane %v1076_v58, 1  ;;  %v882_v33 = vsel %vm879_vm4, %v881_v28, %v877_v23 }
 0x1f1   : > { %v971_v37 = vmul.f32 %v897_v29, %v1782_v30  ;;  %v970_v25 = vmul.f32 %v882_v33, %v1763_v9  ;;  %v977_v30 = vmul.f32 %v1748_v0, %v897_v29 }
 0x1f2   : > { %v903_v52 = vadd.f32 %v1450_v35, %v902_v47  ;;  %v1063_v17 = vadd.f32 %v1062_v4, %v1053_v61  ;;  %v1078_v19 = vadd.f32 %v1077_v7, %v1076_v58  ;;  %v975_v47 = vmul.f32 %v1752_v2, %v882_v33 }
 0x1f3   : > { %v1452_v54 = vpop.eup %1451  ;;  %v976_v40 = vmul.f32 %v971_v37, %v1748_v0  ;;  %v974_v43 = vmul.f32 %v970_v25, %v1752_v2  ;;  %v987_v0 = vld [vmem:[#allocation4 + $0x10] sm:$0xff]  ;;  %v989_v2 = vld [vmem:[#allocation4 + $0x18] sm:$0xff] }
 0x1f4   : > { %v915_v60 = vmul.f32 %v1452_v54, %v1786_v36  ;;  %v907_v10 = vsel %vm1806_vm12, %v1450_v35, %v903_v52  ;;  %vm920_vm15 = vweird.f32 %v1452_v54  ;;  %1064 = vst [vmem:[#allocation5] sm:$0x1] %v1063_v17  ;;  %v1079_v26 = vadd.f32 %v1078_v19, %v1065_v12 }
 0x1f5   : > { %v912_v18 = vsel %vm909_vm13, %v911_v15, %v907_v10  ;;  %vm921_vm3 = vmor %vm919_vm2, %vm920_vm15  ;;  %v982_v45 = vpack.c.bf16 %v976_v40, %v974_v43  ;;  %v983_v48 = vpack.c.bf16 %v977_v30, %v975_v47 }
 0x1f6   : > { %v916_v11 = vsub.f32 1.0, %v915_v60  ;;  %1080 = vst [vmem:[#allocation6] sm:$0x1] %v1079_v26  ;;  %v972_v31 = vmul.f32 %v912_v18, %v844_v55  ;;  %v979_v44 = vmul.f32 %v1757_v5, %v912_v18 }
 0x1f8   : > { %v917_v21 = vmul.f32 %v1452_v54, %v916_v11  ;;  %v978_v39 = vmul.f32 %v972_v31, %v1757_v5  ;;  %v988_v5 = vld [vmem:[#allocation4] sm:$0xff] }
 0x1fa   : > { %v918_v27 = vadd.f32 %v1452_v54, %v917_v21 }
 0x1fc   : > { %v922_v32 = vsel %vm921_vm3, %v1452_v54, %v918_v27 }
 0x1fd   : > { %v927_v35 = vsel %vm924_vm5, %v926_v6, %v922_v32 }
 0x1fe   : > { %v973_v38 = vmul.f32 %v927_v35, %v846_v34  ;;  %v981_v42 = vmul.f32 %v1768_v13, %v927_v35 }
 0x200   : > { %v980_v36 = vmul.f32 %v973_v38, %v1768_v13  ;;  %v985_v46 = vpack.c.bf16 %v981_v42, %v979_v44  ;;  %v986_v13 = vld [vmem:[#allocation4 + $0x8] sm:$0xff] }
 0x202   : > { %v984_v41 = vpack.c.bf16 %v980_v36, %v978_v39 }
 0x203   : > { %v998_v9 = vpop.trf.xlu0 }
 0x204   : > { %1015 = vmatpush.bf16.msra.mxu3 %v984_v41 }
 0x208   : > { %1016 = vmatpush.bf16.msra.mxu3 %v982_v45 }
 0x20b   : > { %1374 = vmatmul.msk.bf16.vlgmr.msra.gmra.mxu3 %vm804_vm6, %v998_v9 }
 0x20c   : > { %1029 = vmatpush.bf16.msrb.mxu3 %v985_v46 }
 0x210   : > { %1030 = vmatpush.bf16.msrb.mxu3 %v983_v48 }
 0x21b   : > { %1375 = vmatmul.msk.bf16.vlgmr.msrb.gmra.mxu3 %vm804_vm6, %v998_v9 }
 0x28e   : > { %v1018_v49 = vpop.f32.mrf.mxu3 }
 0x28f   : > { %v1037_v50 = vadd.f32 %v1018_v49, %v986_v13 }
 0x291   : > { %1041 = vst [vmem:[#allocation4 + $0x8] sm:$0xff] %v1037_v50 }
 0x296   : > { %v1020_v51 = vpop.f32.mrf.mxu3 }
 0x297   : > { %v1039_v52 = vadd.f32 %v1020_v51, %v988_v5 }
 0x299   : > { %1043 = vst [vmem:[#allocation4] sm:$0xff] %v1039_v52 }
 0x29e   : > { %v1032_v53 = vpop.f32.mrf.mxu3 }
 0x29f   : > { %v1038_v54 = vadd.f32 %v1032_v53, %v987_v0 }
 0x2a1   : > { %1042 = vst [vmem:[#allocation4 + $0x10] sm:$0xff] %v1038_v54 }
 0x2a5   : > { %1084 = sbr.rel (%p1376_p8) target bundleno = 782 (0x30e), region = 72 }
 0x2a6   : > { %v1034_v55 = vpop.f32.mrf.mxu3 }
 0x2a7   : > { %v1040_v56 = vadd.f32 %v1034_v55, %v989_v2 }
 0x2a9   : > { %1044 = vst [vmem:[#allocation4 + $0x18] sm:$0xff] %v1040_v56 }
 0x2aa   : > { %v1087_v57 = vld [vmem:[#allocation4 + $0x10] sm:$0xff]  ;;  %v1553_v60 = vmov 16.0   ;;  %v1085_v63 = vld [vmem:[#allocation4 + $0x8] sm:$0xff]  ;;  %v1086_v1 = vld [vmem:[#allocation4] sm:$0xff]  ;;  %vm1204_vm10 = vcmask 1040384  }
 0x2ab   : > { %v1089_v59 = vadd.f32 1e-06, %v1087_v57  ;;  %1456 = vrcp.f32 %v1553_v60  ;;  %v1095_v7 = vld [vmem:[#allocation3] sm:$0xff]  ;;  %v1096_v11 = vld [vmem:[#allocation3 + $0x8] sm:$0xff]  ;;  %v1455_v53 = vld [vmem:[#allocation6] ss:$0 sm:$0xff] }
 0x2ac   : > { %v1453_v47 = vld [vmem:[%s1879_s8] ss:$0 sm:$0xff]  ;;  %v1199_v54 = vld [vmem:[#allocation5] sm:$0x1] }
 0x2ad   : > { %1458 = vrcp.f32 %v1089_v59  ;;  %v1454_v49 = vld [vmem:[%s1880_s9] ss:$0 sm:$0xff]  ;;  %v1205_v56 = vsel %vm1204_vm10, %v1199_v54, %v1455_v53 }
 0x2ae   : > { %1206 = vst [vmem:[%s1883_s12] sm:$0x3] %v1205_v56 }
 0x2b0   : > { %v1088_v58 = vld [vmem:[#allocation4 + $0x18] sm:$0xff] }
 0x2b1   : > { %v1090_v61 = vadd.f32 1e-06, %v1088_v58  ;;  %v1457_v62 = vpop.eup %1456 }
 0x2b2   : > { %v1107_v12 = vmul.f32 16.0, %v1457_v62  ;;  %vm1111_vm6 = vweird.f32 %v1457_v62 }
 0x2b3   : > { %1460 = vrcp.f32 %v1090_v61  ;;  %v1459_v4 = vpop.eup %1458 }
 0x2b4   : > { %v1093_v10 = vmul.f32 %v1459_v4, %v1085_v63  ;;  %v1108_v17 = vsub.f32 1.0, %v1107_v12 }
 0x2b6   : > { %v1097_v15 = vadd.f32 %v1095_v7, %v1093_v10  ;;  %v1109_v24 = vmul.f32 %v1457_v62, %v1108_v17 }
 0x2b8   : > { %v1114_v19 = vmul.f32 %v1097_v15, %v1097_v15  ;;  %v1110_v28 = vadd.f32 %v1457_v62, %v1109_v24 }
 0x2b9   : > { %v1461_v8 = vpop.eup %1460 }
 0x2ba   : > { %v1094_v14 = vmul.f32 %v1461_v8, %v1086_v1  ;;  %v1112_v33 = vsel %vm1111_vm6, %v1457_v62, %v1110_v28 }
 0x2bc   : > { %v1098_v16 = vadd.f32 %v1096_v11, %v1094_v14 }
 0x2be   : > { %v1099_v20 = vadd.f32 %v1098_v16, %v1097_v15  ;;  %v1115_v21 = vmul.f32 %v1098_v16, %v1098_v16 }
 0x2c0   : > { %v1100_v22 = vrot.slane %v1099_v20, 4  ;;  %v1116_v3 = vadd.f32 %v1115_v21, %v1114_v19 }
 0x2c2   : > { %v1101_v18 = vadd.f32 %v1100_v22, %v1099_v20  ;;  %v1117_v26 = vrot.slane %v1116_v3, 4  ;;  %v1153_v22 = vld [vmem:[%s1871_s0] sm:$0xff] }
 0x2c4   : > { %v1102_v23 = vrot.slane %v1101_v18, 2  ;;  %v1118_v27 = vadd.f32 %v1117_v26, %v1116_v3  ;;  %v1154_v26 = vld [vmem:[%s1871_s0 + $0x8] sm:$0xff] }
 0x2c6   : > { %v1103_v29 = vadd.f32 %v1102_v23, %v1101_v18  ;;  %v1119_v6 = vrot.slane %v1118_v27, 2 }
 0x2c8   : > { %v1104_v31 = vrot.slane %v1103_v29, 1  ;;  %v1120_v32 = vadd.f32 %v1119_v6, %v1118_v27 }
 0x2ca   : > { %v1105_v34 = vadd.f32 %v1104_v31, %v1103_v29  ;;  %v1121_v35 = vrot.slane %v1120_v32, 1 }
 0x2cc   : > { %v1113_v37 = vmul.f32 %v1112_v33, %v1105_v34  ;;  %v1122_v38 = vadd.f32 %v1121_v35, %v1120_v32 }
 0x2ce   : > { %v1123_v25 = vmul.f32 %v1122_v38, %v1112_v33  ;;  %v1124_v39 = vmul.f32 %v1113_v37, %v1113_v37  ;;  %v1126_v30 = vsub.f32 %v1097_v15, %v1113_v37  ;;  %v1127_v46 = vsub.f32 %v1098_v16, %v1113_v37 }
 0x2d0   : > { %v1125_v36 = vsub.f32 %v1123_v25, %v1124_v39 }
 0x2d2   : > { %v1128_v40 = vadd.f32 1e-05, %v1125_v36 }
 0x2d4   : > { %1462 = vrsqrt.f32 %v1128_v40  ;;  %vm1135_vm7 = vweird.f32 %v1128_v40 }
 0x2da   : > { %v1463_v41 = vpop.eup %1462 }
 0x2db   : > { %v1130_v42 = vmul.f32 %v1463_v41, %v1128_v40  ;;  %vm1136_vm8 = vweird.f32 %v1463_v41 }
 0x2dc   : > { %vm1137_vm9 = vmor %vm1135_vm7, %vm1136_vm8 }
 0x2dd   : > { %v1131_v43 = vmul.f32 %v1463_v41, %v1130_v42 }
 0x2df   : > { %v1132_v44 = vmul.f32 0.5, %v1131_v43 }
 0x2e1   : > { %v1133_v45 = vsub.f32 1.5, %v1132_v44 }
 0x2e3   : > { %v1134_v9 = vmul.f32 %v1463_v41, %v1133_v45 }
 0x2e5   : > { %v1138_v48 = vsel %vm1137_vm9, %v1463_v41, %v1134_v9 }
 0x2e6   : > { %v1139_v13 = vmul.f32 %v1138_v48, %v1126_v30  ;;  %v1140_v50 = vmul.f32 %v1138_v48, %v1127_v46 }
 0x2e8   : > { %v1145_v5 = vmul.f32 %v1453_v47, %v1139_v13  ;;  %v1146_v51 = vmul.f32 %v1453_v47, %v1140_v50 }
 0x2ea   : > { %v1151_v52 = vadd.f32 %v1454_v49, %v1145_v5  ;;  %v1152_v0 = vadd.f32 %v1454_v49, %v1146_v51 }
 0x2ec   : > { %v1377_v2 = vmul.f32 -1.442695, %v1151_v52  ;;  %v1378_v55 = vmul.f32 -1.442695, %v1152_v0 }
 0x2ee   : > { %1464 = vpow2.f32 %v1377_v2 }
 0x2ef   : > { %1466 = vpow2.f32 %v1378_v55 }
 0x2f4   : > { %v1465_v57 = vpop.eup %1464 }
 0x2f5   : > { %v1467_v58 = vpop.eup %1466  ;;  %v1161_v59 = vadd.f32 1.0, %v1465_v57 }
 0x2f6   : > { %v1162_v60 = vadd.f32 1.0, %v1467_v58 }
 0x2f7   : > { %1468 = vrcp.f32 %v1161_v59  ;;  %vm1168_vm11 = vweird.f32 %v1161_v59  ;;  %v1174_v1 = vand.u32 2147483648, %v1161_v59  ;;  %v1172_v8 = vand.u32 2147483647, %v1161_v59 }
 0x2f8   : > { %1470 = vrcp.f32 %v1162_v60  ;;  %v1189_v10 = vand.u32 2147483648, %v1162_v60  ;;  %vm1183_vm13 = vweird.f32 %v1162_v60  ;;  %v1187_v12 = vand.u32 2147483647, %v1162_v60 }
 0x2f9   : > { %v1175_v15 = vor.u32 1.1754944e-38, %v1174_v1  ;;  %vm1173_vm0 = vcmp.eq.f32.partialorder %v1172_v8, 8.507059e+37 }
 0x2fa   : > { %v1190_v19 = vor.u32 1.1754944e-38, %v1189_v10  ;;  %vm1188_vm2 = vcmp.eq.f32.partialorder %v1187_v12, 8.507059e+37 }
 0x2fd   : > { %v1469_v61 = vpop.eup %1468 }
 0x2fe   : > { %v1471_v62 = vpop.eup %1470  ;;  %v1164_v63 = vmul.f32 %v1469_v61, %v1161_v59  ;;  %vm1169_vm12 = vweird.f32 %v1469_v61 }
 0x2ff   : > { %v1179_v4 = vmul.f32 %v1471_v62, %v1162_v60  ;;  %vm1184_vm14 = vweird.f32 %v1471_v62  ;;  %vm1170_vm15 = vmor %vm1168_vm11, %vm1169_vm12 }
 0x300   : > { %v1165_v7 = vsub.f32 1.0, %v1164_v63  ;;  %vm1185_vm1 = vmor %vm1183_vm13, %vm1184_vm14 }
 0x301   : > { %v1180_v11 = vsub.f32 1.0, %v1179_v4 }
 0x302   : > { %v1166_v14 = vmul.f32 %v1469_v61, %v1165_v7 }
 0x303   : > { %v1181_v16 = vmul.f32 %v1471_v62, %v1180_v11 }
 0x304   : > { %v1167_v17 = vadd.f32 %v1469_v61, %v1166_v14 }
 0x305   : > { %v1182_v20 = vadd.f32 %v1471_v62, %v1181_v16 }
 0x306   : > { %v1171_v21 = vsel %vm1170_vm15, %v1469_v61, %v1167_v17 }
 0x307   : > { %v1176_v3 = vsel %vm1173_vm0, %v1175_v15, %v1171_v21  ;;  %v1186_v24 = vsel %vm1185_vm1, %v1471_v62, %v1182_v20 }
 0x308   : > { %v1193_v18 = vmul.f32 %v1176_v3, %v1151_v52  ;;  %v1191_v23 = vsel %vm1188_vm2, %v1190_v19, %v1186_v24 }
 0x309   : > { %v1194_v27 = vmul.f32 %v1191_v23, %v1152_v0 }
 0x30a   : > { %v1195_v28 = vadd.f32 %v1193_v18, %v1153_v22 }
 0x30b   : > { %v1196_v29 = vadd.f32 %v1194_v27, %v1154_v26 }
 0x30c   : > { %1197 = vst [vmem:[#allocation10] sm:$0xff] %v1195_v28 }
 0x30d   : > { %1198 = vst [vmem:[#allocation10 + $0x8] sm:$0xff] %v1196_v29 }
 0x30e PF: > { %p1412_p9 = scmp.eq.s32.totalorder %s1631_s25, 1  ;;  %s1554_s18 = smov [#allocation10]  }
 0x30f   : > { %s1217_s20 = sshll.u32 %s1554_s18, 4  ;;  %s1219_s24 = sshll.u32 %s1881_s10, 4  ;;  %s1218_s20 = int_to_ptr.vmem [resolvable:$true] %s1217_s20  ;;  %s1220_s24 = int_to_ptr.hbm [resolvable:$true] %s1219_s24 }
 0x310   : > { %s1555_s26 = smov 128   ;;  %s1556_s27 = smov 8  }
 0x311   : > { %1403 = dma.vmem_to_hbm [thread:$0]  (%p1412_p9), %s1218_s20, 256, %s1220_s24, [#allocation9], %s1555_s26, %s1555_s26, %s1556_s27  }
 0x312   : > { %1539 = dma.done.wait (%p1412_p9), [#allocation9], 256  }
 0x313   : > { %1541 = vsyncadd (%p1412_p9), [#allocation9], 4294967040 }
 0x314 PF: > { %s25_s21 = sadd.s32 1, %s1544_s21  }
 0x315   : > { %p22_p10 = scmp.ge.s32.totalorder %s25_s21, 4  }
 0x317   :  { %24 = sbr.rel (!%p22_p10) target bundleno = 2 (0x2), region = 126 }
 0x31c   :  { %1254 = vsyncpa [#allocation8], 1 }
 0x31d   :  { %1256 = vsyncpa [#allocation8 + $0x1], 1 }
 0x31e   :  { %1257 = vsyncpa [#allocation9], 1 }
 0x31f   :  { %1259 = vsyncpa [#allocation9 + $0x1], 1 }

// kernel: alignn_conv.6
= control target key start
LH: loop header
LB: loop body
LE: loop exit
PB: predicated region body
PF: predicated region fallthrough
CT: control target
= control target key end

     0   :  { %18 = vsyncpa [#allocation8], 0  ;;  %s2490_s0 = inlined_call_operand.vmem [shape: f32[48,128], index: 0, kind: input, shape index: {}]   ;;  %s2491_s1 = inlined_call_operand.vmem [shape: f32[96,128], index: 1, kind: input, shape index: {}]   ;;  %s2492_s2 = inlined_call_operand.vmem [shape: s32[96,1], index: 2, kind: input, shape index: {}]   ;;  %s2493_s3 = inlined_call_operand.vmem [shape: s32[96,1], index: 3, kind: input, shape index: {}]   ;;  %s2494_s4 = inlined_call_operand.hbm [shape: f32[128,512], index: 4, kind: input, shape index: {}]   ;;  %s2495_s5 = inlined_call_operand.vmem [shape: f32[1,512], index: 5, kind: input, shape index: {}]   ;;  %s2496_s6 = inlined_call_operand.vmem [shape: f32[128,128], index: 6, kind: input, shape index: {}]   ;;  %s2497_s7 = inlined_call_operand.vmem [shape: f32[1,128], index: 7, kind: input, shape index: {}]   ;;  %s2498_s8 = inlined_call_operand.vmem [shape: f32[1,128], index: 8, kind: input, shape index: {}]   ;;  %s2499_s9 = inlined_call_operand.vmem [shape: f32[1,128], index: 9, kind: input, shape index: {}]   ;;  %s2500_s10 = inlined_call_operand.hbm [shape: f32[48,128], index: 10, kind: output, shape index: {0}]   ;;  %s2501_s11 = inlined_call_operand.vmem [shape: f32[96,128], index: 11, kind: output, shape index: {1}]   ;;  %s2502_s12 = inlined_call_operand.vmem [shape: f32[2,128], index: 12, kind: output, shape index: {2}]  }
   0x1   :  { %19 = vsyncpa [#allocation9], 0  ;;  %s2026_s21 = smov 0  }
   0x2 LB: > { %s337_s24 = sshll.u32 %s2494_s4, 4  ;;  %s2035_s25 = sadd.s32 4294967295, %s1948_s21   ;;  %s1948_s21 = sphi %s2026_s21, %s25_s21   ;;  %s338_s24 = int_to_ptr.hbm [resolvable:$true] %s337_s24 }
   0x3   : > { %p1678_p0 = scmp.ge.s32.totalorder %s1948_s21, 1  ;;  %p323_p1 = scmp.lt.s32.totalorder %s1948_s21, 4 }
   0x4   : > { %p1679_p2 = scmp.ne.s32.totalorder %s2035_s25, 0  ;;  %p1790_p3 = scmp.eq.s32.totalorder %s2035_s25, 0 }
   0x5   : > { %p324_p4 = pnand %p1678_p0, %p323_p1  ;;  %s1950_s26 = smov [#allocation7]  }
   0x6   : > { %s339_s27 = sshll.u32 %s1950_s26, 4  ;;  %s1951_s28 = smov 512   ;;  %s340_s27 = int_to_ptr.vmem [resolvable:$true] %s339_s27 }
   0x7   : > { %p1786_p5 = pneg %p324_p4  ;;  %s1952_s29 = smov 32  }
   0x8   : > { %397 = sbr.rel (%p324_p4) target bundleno = 854 (0x356), region = 60 }
   0x9   : > { %p1787_p6 = pnand %p1790_p3, %p1786_p5 }
   0xb   : > { %1789 = dma.hbm_to_vmem [thread:$0]  (!%p1787_p6), %s338_s24, 8192, %s340_s27, [#allocation8], %s1951_s28, %s1951_s28, %s1952_s29  }
   0xd   : > { %1939 = dma.done.wait (%p1790_p3), [#allocation8], 8192  }
   0xe   : > { %1941 = vsyncadd (%p1790_p3), [#allocation8], 4294959104  ;;  %s1683_s30 = sshll.u32 %s2035_s25, 2 }
   0xf   : > { %p451_p7 = scmp.lt.s32.totalorder %s1683_s30, 11 }
  0x10   : > { %478 = sbr.rel (%p1679_p2) target bundleno = 230 (0xe6), region = 68 }
  0x11   : > { %s2532_s30 = smov (!%p451_p7, %s1683_s30), 11 }
  0x12   : > { %s1684_s13 = sshll.u32 %s2532_s30, 3 }
  0x13   : > { %s2045_s16 = scalar_lea.vmem %s2491_s1, %s1684_s13  ;;  %s2050_s19 = scalar_lea.vmem %s2492_s2, %s1684_s13 }
  0x14   : > { %s2055_s23 = scalar_lea.vmem %s2493_s3, %s1684_s13  ;;  %s2060_s27 = scalar_lea.vmem %s2501_s11, %s1684_s13 }
  0x15   : > { %v547_v0 = vld [vmem:[#allocation7 + $0x1f0] sm:$0xff]  ;;  %v548_v2 = vld [vmem:[#allocation7 + $0x1f8] sm:$0xff]  ;;  %v545_v4 = vld [vmem:[#allocation7 + $0x1e0] sm:$0xff] }
  0x16   : > { %v543_v1 = vld [vmem:[#allocation7 + $0x1d0] sm:$0xff]  ;;  %629 = vmatpush.msra.mxu2 %v547_v0  ;;  %664 = vmatpush.msra.mxu3 %v548_v2  ;;  %v544_v3 = vld [vmem:[#allocation7 + $0x1d8] sm:$0xff]  ;;  %v546_v6 = vld [vmem:[#allocation7 + $0x1e8] sm:$0xff] }
  0x17   : > { %v539_v5 = vld [vmem:[#allocation7 + $0x1b0] sm:$0xff]  ;;  %559 = vmatpush.msra.mxu0 %v545_v4  ;;  %v540_v7 = vld [vmem:[#allocation7 + $0x1b8] sm:$0xff]  ;;  %v541_v8 = vld [vmem:[#allocation7 + $0x1c0] sm:$0xff]  ;;  %594 = vmatpush.msra.mxu1 %v546_v6  ;;  %v1953_v6 = vmov 0  }
  0x18   : > { %630 = vmatpush.msra.mxu2 %v543_v1  ;;  %665 = vmatpush.msra.mxu3 %v544_v3  ;;  %v542_v9 = vld [vmem:[#allocation7 + $0x1c8] sm:$0xff]  ;;  %v535_v10 = vld [vmem:[#allocation7 + $0x190] sm:$0xff]  ;;  %v536_v11 = vld [vmem:[#allocation7 + $0x198] sm:$0xff]  ;;  %699 = vst [vmem:[#allocation2] sm:$0xff] %v1953_v6 }
  0x19   : > { %560 = vmatpush.msra.mxu0 %v541_v8  ;;  %v537_v12 = vld [vmem:[#allocation7 + $0x1a0] sm:$0xff]  ;;  %v538_v13 = vld [vmem:[#allocation7 + $0x1a8] sm:$0xff]  ;;  %595 = vmatpush.msra.mxu1 %v542_v9  ;;  %v531_v15 = vld [vmem:[#allocation7 + $0x170] sm:$0xff]  ;;  %700 = vst [vmem:[#allocation2 + $0x8] sm:$0xff] %v1953_v6 }
  0x1a   : > { %631 = vmatpush.msra.mxu2 %v539_v5  ;;  %666 = vmatpush.msra.mxu3 %v540_v7  ;;  %v533_v14 = vld [vmem:[#allocation7 + $0x180] sm:$0xff]  ;;  %v532_v16 = vld [vmem:[#allocation7 + $0x178] sm:$0xff]  ;;  %v534_v17 = vld [vmem:[#allocation7 + $0x188] sm:$0xff]  ;;  %701 = vst [vmem:[#allocation2 + $0x10] sm:$0xff] %v1953_v6 }
  0x1b   : > { %561 = vmatpush.msra.mxu0 %v537_v12  ;;  %v529_v18 = vld [vmem:[#allocation7 + $0x160] sm:$0xff]  ;;  %596 = vmatpush.msra.mxu1 %v538_v13  ;;  %v527_v19 = vld [vmem:[#allocation7 + $0x150] sm:$0xff]  ;;  %v528_v20 = vld [vmem:[#allocation7 + $0x158] sm:$0xff]  ;;  %702 = vst [vmem:[#allocation2 + $0x18] sm:$0xff] %v1953_v6 }
  0x1c   : > { %632 = vmatpush.msra.mxu2 %v535_v10  ;;  %667 = vmatpush.msra.mxu3 %v536_v11  ;;  %v530_v21 = vld [vmem:[#allocation7 + $0x168] sm:$0xff]  ;;  %v525_v22 = vld [vmem:[#allocation7 + $0x140] sm:$0xff]  ;;  %v523_v23 = vld [vmem:[#allocation7 + $0x130] sm:$0xff]  ;;  %703 = vst [vmem:[#allocation2 + $0x20] sm:$0xff] %v1953_v6 }
  0x1d   : > { %562 = vmatpush.msra.mxu0 %v533_v14  ;;  %597 = vmatpush.msra.mxu1 %v534_v17  ;;  %v524_v24 = vld [vmem:[#allocation7 + $0x138] sm:$0xff]  ;;  %v526_v25 = vld [vmem:[#allocation7 + $0x148] sm:$0xff]  ;;  %v521_v26 = vld [vmem:[#allocation7 + $0x120] sm:$0xff]  ;;  %704 = vst [vmem:[#allocation2 + $0x28] sm:$0xff] %v1953_v6 }
  0x1e   : > { %633 = vmatpush.msra.mxu2 %v531_v15  ;;  %668 = vmatpush.msra.mxu3 %v532_v16  ;;  %v519_v27 = vld [vmem:[#allocation7 + $0x110] sm:$0xff]  ;;  %v520_v28 = vld [vmem:[#allocation7 + $0x118] sm:$0xff]  ;;  %v522_v29 = vld [vmem:[#allocation7 + $0x128] sm:$0xff]  ;;  %705 = vst [vmem:[#allocation2 + $0x30] sm:$0xff] %v1953_v6 }
  0x1f   : > { %563 = vmatpush.msra.mxu0 %v529_v18  ;;  %598 = vmatpush.msra.mxu1 %v530_v21  ;;  %v517_v30 = vld [vmem:[#allocation7 + $0x100] sm:$0xff]  ;;  %v515_v31 = vld [vmem:[#allocation7 + $0xf0] sm:$0xff]  ;;  %v516_v32 = vld [vmem:[#allocation7 + $0xf8] sm:$0xff]  ;;  %706 = vst [vmem:[#allocation2 + $0x38] sm:$0xff] %v1953_v6 }
  0x20   : > { %634 = vmatpush.msra.mxu2 %v527_v19  ;;  %669 = vmatpush.msra.mxu3 %v528_v20  ;;  %v518_v33 = vld [vmem:[#allocation7 + $0x108] sm:$0xff]  ;;  %v513_v34 = vld [vmem:[#allocation7 + $0xe0] sm:$0xff]  ;;  %v511_v35 = vld [vmem:[#allocation7 + $0xd0] sm:$0xff]  ;;  %707 = vst [vmem:[#allocation2 + $0x40] sm:$0xff] %v1953_v6 }
  0x21   : > { %564 = vmatpush.msra.mxu0 %v525_v22  ;;  %599 = vmatpush.msra.mxu1 %v526_v25  ;;  %v512_v36 = vld [vmem:[#allocation7 + $0xd8] sm:$0xff]  ;;  %v514_v37 = vld [vmem:[#allocation7 + $0xe8] sm:$0xff]  ;;  %v509_v38 = vld [vmem:[#allocation7 + $0xc0] sm:$0xff]  ;;  %708 = vst [vmem:[#allocation2 + $0x48] sm:$0xff] %v1953_v6 }
  0x22   : > { %635 = vmatpush.msra.mxu2 %v523_v23  ;;  %670 = vmatpush.msra.mxu3 %v524_v24  ;;  %v507_v39 = vld [vmem:[#allocation7 + $0xb0] sm:$0xff]  ;;  %v508_v40 = vld [vmem:[#allocation7 + $0xb8] sm:$0xff]  ;;  %v510_v41 = vld [vmem:[#allocation7 + $0xc8] sm:$0xff]  ;;  %709 = vst [vmem:[#allocation2 + $0x50] sm:$0xff] %v1953_v6 }
  0x23   : > { %565 = vmatpush.msra.mxu0 %v521_v26  ;;  %600 = vmatpush.msra.mxu1 %v522_v29  ;;  %v505_v42 = vld [vmem:[#allocation7 + $0xa0] sm:$0xff]  ;;  %v503_v43 = vld [vmem:[#allocation7 + $0x90] sm:$0xff]  ;;  %v504_v44 = vld [vmem:[#allocation7 + $0x98] sm:$0xff]  ;;  %710 = vst [vmem:[#allocation2 + $0x58] sm:$0xff] %v1953_v6 }
  0x24   : > { %636 = vmatpush.msra.mxu2 %v519_v27  ;;  %671 = vmatpush.msra.mxu3 %v520_v28  ;;  %v506_v45 = vld [vmem:[#allocation7 + $0xa8] sm:$0xff]  ;;  %v501_v46 = vld [vmem:[#allocation7 + $0x80] sm:$0xff]  ;;  %v499_v47 = vld [vmem:[#allocation7 + $0x70] sm:$0xff] }
  0x25   : > { %566 = vmatpush.msra.mxu0 %v517_v30  ;;  %601 = vmatpush.msra.mxu1 %v518_v33  ;;  %v500_v48 = vld [vmem:[#allocation7 + $0x78] sm:$0xff]  ;;  %v502_v49 = vld [vmem:[#allocation7 + $0x88] sm:$0xff]  ;;  %v497_v50 = vld [vmem:[#allocation7 + $0x60] sm:$0xff] }
  0x26   : > { %637 = vmatpush.msra.mxu2 %v515_v31  ;;  %672 = vmatpush.msra.mxu3 %v516_v32  ;;  %v495_v51 = vld [vmem:[#allocation7 + $0x50] sm:$0xff]  ;;  %v496_v52 = vld [vmem:[#allocation7 + $0x58] sm:$0xff]  ;;  %v498_v53 = vld [vmem:[#allocation7 + $0x68] sm:$0xff] }
  0x27   : > { %567 = vmatpush.msra.mxu0 %v513_v34  ;;  %602 = vmatpush.msra.mxu1 %v514_v37  ;;  %v493_v54 = vld [vmem:[#allocation7 + $0x40] sm:$0xff]  ;;  %v491_v55 = vld [vmem:[#allocation7 + $0x30] sm:$0xff]  ;;  %v492_v56 = vld [vmem:[#allocation7 + $0x38] sm:$0xff]  ;;  %v1954_v37 = vmov 0.0  }
  0x28   : > { %638 = vmatpush.msra.mxu2 %v511_v35  ;;  %673 = vmatpush.msra.mxu3 %v512_v36  ;;  %v494_v57 = vld [vmem:[#allocation7 + $0x48] sm:$0xff]  ;;  %v489_v58 = vld [vmem:[#allocation7 + $0x20] sm:$0xff]  ;;  %v487_v59 = vld [vmem:[#allocation7 + $0x10] sm:$0xff]  ;;  %753 = vst [vmem:[#allocation4 + $0x40] sm:$0xff] %v1954_v37 }
  0x29   : > { %568 = vmatpush.msra.mxu0 %v509_v38  ;;  %603 = vmatpush.msra.mxu1 %v510_v41  ;;  %v488_v60 = vld [vmem:[#allocation7 + $0x18] sm:$0xff]  ;;  %v479_v61 = vld [vmem:[%s2490_s0] sm:$0xff]  ;;  %v485_v63 = vld [vmem:[#allocation7] sm:$0xff]  ;;  %754 = vst [vmem:[#allocation4 + $0x8] sm:$0xff] %v1954_v37 }
  0x2a   : > { %639 = vmatpush.msra.mxu2 %v507_v39  ;;  %674 = vmatpush.msra.mxu3 %v508_v40  ;;  %v490_v62 = vld [vmem:[#allocation7 + $0x28] sm:$0xff]  ;;  %v480_v1 = vld [vmem:[%s2490_s0 + $0x8] sm:$0xff]  ;;  %v481_v2 = vld [vmem:[%s2490_s0 + $0x10] sm:$0xff]  ;;  %755 = vst [vmem:[#allocation4 + $0x20] sm:$0xff] %v1954_v37 }
  0x2b   : > { %569 = vmatpush.msra.mxu0 %v505_v42  ;;  %604 = vmatpush.msra.mxu1 %v506_v45  ;;  %v486_v0 = vld [vmem:[#allocation7 + $0x8] sm:$0xff]  ;;  %v484_v5 = vld [vmem:[%s2490_s0 + $0x28] sm:$0xff]  ;;  %756 = vst [vmem:[#allocation4 + $0x58] sm:$0xff] %v1954_v37 }
  0x2c   : > { %640 = vmatpush.msra.mxu2 %v503_v43  ;;  %675 = vmatpush.msra.mxu3 %v504_v44  ;;  %v482_v3 = vld [vmem:[%s2490_s0 + $0x18] sm:$0xff]  ;;  %v483_v4 = vld [vmem:[%s2490_s0 + $0x20] sm:$0xff]  ;;  %757 = vst [vmem:[#allocation4 + $0x28] sm:$0xff] %v1954_v37 }
  0x2d   : > { %570 = vmatpush.msra.mxu0 %v501_v46  ;;  %605 = vmatpush.msra.mxu1 %v502_v49  ;;  %v549_v7 = vld [vmem:[%s2495_s5] sm:$0xf]  ;;  %758 = vst [vmem:[#allocation4 + $0x30] sm:$0xff] %v1954_v37 }
  0x2e   : > { %641 = vmatpush.msra.mxu2 %v499_v47  ;;  %676 = vmatpush.msra.mxu3 %v500_v48  ;;  %v2085_v8 = vperm.slane %v549_v7, 0  ;;  %v2087_v9 = vperm.slane %v549_v7, 1  ;;  %v2090_v12 = vperm.slane %v549_v7, 2  ;;  %v2092_v13 = vperm.slane %v549_v7, 3  ;;  %759 = vst [vmem:[#allocation4 + $0x10] sm:$0xff] %v1954_v37 }
  0x2f   : > { %571 = vmatpush.msra.mxu0 %v497_v50  ;;  %606 = vmatpush.msra.mxu1 %v498_v53  ;;  %760 = vst [vmem:[#allocation4 + $0x38] sm:$0xff] %v1954_v37 }
  0x30   : > { %642 = vmatpush.msra.mxu2 %v495_v51  ;;  %677 = vmatpush.msra.mxu3 %v496_v52  ;;  %761 = vst [vmem:[#allocation4 + $0x48] sm:$0xff] %v1954_v37 }
  0x31   : > { %572 = vmatpush.msra.mxu0 %v493_v54  ;;  %607 = vmatpush.msra.mxu1 %v494_v57  ;;  %762 = vst [vmem:[#allocation4 + $0x50] sm:$0xff] %v1954_v37 }
  0x32   : > { %643 = vmatpush.msra.mxu2 %v491_v55  ;;  %678 = vmatpush.msra.mxu3 %v492_v56  ;;  %763 = vst [vmem:[#allocation4] sm:$0xff] %v1954_v37 }
  0x33   : > { %573 = vmatpush.msra.mxu0 %v489_v58  ;;  %608 = vmatpush.msra.mxu1 %v490_v62  ;;  %764 = vst [vmem:[#allocation4 + $0x18] sm:$0xff] %v1954_v37 }
  0x34   : > { %644 = vmatpush.msra.mxu2 %v487_v59  ;;  %679 = vmatpush.msra.mxu3 %v488_v60  ;;  %765 = vst [vmem:[#allocation5] sm:$0x1] %v1954_v37 }
  0x35   : > { %645 = vmatmul.f32.vlgmr.msra.gmra.mxu2 %v479_v61  ;;  %680 = vmatmul.f32.vlgmr.msra.gmra.mxu3 %v479_v61  ;;  %766 = vst [vmem:[#allocation6] sm:$0x1] %v1954_v37 }
  0x36   : > { %574 = vmatpush.msra.mxu0 %v485_v63  ;;  %609 = vmatpush.msra.mxu1 %v486_v0 }
  0x37   : > { %575 = vmatmul.f32.vlgmr.msra.gmra.mxu0 %v479_v61  ;;  %610 = vmatmul.f32.vlgmr.msra.gmra.mxu1 %v479_v61 }
  0x3d   : > { %648 = vmatmul.f32.gmra.mxu2 %v480_v1  ;;  %683 = vmatmul.f32.gmra.mxu3 %v480_v1 }
  0x3f   : > { %578 = vmatmul.f32.gmra.mxu0 %v480_v1  ;;  %613 = vmatmul.f32.gmra.mxu1 %v480_v1 }
  0x45   : > { %651 = vmatmul.f32.gmra.mxu2 %v481_v2  ;;  %686 = vmatmul.f32.gmra.mxu3 %v481_v2 }
  0x47   : > { %581 = vmatmul.f32.gmra.mxu0 %v481_v2  ;;  %616 = vmatmul.f32.gmra.mxu1 %v481_v2 }
  0x4d   : > { %654 = vmatmul.f32.gmra.mxu2 %v482_v3  ;;  %689 = vmatmul.f32.gmra.mxu3 %v482_v3 }
  0x4f   : > { %584 = vmatmul.f32.gmra.mxu0 %v482_v3  ;;  %619 = vmatmul.f32.gmra.mxu1 %v482_v3 }
  0x55   : > { %657 = vmatmul.f32.gmra.mxu2 %v483_v4  ;;  %692 = vmatmul.f32.gmra.mxu3 %v483_v4 }
  0x57   : > { %587 = vmatmul.f32.gmra.mxu0 %v483_v4  ;;  %622 = vmatmul.f32.gmra.mxu1 %v483_v4 }
  0x5d   : > { %660 = vmatmul.f32.gmra.mxu2 %v484_v5  ;;  %695 = vmatmul.f32.gmra.mxu3 %v484_v5 }
  0x5f   : > { %590 = vmatmul.f32.gmra.mxu0 %v484_v5  ;;  %625 = vmatmul.f32.gmra.mxu1 %v484_v5 }
  0xb4   : > { %v576_v10 = vpop.f32.mrf.mxu0  ;;  %v611_v14 = vpop.f32.mrf.mxu1 }
  0xb5   : > { %v577_v11 = vadd.f32 %v576_v10, %v2085_v8  ;;  %v612_v16 = vadd.f32 %v611_v14, %v2087_v9 }
  0xb7   : > { %v711_v15 = vpack.c.bf16 %v577_v11, %v577_v11  ;;  %v735_v19 = vpack.c.bf16 %v612_v16, %v612_v16 }
  0xb8   : > { %v646_v17 = vpop.f32.mrf.mxu2  ;;  %v681_v18 = vpop.f32.mrf.mxu3 }
  0xb9   : > { %717 = vst [vmem:[#allocation2] sm:$0xf] %v711_v15  ;;  %v647_v20 = vadd.f32 %v646_v17, %v2090_v12  ;;  %v682_v21 = vadd.f32 %v681_v18, %v2092_v13 }
  0xba   : > { %741 = vst [vmem:[#allocation2 + $0x30] sm:$0xf] %v735_v19 }
  0xbb   : > { %v723_v22 = vpack.c.bf16 %v647_v20, %v647_v20  ;;  %747 = vst [vmem:[#allocation3 + $0x28] sm:$0xff] %v682_v21 }
  0xbc   : > { %v579_v23 = vpop.f32.mrf.mxu0  ;;  %v614_v25 = vpop.f32.mrf.mxu1 }
  0xbd   : > { %729 = vst [vmem:[#allocation2 + $0x4] sm:$0xf] %v723_v22  ;;  %v580_v24 = vadd.f32 %v579_v23, %v2085_v8  ;;  %v615_v27 = vadd.f32 %v614_v25, %v2087_v9 }
  0xbf   : > { %v712_v26 = vpack.c.bf16 %v580_v24, %v580_v24  ;;  %v736_v30 = vpack.c.bf16 %v615_v27, %v615_v27 }
  0xc0   : > { %v649_v28 = vpop.f32.mrf.mxu2  ;;  %v684_v29 = vpop.f32.mrf.mxu3 }
  0xc1   : > { %718 = vst [vmem:[#allocation2 + $0x8] sm:$0xf] %v712_v26  ;;  %v650_v31 = vadd.f32 %v649_v28, %v2090_v12  ;;  %v685_v32 = vadd.f32 %v684_v29, %v2092_v13 }
  0xc2   : > { %742 = vst [vmem:[#allocation2 + $0x38] sm:$0xf] %v736_v30 }
  0xc3   : > { %v724_v33 = vpack.c.bf16 %v650_v31, %v650_v31  ;;  %748 = vst [vmem:[#allocation3 + $0x10] sm:$0xff] %v685_v32 }
  0xc4   : > { %v582_v34 = vpop.f32.mrf.mxu0  ;;  %v617_v36 = vpop.f32.mrf.mxu1 }
  0xc5   : > { %730 = vst [vmem:[#allocation2 + $0xc] sm:$0xf] %v724_v33  ;;  %v583_v35 = vadd.f32 %v582_v34, %v2085_v8  ;;  %v618_v39 = vadd.f32 %v617_v36, %v2087_v9 }
  0xc7   : > { %v713_v38 = vpack.c.bf16 %v583_v35, %v583_v35  ;;  %v737_v42 = vpack.c.bf16 %v618_v39, %v618_v39 }
  0xc8   : > { %v652_v40 = vpop.f32.mrf.mxu2  ;;  %v687_v41 = vpop.f32.mrf.mxu3 }
  0xc9   : > { %719 = vst [vmem:[#allocation2 + $0x10] sm:$0xf] %v713_v38  ;;  %v653_v43 = vadd.f32 %v652_v40, %v2090_v12  ;;  %v688_v44 = vadd.f32 %v687_v41, %v2092_v13 }
  0xca   : > { %743 = vst [vmem:[#allocation2 + $0x40] sm:$0xf] %v737_v42 }
  0xcb   : > { %v725_v45 = vpack.c.bf16 %v653_v43, %v653_v43  ;;  %749 = vst [vmem:[#allocation3 + $0x8] sm:$0xff] %v688_v44 }
  0xcc   : > { %v585_v46 = vpop.f32.mrf.mxu0  ;;  %v620_v48 = vpop.f32.mrf.mxu1 }
  0xcd   : > { %731 = vst [vmem:[#allocation2 + $0x14] sm:$0xf] %v725_v45  ;;  %v586_v47 = vadd.f32 %v585_v46, %v2085_v8  ;;  %v621_v50 = vadd.f32 %v620_v48, %v2087_v9 }
  0xcf   : > { %v714_v49 = vpack.c.bf16 %v586_v47, %v586_v47  ;;  %v738_v53 = vpack.c.bf16 %v621_v50, %v621_v50 }
  0xd0   : > { %v655_v51 = vpop.f32.mrf.mxu2  ;;  %v690_v52 = vpop.f32.mrf.mxu3 }
  0xd1   : > { %720 = vst [vmem:[#allocation2 + $0x18] sm:$0xf] %v714_v49  ;;  %v656_v54 = vadd.f32 %v655_v51, %v2090_v12  ;;  %v691_v55 = vadd.f32 %v690_v52, %v2092_v13 }
  0xd2   : > { %744 = vst [vmem:[#allocation2 + $0x48] sm:$0xf] %v738_v53 }
  0xd3   : > { %v726_v56 = vpack.c.bf16 %v656_v54, %v656_v54  ;;  %750 = vst [vmem:[#allocation3] sm:$0xff] %v691_v55 }
  0xd4   : > { %v588_v57 = vpop.f32.mrf.mxu0  ;;  %v623_v59 = vpop.f32.mrf.mxu1 }
  0xd5   : > { %732 = vst [vmem:[#allocation2 + $0x1c] sm:$0xf] %v726_v56  ;;  %v589_v58 = vadd.f32 %v588_v57, %v2085_v8  ;;  %v624_v61 = vadd.f32 %v623_v59, %v2087_v9 }
  0xd7   : > { %v715_v60 = vpack.c.bf16 %v589_v58, %v589_v58  ;;  %v739_v0 = vpack.c.bf16 %v624_v61, %v624_v61 }
  0xd8   : > { %v658_v62 = vpop.f32.mrf.mxu2  ;;  %v693_v63 = vpop.f32.mrf.mxu3 }
  0xd9   : > { %721 = vst [vmem:[#allocation2 + $0x20] sm:$0xf] %v715_v60  ;;  %v659_v1 = vadd.f32 %v658_v62, %v2090_v12  ;;  %v694_v2 = vadd.f32 %v693_v63, %v2092_v13 }
  0xda   : > { %745 = vst [vmem:[#allocation2 + $0x50] sm:$0xf] %v739_v0 }
  0xdb   : > { %v727_v3 = vpack.c.bf16 %v659_v1, %v659_v1  ;;  %751 = vst [vmem:[#allocation3 + $0x18] sm:$0xff] %v694_v2 }
  0xdc   : > { %v591_v4 = vpop.f32.mrf.mxu0  ;;  %v626_v6 = vpop.f32.mrf.mxu1 }
  0xdd   : > { %733 = vst [vmem:[#allocation2 + $0x24] sm:$0xf] %v727_v3  ;;  %v592_v5 = vadd.f32 %v591_v4, %v2085_v8  ;;  %v627_v10 = vadd.f32 %v626_v6, %v2087_v9 }
  0xdf   : > { %v716_v7 = vpack.c.bf16 %v592_v5, %v592_v5  ;;  %v740_v15 = vpack.c.bf16 %v627_v10, %v627_v10 }
  0xe0   : > { %v661_v11 = vpop.f32.mrf.mxu2  ;;  %v696_v14 = vpop.f32.mrf.mxu3 }
  0xe1   : > { %722 = vst [vmem:[#allocation2 + $0x28] sm:$0xf] %v716_v7  ;;  %v662_v16 = vadd.f32 %v661_v11, %v2090_v12  ;;  %v697_v17 = vadd.f32 %v696_v14, %v2092_v13 }
  0xe2   : > { %746 = vst [vmem:[#allocation2 + $0x58] sm:$0xf] %v740_v15 }
  0xe3   : > { %v728_v18 = vpack.c.bf16 %v662_v16, %v662_v16  ;;  %752 = vst [vmem:[#allocation3 + $0x20] sm:$0xff] %v697_v17 }
  0xe5   : > { %734 = vst [vmem:[#allocation2 + $0x2c] sm:$0xf] %v728_v18 }
  0xe6 PF: > { %v820_v8 = vld [vmem:[%s2050_s19] sm:$0xff]  ;;  %v1955_v19 = vmov 0   ;;  %v822_v12 = vld [vmem:[%s2050_s19 + $0x10] sm:$0xff]  ;;  %v786_v13 = vld [vmem:[%s2496_s6 + $0x78] sm:$0xff]  ;;  %v828_v11 = vlaneseq  ;;  %vm948_vm6 = vcmask 785408   ;;  %s1748_s18 = sshll.u32 %s2035_s25, 5 }
  0xe7   : > { %v824_v9 = vld [vmem:[%s2055_s23] sm:$0xff]  ;;  %1813 = vset.pattern.permute.xlu0 %v1955_v19  ;;  %1814 = vset.pattern.permute.xlu1 %v1955_v19  ;;  %v785_v21 = vld [vmem:[%s2496_s6 + $0x70] sm:$0xff]  ;;  %v825_v23 = vld [vmem:[%s2055_s23 + $0x8] sm:$0xff]  ;;  %p1755_p8 = scmp.ne.s32.totalorder %s2035_s25, 2 }
  0xe8   : > { %v846_v20 = vadd.s32 48, %v824_v9  ;;  %831 = vperm.xlu0 %1813, %v820_v8   ;;  %1815 = vset.pattern.permute.xlu2 %v1955_v19  ;;  %v1734_v22 = vld [vmem:[#allocation2 + $0x50] sm:$0xf]  ;;  %v784_v25 = vld [vmem:[%s2496_s6 + $0x68] sm:$0xff]  ;;  %v847_v28 = vadd.s32 48, %v825_v23  ;;  %v823_v29 = vld [vmem:[%s2050_s19 + $0x18] sm:$0xff] }
  0xe9   : > { %837 = vperm.xlu2 %1815, %v822_v12   ;;  %791 = vmatpush.msra.mxu0 %v786_v13  ;;  %v1777_v24 = vld [vmem:[#allocation2 + $0x54] sm:$0xf0]  ;;  %v821_v27 = vld [vmem:[%s2050_s19 + $0x8] sm:$0xff]  ;;  %v826_v30 = vld [vmem:[%s2055_s23 + $0x10] sm:$0xff] }
  0xea   : > { %851 = vperm.xlu1 %1814, %v846_v20   ;;  %v1735_v26 = vor.u32 %v1777_v24, %v1734_v22  ;;  %v827_v31 = vld [vmem:[%s2055_s23 + $0x18] sm:$0xff]  ;;  %v848_v32 = vadd.s32 48, %v826_v30  ;;  %v783_v34 = vld [vmem:[%s2496_s6 + $0x60] sm:$0xff]  ;;  %v1775_v37 = vld [vmem:[#allocation2 + $0x44] sm:$0xf0]  ;;  %v829_v20 = vand.u32 127, %v828_v11 }
  0xeb   : > { %792 = vmatpush.msra.mxu0 %v785_v21  ;;  %v849_v33 = vadd.s32 48, %v827_v31  ;;  %v782_v35 = vld [vmem:[%s2496_s6 + $0x58] sm:$0xff]  ;;  %v1726_v36 = vld [vmem:[#allocation2 + $0x40] sm:$0xf]  ;;  %v1718_v38 = vld [vmem:[#allocation2 + $0x30] sm:$0xf] }
  0xec   : > { %957 = vmatpush.bf16.msra.mxu2 %v1735_v26  ;;  %v1727_v39 = vor.u32 %v1775_v37, %v1726_v36  ;;  %v781_v40 = vld [vmem:[%s2496_s6 + $0x50] sm:$0xff]  ;;  %v1773_v41 = vld [vmem:[#allocation2 + $0x34] sm:$0xf0]  ;;  %v780_v43 = vld [vmem:[%s2496_s6 + $0x48] sm:$0xff] }
  0xed   : > { %793 = vmatpush.msra.mxu0 %v784_v25  ;;  %v1719_v42 = vor.u32 %v1773_v41, %v1718_v38  ;;  %v779_v44 = vld [vmem:[%s2496_s6 + $0x40] sm:$0xff]  ;;  %v1771_v46 = vld [vmem:[#allocation2 + $0x24] sm:$0xf0]  ;;  %v778_v48 = vld [vmem:[%s2496_s6 + $0x38] sm:$0xff] }
  0xee   : > { %v1710_v45 = vld [vmem:[#allocation2 + $0x20] sm:$0xf]  ;;  %v777_v49 = vld [vmem:[%s2496_s6 + $0x30] sm:$0xff]  ;;  %v1769_v51 = vld [vmem:[#allocation2 + $0x14] sm:$0xf0] }
  0xef   : > { %794 = vmatpush.msra.mxu0 %v783_v34  ;;  %v1711_v47 = vor.u32 %v1771_v46, %v1710_v45  ;;  %v1702_v50 = vld [vmem:[#allocation2 + $0x10] sm:$0xf]  ;;  %v776_v53 = vld [vmem:[%s2496_s6 + $0x28] sm:$0xff]  ;;  %v775_v54 = vld [vmem:[%s2496_s6 + $0x20] sm:$0xff] }
  0xf0   : > { %834 = vperm.xlu0 %1813, %v821_v27   ;;  %958 = vmatpush.bf16.msra.mxu2 %v1727_v39  ;;  %v1703_v52 = vor.u32 %v1769_v51, %v1702_v50  ;;  %v1694_v55 = vld [vmem:[#allocation2] sm:$0xf]  ;;  %v1767_v56 = vld [vmem:[#allocation2 + $0x4] sm:$0xf0]  ;;  %v774_v58 = vld [vmem:[%s2496_s6 + $0x18] sm:$0xff]  ;;  %v1956_v27 = vmov 0.0  }
  0xf1   : > { %840 = vperm.xlu2 %1815, %v823_v29   ;;  %795 = vmatpush.msra.mxu0 %v782_v35  ;;  %v1695_v57 = vor.u32 %v1767_v56, %v1694_v55  ;;  %v773_v59 = vld [vmem:[%s2496_s6 + $0x10] sm:$0xff]  ;;  %v1736_v61 = vld [vmem:[#allocation2 + $0x58] sm:$0xf0]  ;;  %v772_v62 = vld [vmem:[%s2496_s6 + $0x8] sm:$0xff] }
  0xf2   : > { %854 = vperm.xlu1 %1814, %v847_v28   ;;  %v1776_v60 = vld [vmem:[#allocation2 + $0x54] sm:$0xf]  ;;  %v771_v0 = vld [vmem:[%s2496_s6] sm:$0xff]  ;;  %v1728_v3 = vld [vmem:[#allocation2 + $0x48] sm:$0xf0] }
  0xf3   : > { %796 = vmatpush.msra.mxu0 %v781_v40  ;;  %v1739_v63 = vor.u32 %v1776_v60, %v1736_v61  ;;  %v767_v1 = vld [vmem:[%s2045_s16] sm:$0xff]  ;;  %v768_v5 = vld [vmem:[%s2045_s16 + $0x8] sm:$0xff]  ;;  %v1772_v6 = vld [vmem:[#allocation2 + $0x34] sm:$0xf]  ;;  %v1079_v60 = vstv %s1748_s18 }
  0xf4   : > { %959 = vmatpush.bf16.msra.mxu2 %v1719_v42  ;;  %v1774_v2 = vld [vmem:[#allocation2 + $0x44] sm:$0xf]  ;;  %v1720_v7 = vld [vmem:[#allocation2 + $0x38] sm:$0xf0]  ;;  %v1712_v15 = vld [vmem:[#allocation2 + $0x28] sm:$0xf0] }
  0xf5   : > { %797 = vmatpush.msra.mxu0 %v780_v43  ;;  %v1731_v4 = vor.u32 %v1774_v2, %v1728_v3  ;;  %v1723_v10 = vor.u32 %v1772_v6, %v1720_v7  ;;  %v1770_v14 = vld [vmem:[#allocation2 + $0x24] sm:$0xf]  ;;  %v769_v18 = vld [vmem:[%s2045_s16 + $0x10] sm:$0xff]  ;;  %v1696_v22 = vld [vmem:[#allocation2 + $0x8] sm:$0xf0] }
  0xf6   : > { %v1715_v17 = vor.u32 %v1770_v14, %v1712_v15  ;;  %v1768_v8 = vld [vmem:[#allocation2 + $0x14] sm:$0xf]  ;;  %v1766_v21 = vld [vmem:[#allocation2 + $0x4] sm:$0xf]  ;;  %v770_v25 = vld [vmem:[%s2045_s16 + $0x18] sm:$0xff] }
  0xf7   : > { %798 = vmatpush.msra.mxu0 %v779_v44 }
  0xf8   : > { %857 = vperm.xlu0 %1813, %v848_v32   ;;  %960 = vmatpush.bf16.msra.mxu2 %v1711_v47 }
  0xf9   : > { %1093 = vperm.xlu2 %1815, %v824_v9   ;;  %799 = vmatpush.msra.mxu0 %v778_v48  ;;  %v1704_v9 = vld [vmem:[#allocation2 + $0x18] sm:$0xf0]  ;;  %v1816_v48 = vld [vmem:[%s2497_s7] ss:$0 sm:$0xff] }
  0xfa   : > { %860 = vperm.xlu1 %1814, %v849_v33   ;;  %v1707_v13 = vor.u32 %v1768_v8, %v1704_v9 }
  0xfb   : > { %800 = vmatpush.msra.mxu0 %v777_v49 }
  0xfc   : > { %961 = vmatpush.bf16.msra.mxu2 %v1703_v52 }
  0xfd   : > { %801 = vmatpush.msra.mxu0 %v776_v53 }
  0xff   : > { %802 = vmatpush.msra.mxu0 %v775_v54  ;;  %v1075_v54 = vshrl.u32 %v828_v11, 7 }
 0x100   : > { %1096 = vperm.xlu0 %1813, %v825_v23   ;;  %962 = vmatpush.bf16.msra.mxu2 %v1695_v57  ;;  %v1699_v23 = vor.u32 %v1766_v21, %v1696_v22 }
 0x101   : > { %1102 = vperm.xlu2 %1815, %v827_v31   ;;  %803 = vmatpush.msra.mxu0 %v774_v58  ;;  %v1076_v57 = vadd.s32 8, %v1075_v54  ;;  %v1077_v61 = vadd.s32 16, %v1075_v54  ;;  %v1078_v2 = vadd.s32 24, %v1075_v54 }
 0x102   : > { %1099 = vperm.xlu1 %1814, %v826_v30  }
 0x103   : > { %804 = vmatpush.msra.mxu0 %v773_v59  ;;  %v1082_v3 = vadd.s32 %v1079_v60, %v1077_v61  ;;  %v1083_v6 = vadd.s32 %v1079_v60, %v1078_v2 }
 0x104   : > { %976 = vmatpush.bf16.msrb.mxu2 %v1739_v63  ;;  %v1081_v63 = vadd.s32 %v1079_v60, %v1076_v57 }
 0x105   : > { %805 = vmatpush.msra.mxu0 %v772_v62 }
 0x107   : > { %806 = vmatpush.msra.mxu0 %v771_v0 }
 0x108   : > { %807 = vmatmul.f32.vlgmr.msra.gmra.mxu0 %v767_v1  ;;  %977 = vmatpush.bf16.msrb.mxu2 %v1731_v4  ;;  %v1080_v1 = vadd.s32 %v1079_v60, %v1075_v54 }
 0x10c   : > { %978 = vmatpush.bf16.msrb.mxu2 %v1723_v10 }
 0x110   : > { %810 = vmatmul.f32.gmra.mxu0 %v768_v5  ;;  %979 = vmatpush.bf16.msrb.mxu2 %v1715_v17 }
 0x114   : > { %980 = vmatpush.bf16.msrb.mxu2 %v1707_v13 }
 0x118   : > { %813 = vmatmul.f32.gmra.mxu0 %v769_v18  ;;  %981 = vmatpush.bf16.msrb.mxu2 %v1699_v23 }
 0x120   : > { %816 = vmatmul.f32.gmra.mxu0 %v770_v25 }
 0x143   : > { %v838_v12 = vpop.permute.xlu2 %837 }
 0x144   : > { %vm844_vm7 = vcmp.eq.s32.totalorder %v838_v12, %v829_v20 }
 0x14b   : > { %v841_v29 = vpop.permute.xlu2 %840 }
 0x14c   : > { %vm845_vm9 = vcmp.eq.s32.totalorder %v841_v29, %v829_v20 }
 0x153   : > { %v1094_v34 = vpop.permute.xlu2 %1093 }
 0x154   : > { %vm1104_vm12 = vcmp.eq.s32.totalorder %v1094_v34, %v829_v20 }
 0x155   : > { %v1108_v36 = vsel %vm1104_vm12, 1.0, %v1956_v27 }
 0x15a   : > { %v832_v16 = vpop.permute.xlu0 %831 }
 0x15b   : > { %vm842_vm0 = vcmp.eq.s32.totalorder %v832_v16, %v829_v20  ;;  %v1103_v43 = vpop.permute.xlu2 %1102 }
 0x15c   : > { %v852_v19 = vpop.permute.xlu1 %851 }
 0x15d   : > { %vm862_vm1 = vcmp.eq.s32.totalorder %v852_v19, %v829_v20 }
 0x15e   : > { %vm866_vm2 = vmor %vm842_vm0, %vm862_vm1  ;;  %vm1107_vm0 = vcmp.eq.s32.totalorder %v1103_v43, %v829_v20  ;;  %vm1085_vm1 = vcmp.lt.s32.totalorder %v1081_v63, 96 }
 0x15f   : > { %v870_v28 = vsel %vm866_vm2, 1.0, %v1956_v27  ;;  %v1111_v45 = vsel %vm1107_vm0, 1.0, %v1956_v27  ;;  %vm1084_vm2 = vcmp.lt.s32.totalorder %v1080_v1, 96  ;;  %v2199_v14 = vsel %vm1085_vm1, 1.0, %v1956_v27 }
 0x160   : > { %v2202_v16 = vsel %vm1084_vm2, 1.0, %v1956_v27 }
 0x162   : > { %v835_v24 = vpop.permute.xlu0 %834 }
 0x163   : > { %vm843_vm3 = vcmp.eq.s32.totalorder %v835_v24, %v829_v20 }
 0x164   : > { %v855_v26 = vpop.permute.xlu1 %854 }
 0x165   : > { %vm863_vm4 = vcmp.eq.s32.totalorder %v855_v26, %v829_v20 }
 0x166   : > { %vm867_vm5 = vmor %vm843_vm3, %vm863_vm4  ;;  %vm1086_vm3 = vcmp.lt.s32.totalorder %v1082_v3, 96  ;;  %vm1087_vm4 = vcmp.lt.s32.totalorder %v1083_v6, 96  ;;  %v1260_v6 = vld [vmem:[#allocation6] sm:$0x1] }
 0x167   : > { %v871_v30 = vsel %vm867_vm5, 1.0, %v1956_v27  ;;  %v2205_v18 = vsel %vm1086_vm3, 1.0, %v1956_v27  ;;  %v2214_v13 = vsel %vm1087_vm4, 1.0, %v1956_v27 }
 0x168   : > { %v874_v31 = vpack.c.bf16 %v871_v30, %v870_v28 }
 0x16a   : > { %1740 = vmatmul.msk.bf16.vlgmr.msra.gmra.mxu2 %vm948_vm6, %v874_v31  ;;  %v858_v32 = vpop.permute.xlu0 %857 }
 0x16b   : > { %vm864_vm8 = vcmp.eq.s32.totalorder %v858_v32, %v829_v20 }
 0x16c   : > { %v861_v33 = vpop.permute.xlu1 %860  ;;  %vm868_vm11 = vmor %vm844_vm7, %vm864_vm8 }
 0x16d   : > { %vm865_vm10 = vcmp.eq.s32.totalorder %v861_v33, %v829_v20  ;;  %v872_v37 = vsel %vm868_vm11, 1.0, %v1956_v27 }
 0x16e   : > { %vm869_vm13 = vmor %vm845_vm9, %vm865_vm10 }
 0x16f   : > { %v873_v38 = vsel %vm869_vm13, 1.0, %v1956_v27 }
 0x170   : > { %v875_v41 = vpack.c.bf16 %v873_v38, %v872_v37 }
 0x172   : > { %v1097_v35 = vpop.permute.xlu0 %1096 }
 0x173   : > { %vm1105_vm14 = vcmp.eq.s32.totalorder %v1097_v35, %v829_v20 }
 0x174   : > { %v1109_v39 = vsel %vm1105_vm14, 1.0, %v1956_v27  ;;  %v1100_v42 = vpop.permute.xlu1 %1099 }
 0x175   : > { %v1112_v40 = vpack.c.bf16 %v1109_v39, %v1108_v36  ;;  %vm1106_vm15 = vcmp.eq.s32.totalorder %v1100_v42, %v829_v20 }
 0x176   : > { %v1110_v44 = vsel %vm1106_vm15, 1.0, %v1956_v27 }
 0x177   : > { %1142 = vxpose.xlu0.c.b16.start [1/2] (short) (narrow) %v1112_v40, 48  ;;  %v1113_v46 = vpack.c.bf16 %v1111_v45, %v1110_v44 }
 0x17a   : > { %1741 = vmatmul.msk.bf16.gmra.mxu2 %vm948_vm6, %v875_v41 }
 0x185   : > { %v808_v47 = vpop.f32.mrf.mxu0 }
 0x186   : > { %v809_v49 = vadd.f32 %v1816_v48, %v808_v47 }
 0x187   : > { %1143 = vxpose.xlu0.c.b16.end [2/2] (short) (narrow) %v1113_v46, 48 }
 0x18a   : > { %1742 = vmatmul.msk.bf16.vlgmr.msrb.gmra.mxu2 %vm948_vm6, %v874_v31 }
 0x18d   : > { %v811_v50 = vpop.f32.mrf.mxu0 }
 0x18e   : > { %v812_v53 = vadd.f32 %v1816_v48, %v811_v50 }
 0x195   : > { %v814_v56 = vpop.f32.mrf.mxu0 }
 0x196   : > { %v815_v0 = vadd.f32 %v1816_v48, %v814_v56 }
 0x19a   : > { %1743 = vmatmul.msk.bf16.gmra.mxu2 %vm948_vm6, %v875_v41 }
 0x19d   : > { %v817_v7 = vpop.f32.mrf.mxu0 }
 0x19e   : > { %v818_v17 = vadd.f32 %v1816_v48, %v817_v7 }
 0x1ed   : > { %v964_v51 = vpop.f32.mrf.mxu2 }
 0x1ee   : > { %v993_v52 = vadd.f32 %v964_v51, %v809_v49 }
 0x1f0   : > { %1240 = vst [vmem:[%s2060_s27] sm:$0xff] %v993_v52  ;;  %v1744_v59 = vmul.f32 -1.442695, %v993_v52  ;;  %v1244_v12 = vmul.f32 %v2202_v16, %v993_v52 }
 0x1f2   : > { %v1261_v30 = vmul.f32 %v1244_v12, %v993_v52 }
 0x1f5   : > { %v966_v55 = vpop.f32.mrf.mxu2 }
 0x1f6   : > { %v994_v58 = vadd.f32 %v966_v55, %v812_v53 }
 0x1f8   : > { %v1745_v62 = vmul.f32 -1.442695, %v994_v58  ;;  %1241 = vst [vmem:[%s2060_s27 + $0x8] sm:$0xff] %v994_v58  ;;  %v1245_v9 = vmul.f32 %v2199_v14, %v994_v58 }
 0x1fa   : > { %1817 = vpow2.f32 %v1745_v62  ;;  %v1262_v23 = vmul.f32 %v1245_v9, %v994_v58  ;;  %v1249_v26 = vadd.f32 %v1245_v9, %v1244_v12  ;;  %v1248_v58 = vld [vmem:[#allocation5] sm:$0x1]  ;;  %v1139_v12 = vld [vmem:[#allocation4 + $0x50] sm:$0xff] }
 0x1fb   : > { %1819 = vpow2.f32 %v1744_v59 }
 0x1fc   : > { %v1265_v32 = vadd.f32 %v1262_v23, %v1261_v30 }
 0x1fd   : > { %v969_v4 = vpop.f32.mrf.mxu2 }
 0x1fe   : > { %v995_v5 = vadd.f32 %v969_v4, %v815_v0 }
 0x200   : > { %v1818_v10 = vpop.eup %1817  ;;  %v1746_v11 = vmul.f32 -1.442695, %v995_v5  ;;  %1242 = vst [vmem:[%s2060_s27 + $0x10] sm:$0xff] %v995_v5  ;;  %v1246_v21 = vmul.f32 %v2205_v18, %v995_v5 }
 0x201   : > { %v1820_v15 = vpop.eup %1819  ;;  %v2207_v8 = vadd.f32 1.0, %v1818_v10 }
 0x202   : > { %1821 = vpow2.f32 %v1746_v11  ;;  %v2210_v19 = vadd.f32 1.0, %v1820_v15  ;;  %v1263_v31 = vmul.f32 %v1246_v21, %v995_v5  ;;  %v1250_v27 = vadd.f32 %v1249_v26, %v1246_v21 }
 0x203   : > { %1823 = vrcp.f32 %v2207_v8  ;;  %vm1033_vm7 = vweird.f32 %v2207_v8  ;;  %v1037_v4 = vand.u32 2147483647, %v2207_v8  ;;  %v1039_v9 = vand.u32 2147483648, %v2207_v8 }
 0x204   : > { %1825 = vrcp.f32 %v2210_v19  ;;  %v1266_v37 = vadd.f32 %v1265_v32, %v1263_v31  ;;  %vm1018_vm5 = vweird.f32 %v2210_v19  ;;  %v1022_v26 = vand.u32 2147483647, %v2210_v19 }
 0x205   : > { %v971_v20 = vpop.f32.mrf.mxu2  ;;  %vm1038_vm2 = vcmp.eq.f32.partialorder %v1037_v4, 8.507059e+37  ;;  %v1132_v4 = vld [vmem:[#allocation4 + $0x20] sm:$0xff] }
 0x206   : > { %v996_v22 = vadd.f32 %v971_v20, %v818_v17  ;;  %vm1023_vm4 = vcmp.eq.f32.partialorder %v1022_v26, 8.507059e+37  ;;  %v1141_v26 = vld [vmem:[#allocation4 + $0x18] sm:$0xff] }
 0x208   : > { %v1822_v24 = vpop.eup %1821  ;;  %v1747_v25 = vmul.f32 -1.442695, %v996_v22  ;;  %1243 = vst [vmem:[%s2060_s27 + $0x18] sm:$0xff] %v996_v22  ;;  %v1247_v28 = vmul.f32 %v2214_v13, %v996_v22 }
 0x209   : > { %v2221_v29 = vadd.f32 1.0, %v1822_v24  ;;  %v2224_v34 = vpop.eup %1823 }
 0x20a   : > { %1827 = vpow2.f32 %v1747_v25  ;;  %v1251_v33 = vadd.f32 %v1250_v27, %v1247_v28  ;;  %v1264_v36 = vmul.f32 %v1247_v28, %v996_v22  ;;  %v2228_v38 = vpop.eup %1825  ;;  %v1029_v42 = vmul.f32 %v2224_v34, %v2207_v8 }
 0x20b   : > { %1829 = vrcp.f32 %v2221_v29  ;;  %v1014_v46 = vmul.f32 %v2228_v38, %v2210_v19  ;;  %vm1019_vm6 = vweird.f32 %v2228_v38  ;;  %vm1034_vm9 = vweird.f32 %v2224_v34 }
 0x20c   : > { %v1252_v39 = vrot.slane %v1251_v33, 4  ;;  %v1267_v40 = vadd.f32 %v1266_v37, %v1264_v36  ;;  %v1030_v50 = vsub.f32 1.0, %v1029_v42  ;;  %v1054_v5 = vand.u32 2147483648, %v2221_v29  ;;  %vm2269_vm13 = vmor %vm1033_vm7, %vm1034_vm9 }
 0x20d   : > { %v2226_v35 = vpop.f32.mrf.mxu2  ;;  %v1015_v53 = vsub.f32 1.0, %v1014_v46  ;;  %vm1048_vm10 = vweird.f32 %v2221_v29  ;;  %v1052_v11 = vand.u32 2147483647, %v2221_v29  ;;  %v1024_v28 = vand.u32 2147483648, %v2210_v19  ;;  %vm2277_vm14 = vmor %vm1018_vm5, %vm1019_vm6 }
 0x20e   : > { %v1253_v43 = vadd.f32 %v1252_v39, %v1251_v33  ;;  %v1268_v47 = vrot.slane %v1267_v40, 4  ;;  %v1031_v60 = vmul.f32 %v2224_v34, %v1030_v50  ;;  %v1055_v30 = vor.u32 1.1754944e-38, %v1054_v5 }
 0x20f   : > { %v1016_v63 = vmul.f32 %v2228_v38, %v1015_v53  ;;  %vm1053_vm15 = vcmp.eq.f32.partialorder %v1052_v11, 8.507059e+37  ;;  %v1040_v33 = vor.u32 1.1754944e-38, %v1039_v9  ;;  %vm1158_vm5 = vcmask 261120  }
 0x210   : > { %v1828_v41 = vpop.eup %1827  ;;  %v1254_v49 = vrot.slane %v1253_v43, 2  ;;  %v1269_v55 = vadd.f32 %v1268_v47, %v1267_v40  ;;  %v1032_v10 = vadd.f32 %v2224_v34, %v1031_v60  ;;  %v1025_v40 = vor.u32 1.1754944e-38, %v1024_v28 }
 0x211   : > { %v1830_v44 = vpop.eup %1829  ;;  %v2232_v45 = vadd.f32 1.0, %v1828_v41  ;;  %v1017_v17 = vadd.f32 %v2228_v38, %v1016_v63 }
 0x212   : > { %v1044_v48 = vmul.f32 %v1830_v44, %v2221_v29  ;;  %v1255_v52 = vadd.f32 %v1254_v49, %v1253_v43  ;;  %v1270_v59 = vrot.slane %v1269_v55, 2  ;;  %vm1049_vm8 = vweird.f32 %v1830_v44  ;;  %v1138_v29 = vld [vmem:[#allocation4 + $0x48] sm:$0xff] }
 0x213   : > { %1831 = vrcp.f32 %v2232_v45  ;;  %vm2255_vm11 = vmor %vm1048_vm10, %vm1049_vm8  ;;  %v1069_v21 = vand.u32 2147483648, %v2232_v45  ;;  %v1067_v25 = vand.u32 2147483647, %v2232_v45  ;;  %v1036_v32 = vsel %vm2269_vm13, %v2224_v34, %v1032_v10  ;;  %v1137_v10 = vld [vmem:[#allocation4 + $0x38] sm:$0xff] }
 0x214   : > { %v1045_v51 = vsub.f32 1.0, %v1044_v48  ;;  %v1256_v57 = vrot.slane %v1255_v52, 1  ;;  %v1271_v0 = vadd.f32 %v1270_v59, %v1269_v55  ;;  %vm1063_vm0 = vweird.f32 %v2232_v45 }
 0x215   : > { %v2238_v54 = vpop.f32.mrf.mxu2  ;;  %v1070_v37 = vor.u32 1.1754944e-38, %v1069_v21  ;;  %v1021_v19 = vsel %vm2277_vm14, %v2228_v38, %v1017_v17  ;;  %vm1068_vm3 = vcmp.eq.f32.partialorder %v1067_v25, 8.507059e+37  ;;  %v1041_v41 = vsel %vm1038_vm2, %v1040_v33, %v1036_v32  ;;  %v1140_v32 = vld [vmem:[#allocation4] sm:$0xff] }
 0x216   : > { %v1046_v56 = vmul.f32 %v1830_v44, %v1045_v51  ;;  %v1257_v61 = vadd.f32 %v1256_v57, %v1255_v52  ;;  %v1272_v7 = vrot.slane %v1271_v0, 1  ;;  %v1115_v47 = vmul.f32 %v1041_v41, %v2238_v54 }
 0x217   : > { %v1121_v48 = vmul.f32 %v2199_v14, %v1041_v41 }
 0x218   : > { %v1047_v1 = vadd.f32 %v1830_v44, %v1046_v56  ;;  %v1258_v3 = vadd.f32 %v1257_v61, %v1248_v58  ;;  %v1273_v22 = vadd.f32 %v1272_v7, %v1271_v0  ;;  %v1120_v55 = vmul.f32 %v1115_v47, %v2199_v14  ;;  %v1133_v61 = vld [vmem:[#allocation4 + $0x58] sm:$0xff] }
 0x219   : > { %v1832_v62 = vpop.eup %1831 }
 0x21a   : > { %v1059_v2 = vmul.f32 %v1832_v62, %v2232_v45  ;;  %1259 = vst [vmem:[#allocation5] sm:$0x1] %v1258_v3  ;;  %v1051_v23 = vsel %vm2255_vm11, %v1830_v44, %v1047_v1  ;;  %vm1064_vm12 = vweird.f32 %v1832_v62  ;;  %v1274_v31 = vadd.f32 %v1273_v22, %v1260_v6  ;;  %v1136_v22 = vld [vmem:[#allocation4 + $0x10] sm:$0xff] }
 0x21b   : > { %v1056_v36 = vsel %vm1053_vm15, %v1055_v30, %v1051_v23  ;;  %vm1065_vm1 = vmor %vm1063_vm0, %vm1064_vm12  ;;  %v1026_v45 = vsel %vm1023_vm4, %v1025_v40, %v1021_v19 }
 0x21c   : > { %v1060_v15 = vsub.f32 1.0, %v1059_v2  ;;  %1275 = vst [vmem:[#allocation6] sm:$0x1] %v1274_v31  ;;  %v1123_v43 = vmul.f32 %v2205_v18, %v1056_v36  ;;  %v1114_v50 = vmul.f32 %v1026_v45, %v2226_v35  ;;  %v1119_v51 = vmul.f32 %v2202_v16, %v1026_v45  ;;  %v1135_v2 = vld [vmem:[#allocation4 + $0x30] sm:$0xff] }
 0x21d   : > { %v988_v20 = vpop.f32.mrf.mxu2 }
 0x21e   : > { %v1061_v24 = vmul.f32 %v1832_v62, %v1060_v15  ;;  %v1116_v34 = vmul.f32 %v1056_v36, %v988_v20  ;;  %v1127_v57 = vpack.c.bf16 %v1121_v48, %v1119_v51  ;;  %v1118_v58 = vmul.f32 %v1114_v50, %v2202_v16  ;;  %v1134_v15 = vld [vmem:[#allocation4 + $0x28] sm:$0xff] }
 0x220   : > { %v1062_v8 = vadd.f32 %v1832_v62, %v1061_v24  ;;  %v1122_v52 = vmul.f32 %v1116_v34, %v2205_v18  ;;  %v1126_v59 = vpack.c.bf16 %v1120_v55, %v1118_v58 }
 0x222   : > { %v1066_v39 = vsel %vm1065_vm1, %v1832_v62, %v1062_v8  ;;  %v1130_v62 = vld [vmem:[#allocation4 + $0x40] sm:$0xff] }
 0x223   : > { %v1071_v42 = vsel %vm1068_vm3, %v1070_v37, %v1066_v39  ;;  %v1150_v54 = vpop.trf.xlu0 }
 0x224   : > { %v1125_v44 = vmul.f32 %v2214_v13, %v1071_v42 }
 0x225   : > { %v990_v46 = vpop.f32.mrf.mxu2 }
 0x226   : > { %v1117_v49 = vmul.f32 %v1071_v42, %v990_v46  ;;  %v1129_v38 = vpack.c.bf16 %v1125_v44, %v1123_v43 }
 0x228   : > { %1198 = vmatpush.bf16.msra.mxu1 %v1129_v38  ;;  %v1124_v53 = vmul.f32 %v1117_v49, %v2214_v13  ;;  %v1131_v13 = vld [vmem:[#allocation4 + $0x8] sm:$0xff] }
 0x22a   : > { %v1128_v56 = vpack.c.bf16 %v1124_v53, %v1122_v52 }
 0x22c   : > { %1174 = vmatpush.bf16.msra.mxu3 %v1128_v56  ;;  %1199 = vmatpush.bf16.msra.mxu1 %v1127_v57 }
 0x22f   : > { %1752 = vmatmul.msk.bf16.vlgmr.msra.gmra.mxu1 %vm1158_vm5, %v1150_v54 }
 0x230   : > { %1175 = vmatpush.bf16.msra.mxu3 %v1126_v59 }
 0x233   : > { %1749 = vmatmul.msk.bf16.vlgmr.msra.gmra.mxu3 %vm1158_vm5, %v1150_v54  ;;  %v1151_v35 = vpop.trf.xlu0 }
 0x23f   : > { %1753 = vmatmul.msk.bf16.gmra.mxu1 %vm1158_vm5, %v1151_v35 }
 0x243   : > { %1750 = vmatmul.msk.bf16.gmra.mxu3 %vm1158_vm5, %v1151_v35  ;;  %v1152_v18 = vpop.trf.xlu0 }
 0x24f   : > { %1754 = vmatmul.msk.bf16.gmra.mxu1 %vm1158_vm5, %v1152_v18 }
 0x253   : > { %1751 = vmatmul.msk.bf16.gmra.mxu3 %vm1158_vm5, %v1152_v18 }
 0x2ac   : > { %v1201_v14 = vpop.f32.mrf.mxu1 }
 0x2ad   : > { %v1217_v60 = vadd.f32 %v1201_v14, %v1131_v13 }
 0x2af   : > { %1229 = vst [vmem:[#allocation4 + $0x8] sm:$0xff] %v1217_v60 }
 0x2b4   : > { %v1203_v16 = vpop.f32.mrf.mxu1 }
 0x2b5   : > { %v1219_v63 = vadd.f32 %v1203_v16, %v1133_v61 }
 0x2b6   : > { %v1177_v0 = vpop.f32.mrf.mxu3 }
 0x2b7   : > { %1231 = vst [vmem:[#allocation4 + $0x58] sm:$0xff] %v1219_v63  ;;  %v1216_v1 = vadd.f32 %v1177_v0, %v1130_v62 }
 0x2b9   : > { %1228 = vst [vmem:[#allocation4 + $0x40] sm:$0xff] %v1216_v1 }
 0x2bc   : > { %v1206_v3 = vpop.f32.mrf.mxu1 }
 0x2bd   : > { %v1221_v5 = vadd.f32 %v1206_v3, %v1135_v2 }
 0x2be   : > { %v1179_v6 = vpop.f32.mrf.mxu3 }
 0x2bf   : > { %1233 = vst [vmem:[#allocation4 + $0x30] sm:$0xff] %v1221_v5  ;;  %v1218_v7 = vadd.f32 %v1179_v6, %v1132_v4 }
 0x2c1   : > { %1230 = vst [vmem:[#allocation4 + $0x20] sm:$0xff] %v1218_v7 }
 0x2c4   : > { %v1208_v11 = vpop.f32.mrf.mxu1 }
 0x2c5   : > { %v1223_v17 = vadd.f32 %v1208_v11, %v1137_v10 }
 0x2c6   : > { %v1182_v9 = vpop.f32.mrf.mxu3 }
 0x2c7   : > { %1235 = vst [vmem:[#allocation4 + $0x38] sm:$0xff] %v1223_v17  ;;  %v1220_v20 = vadd.f32 %v1182_v9, %v1134_v15 }
 0x2c9   : > { %1232 = vst [vmem:[#allocation4 + $0x28] sm:$0xff] %v1220_v20 }
 0x2cc   : > { %v1211_v21 = vpop.f32.mrf.mxu1 }
 0x2cd   : > { %v1225_v23 = vadd.f32 %v1211_v21, %v1139_v12 }
 0x2ce   : > { %v1184_v24 = vpop.f32.mrf.mxu3 }
 0x2cf   : > { %1237 = vst [vmem:[#allocation4 + $0x50] sm:$0xff] %v1225_v23  ;;  %v1222_v25 = vadd.f32 %v1184_v24, %v1136_v22 }
 0x2d1   : > { %1234 = vst [vmem:[#allocation4 + $0x10] sm:$0xff] %v1222_v25 }
 0x2d4   : > { %v1213_v28 = vpop.f32.mrf.mxu1 }
 0x2d5   : > { %v1227_v30 = vadd.f32 %v1213_v28, %v1141_v26 }
 0x2d6   : > { %v1187_v31 = vpop.f32.mrf.mxu3 }
 0x2d7   : > { %1239 = vst [vmem:[#allocation4 + $0x18] sm:$0xff] %v1227_v30  ;;  %v1224_v27 = vadd.f32 %v1187_v31, %v1138_v29 }
 0x2d9   : > { %1236 = vst [vmem:[#allocation4 + $0x48] sm:$0xff] %v1224_v27 }
 0x2dd   : > { %1279 = sbr.rel (%p1755_p8) target bundleno = 848 (0x350), region = 72 }
 0x2de   : > { %v1189_v8 = vpop.f32.mrf.mxu3 }
 0x2df   : > { %v1226_v33 = vadd.f32 %v1189_v8, %v1140_v32 }
 0x2e1   : > { %1238 = vst [vmem:[#allocation4] sm:$0xff] %v1226_v33 }
 0x2e2   : > { %v1286_v36 = vld [vmem:[#allocation4 + $0x8] sm:$0xff]  ;;  %v1287_v37 = vld [vmem:[#allocation4 + $0x58] sm:$0xff]  ;;  %v1288_v19 = vld [vmem:[#allocation4 + $0x30] sm:$0xff]  ;;  %v1957_v51 = vmov 48.0   ;;  %vm1547_vm10 = vcmask 1040384  }
 0x2e3   : > { %v1289_v39 = vld [vmem:[#allocation4 + $0x38] sm:$0xff]  ;;  %v1290_v40 = vld [vmem:[#allocation4 + $0x50] sm:$0xff]  ;;  %v1292_v42 = vadd.f32 1e-06, %v1286_v36  ;;  %v1293_v34 = vadd.f32 1e-06, %v1287_v37 }
 0x2e4   : > { %v1291_v41 = vld [vmem:[#allocation4 + $0x18] sm:$0xff]  ;;  %v1294_v43 = vadd.f32 1e-06, %v1288_v19  ;;  %v1295_v44 = vadd.f32 1e-06, %v1289_v39  ;;  %v1280_v47 = vld [vmem:[#allocation4 + $0x40] sm:$0xff] }
 0x2e5   : > { %v1296_v45 = vadd.f32 1e-06, %v1290_v40  ;;  %1836 = vrcp.f32 %v1292_v42  ;;  %v1297_v46 = vadd.f32 1e-06, %v1291_v41  ;;  %v1281_v48 = vld [vmem:[#allocation4 + $0x20] sm:$0xff]  ;;  %v1282_v38 = vld [vmem:[#allocation4 + $0x28] sm:$0xff] }
 0x2e6   : > { %1838 = vrcp.f32 %v1293_v34  ;;  %v1310_v50 = vld [vmem:[#allocation3 + $0x28] sm:$0xff]  ;;  %v1283_v53 = vld [vmem:[#allocation4 + $0x10] sm:$0xff]  ;;  %v1311_v56 = vld [vmem:[#allocation3 + $0x10] sm:$0xff] }
 0x2e7   : > { %1840 = vrcp.f32 %v1294_v43  ;;  %v1284_v58 = vld [vmem:[#allocation4 + $0x48] sm:$0xff]  ;;  %v1312_v59 = vld [vmem:[#allocation3 + $0x8] sm:$0xff]  ;;  %v1313_v14 = vld [vmem:[#allocation3] sm:$0xff] }
 0x2e8   : > { %1842 = vrcp.f32 %v1295_v44  ;;  %v1285_v18 = vld [vmem:[#allocation4] sm:$0xff]  ;;  %v1314_v62 = vld [vmem:[#allocation3 + $0x18] sm:$0xff]  ;;  %v1315_v2 = vld [vmem:[#allocation3 + $0x20] sm:$0xff] }
 0x2e9   : > { %1844 = vrcp.f32 %v1296_v45 }
 0x2ea   : > { %1846 = vrcp.f32 %v1297_v46 }
 0x2eb   : > { %v1837_v49 = vpop.eup %1836  ;;  %1848 = vrcp.f32 %v1957_v51 }
 0x2ec   : > { %v1839_v52 = vpop.eup %1838  ;;  %v1304_v55 = vmul.f32 %v1837_v49, %v1280_v47 }
 0x2ed   : > { %v1841_v57 = vpop.eup %1840  ;;  %v1305_v54 = vmul.f32 %v1839_v52, %v1281_v48 }
 0x2ee   : > { %v1843_v35 = vpop.eup %1842  ;;  %v1306_v13 = vmul.f32 %v1841_v57, %v1282_v38  ;;  %v2299_v60 = vadd.f32 %v1310_v50, %v1304_v55 }
 0x2ef   : > { %v1845_v61 = vpop.eup %1844  ;;  %v1307_v16 = vmul.f32 %v1843_v35, %v1283_v53  ;;  %v2301_v63 = vadd.f32 %v1311_v56, %v1305_v54 }
 0x2f0   : > { %v1847_v0 = vpop.eup %1846  ;;  %v1308_v1 = vmul.f32 %v1845_v61, %v1284_v58  ;;  %v2303_v3 = vadd.f32 %v1312_v59, %v1306_v13  ;;  %v1341_v4 = vmul.f32 %v2299_v60, %v2299_v60  ;;  %v1833_v61 = vld [vmem:[%s2498_s8] ss:$0 sm:$0xff] }
 0x2f1   : > { %v1849_v5 = vpop.eup %1848  ;;  %v1309_v6 = vmul.f32 %v1847_v0, %v1285_v18  ;;  %v2307_v7 = vadd.f32 %v1313_v14, %v1307_v16  ;;  %v1322_v10 = vadd.f32 %v2301_v63, %v2299_v60  ;;  %v1342_v11 = vmul.f32 %v2301_v63, %v2301_v63 }
 0x2f2   : > { %v1320_v15 = vadd.f32 %v1314_v62, %v1308_v1  ;;  %v1343_v17 = vmul.f32 %v2303_v3, %v2303_v3  ;;  %v1334_v22 = vmul.f32 48.0, %v1849_v5  ;;  %vm1338_vm6 = vweird.f32 %v1849_v5 }
 0x2f3   : > { %v1321_v9 = vadd.f32 %v1315_v2, %v1309_v6  ;;  %v1323_v20 = vadd.f32 %v1322_v10, %v2303_v3  ;;  %v1344_v12 = vmul.f32 %v2307_v7, %v2307_v7  ;;  %v1347_v21 = vadd.f32 %v1342_v11, %v1341_v4 }
 0x2f4   : > { %v1345_v24 = vmul.f32 %v1320_v15, %v1320_v15  ;;  %v1335_v30 = vsub.f32 1.0, %v1334_v22 }
 0x2f5   : > { %v1324_v23 = vadd.f32 %v1323_v20, %v2307_v7  ;;  %v1348_v25 = vadd.f32 %v1347_v21, %v1343_v17  ;;  %v1346_v28 = vmul.f32 %v1321_v9, %v1321_v9 }
 0x2f6   : > { %v1336_v33 = vmul.f32 %v1849_v5, %v1335_v30  ;;  %v1542_v30 = vld [vmem:[#allocation5] sm:$0x1] }
 0x2f7   : > { %v1325_v26 = vadd.f32 %v1324_v23, %v1320_v15  ;;  %v1349_v29 = vadd.f32 %v1348_v25, %v1344_v12 }
 0x2f8   : > { %v1337_v40 = vadd.f32 %v1849_v5, %v1336_v33 }
 0x2f9   : > { %v1326_v31 = vadd.f32 %v1325_v26, %v1321_v9  ;;  %v1350_v27 = vadd.f32 %v1349_v29, %v1345_v24  ;;  %v1835_v29 = vld [vmem:[#allocation6] ss:$0 sm:$0xff] }
 0x2fa   : > { %v1339_v44 = vsel %vm1338_vm6, %v1849_v5, %v1337_v40 }
 0x2fb   : > { %v1327_v32 = vrot.slane %v1326_v31, 4  ;;  %v1351_v8 = vadd.f32 %v1350_v27, %v1346_v28  ;;  %v1548_v27 = vsel %vm1547_vm10, %v1542_v30, %v1835_v29 }
 0x2fc   : > { %1549 = vst [vmem:[%s2502_s12] sm:$0x3] %v1548_v27 }
 0x2fd   : > { %v1328_v36 = vadd.f32 %v1327_v32, %v1326_v31  ;;  %v1352_v37 = vrot.slane %v1351_v8, 4 }
 0x2ff   : > { %v1329_v19 = vrot.slane %v1328_v36, 2  ;;  %v1353_v39 = vadd.f32 %v1352_v37, %v1351_v8 }
 0x301   : > { %v1330_v41 = vadd.f32 %v1329_v19, %v1328_v36  ;;  %v1354_v42 = vrot.slane %v1353_v39, 2 }
 0x303   : > { %v1331_v34 = vrot.slane %v1330_v41, 1  ;;  %v1355_v43 = vadd.f32 %v1354_v42, %v1353_v39 }
 0x305   : > { %v1332_v45 = vadd.f32 %v1331_v34, %v1330_v41  ;;  %v1356_v46 = vrot.slane %v1355_v43, 1 }
 0x307   : > { %v1340_v47 = vmul.f32 %v1339_v44, %v1332_v45  ;;  %v1357_v48 = vadd.f32 %v1356_v46, %v1355_v43 }
 0x309   : > { %v1358_v49 = vmul.f32 %v1357_v48, %v1339_v44  ;;  %v1359_v38 = vmul.f32 %v1340_v47, %v1340_v47  ;;  %v1361_v58 = vsub.f32 %v2299_v60, %v1340_v47  ;;  %v1362_v54 = vsub.f32 %v2301_v63, %v1340_v47  ;;  %v1834_v60 = vld [vmem:[%s2499_s9] ss:$0 sm:$0xff] }
 0x30a   : > { %v1363_v59 = vsub.f32 %v2303_v3, %v1340_v47  ;;  %v1364_v35 = vsub.f32 %v2307_v7, %v1340_v47  ;;  %v1365_v13 = vsub.f32 %v1320_v15, %v1340_v47  ;;  %v1366_v14 = vsub.f32 %v1321_v9, %v1340_v47 }
 0x30b   : > { %v1360_v50 = vsub.f32 %v1358_v49, %v1359_v38 }
 0x30d   : > { %v1367_v51 = vadd.f32 1e-05, %v1360_v50 }
 0x30f   : > { %1850 = vrsqrt.f32 %v1367_v51  ;;  %vm1374_vm7 = vweird.f32 %v1367_v51 }
 0x315   : > { %v1851_v52 = vpop.eup %1850 }
 0x316   : > { %v1369_v53 = vmul.f32 %v1851_v52, %v1367_v51  ;;  %vm1375_vm8 = vweird.f32 %v1851_v52 }
 0x317   : > { %vm1376_vm9 = vmor %vm1374_vm7, %vm1375_vm8 }
 0x318   : > { %v1370_v55 = vmul.f32 %v1851_v52, %v1369_v53 }
 0x31a   : > { %v1371_v56 = vmul.f32 0.5, %v1370_v55 }
 0x31c   : > { %v1372_v57 = vsub.f32 1.5, %v1371_v56 }
 0x31e   : > { %v1373_v18 = vmul.f32 %v1851_v52, %v1372_v57 }
 0x320   : > { %v1377_v16 = vsel %vm1376_vm9, %v1851_v52, %v1373_v18 }
 0x321   : > { %v1378_v62 = vmul.f32 %v1377_v16, %v1361_v58  ;;  %v1379_v0 = vmul.f32 %v1377_v16, %v1362_v54  ;;  %v1380_v1 = vmul.f32 %v1377_v16, %v1363_v59  ;;  %v1381_v63 = vmul.f32 %v1377_v16, %v1364_v35 }
 0x322   : > { %v1382_v2 = vmul.f32 %v1377_v16, %v1365_v13  ;;  %v1383_v3 = vmul.f32 %v1377_v16, %v1366_v14 }
 0x323   : > { %v1388_v4 = vmul.f32 %v1833_v61, %v1378_v62  ;;  %v1389_v5 = vmul.f32 %v1833_v61, %v1379_v0  ;;  %v1390_v6 = vmul.f32 %v1833_v61, %v1380_v1  ;;  %v1391_v7 = vmul.f32 %v1833_v61, %v1381_v63 }
 0x324   : > { %v1392_v10 = vmul.f32 %v1833_v61, %v1382_v2  ;;  %v1393_v11 = vmul.f32 %v1833_v61, %v1383_v3 }
 0x325   : > { %v2329_v15 = vadd.f32 %v1834_v60, %v1388_v4  ;;  %v2331_v17 = vadd.f32 %v1834_v60, %v1389_v5  ;;  %v2333_v9 = vadd.f32 %v1834_v60, %v1390_v6  ;;  %v2335_v20 = vadd.f32 %v1834_v60, %v1391_v7 }
 0x326   : > { %v2337_v12 = vadd.f32 %v1834_v60, %v1392_v10  ;;  %v2339_v21 = vadd.f32 %v1834_v60, %v1393_v11 }
 0x327   : > { %v1756_v22 = vmul.f32 -1.442695, %v2329_v15  ;;  %v1757_v23 = vmul.f32 -1.442695, %v2331_v17  ;;  %v1758_v24 = vmul.f32 -1.442695, %v2333_v9 }
 0x328   : > { %v1759_v25 = vmul.f32 -1.442695, %v2335_v20  ;;  %v1760_v26 = vmul.f32 -1.442695, %v2337_v12  ;;  %v1761_v28 = vmul.f32 -1.442695, %v2339_v21 }
 0x329   : > { %1852 = vpow2.f32 %v1756_v22 }
 0x32a   : > { %1854 = vpow2.f32 %v1757_v23 }
 0x32b   : > { %1856 = vpow2.f32 %v1758_v24 }
 0x32c   : > { %1858 = vpow2.f32 %v1759_v25 }
 0x32d   : > { %1860 = vpow2.f32 %v1760_v26 }
 0x32e   : > { %1862 = vpow2.f32 %v1761_v28 }
 0x32f   : > { %v1853_v31 = vpop.eup %1852 }
 0x330   : > { %v1855_v32 = vpop.eup %1854  ;;  %v1428_v8 = vadd.f32 1.0, %v1853_v31  ;;  %v1404_v31 = vld [vmem:[%s2490_s0] sm:$0xff] }
 0x331   : > { %v1857_v33 = vpop.eup %1856  ;;  %v1429_v36 = vadd.f32 1.0, %v1855_v32 }
 0x332   : > { %v1859_v37 = vpop.eup %1858  ;;  %1864 = vrcp.f32 %v1428_v8  ;;  %v1443_v39 = vand.u32 2147483647, %v1428_v8  ;;  %v1445_v41 = vand.u32 2147483648, %v1428_v8  ;;  %v2350_v42 = vadd.f32 1.0, %v1857_v33 }
 0x333   : > { %v1861_v19 = vpop.eup %1860  ;;  %1866 = vrcp.f32 %v1429_v36  ;;  %v2352_v34 = vadd.f32 1.0, %v1859_v37  ;;  %v1458_v43 = vand.u32 2147483647, %v1429_v36  ;;  %v1460_v44 = vand.u32 2147483648, %v1429_v36 }
 0x334   : > { %v1863_v40 = vpop.eup %1862  ;;  %v2354_v45 = vadd.f32 1.0, %v1861_v19  ;;  %vm1439_vm11 = vweird.f32 %v1428_v8  ;;  %vm1454_vm12 = vweird.f32 %v1429_v36  ;;  %1868 = vrcp.f32 %v2350_v42  ;;  %v1405_v19 = vld [vmem:[%s2490_s0 + $0x8] sm:$0xff] }
 0x335   : > { %v1475_v46 = vand.u32 2147483648, %v2350_v42  ;;  %vm2358_vm13 = vcmp.eq.f32.partialorder %v1443_v39, 8.507059e+37  ;;  %v1473_v48 = vand.u32 2147483647, %v2350_v42  ;;  %1870 = vrcp.f32 %v2352_v34 }
 0x336   : > { %v2364_v49 = vadd.f32 1.0, %v1863_v40  ;;  %v1446_v50 = vor.u32 1.1754944e-38, %v1445_v41  ;;  %v1488_v51 = vand.u32 2147483647, %v2352_v34  ;;  %v1490_v52 = vand.u32 2147483648, %v2352_v34 }
 0x337   : > { %1872 = vrcp.f32 %v2354_v45  ;;  %vm2369_vm14 = vcmp.eq.f32.partialorder %v1458_v43, 8.507059e+37  ;;  %v1461_v57 = vor.u32 1.1754944e-38, %v1460_v44  ;;  %vm1469_vm15 = vweird.f32 %v2350_v42 }
 0x338   : > { %v1865_v38 = vpop.eup %1864  ;;  %v1476_v54 = vor.u32 1.1754944e-38, %v1475_v46  ;;  %vm1484_vm0 = vweird.f32 %v2352_v34  ;;  %v1505_v59 = vand.u32 2147483648, %v2354_v45  ;;  %vm2376_vm2 = vcmp.eq.f32.partialorder %v1473_v48, 8.507059e+37 }
 0x339   : > { %v1867_v53 = vpop.eup %1866  ;;  %v1435_v55 = vmul.f32 %v1865_v38, %v1428_v8  ;;  %vm1440_vm1 = vweird.f32 %v1865_v38  ;;  %vm1499_vm3 = vweird.f32 %v2354_v45  ;;  %1874 = vrcp.f32 %v2364_v49 }
 0x33a   : > { %v1450_v58 = vmul.f32 %v1867_v53, %v1429_v36  ;;  %v1869_v13 = vpop.eup %1868  ;;  %vm1455_vm4 = vweird.f32 %v1867_v53  ;;  %vm2382_vm5 = vcmp.eq.f32.partialorder %v1488_v51, 8.507059e+37  ;;  %v1491_v16 = vor.u32 1.1754944e-38, %v1490_v52  ;;  %vm2391_vm7 = vmor %vm1439_vm11, %vm1440_vm1 }
 0x33b   : > { %v1436_v35 = vsub.f32 1.0, %v1435_v55  ;;  %v1871_v62 = vpop.eup %1870  ;;  %v1465_v0 = vmul.f32 %v1869_v13, %v2350_v42  ;;  %v1503_v1 = vand.u32 2147483647, %v2354_v45  ;;  %vm1514_vm6 = vweird.f32 %v2364_v49  ;;  %vm2399_vm8 = vmor %vm1454_vm12, %vm1455_vm4  ;;  %v1407_v55 = vld [vmem:[%s2490_s0 + $0x18] sm:$0xff] }
 0x33c   : > { %v1451_v14 = vsub.f32 1.0, %v1450_v58  ;;  %v1480_v4 = vmul.f32 %v1871_v62, %v2352_v34  ;;  %v1506_v5 = vor.u32 1.1754944e-38, %v1505_v59  ;;  %v1518_v6 = vand.u32 2147483647, %v2364_v49  ;;  %v1408_v59 = vld [vmem:[%s2490_s0 + $0x20] sm:$0xff] }
 0x33d   : > { %v1437_v60 = vmul.f32 %v1865_v38, %v1436_v35  ;;  %v1873_v63 = vpop.eup %1872  ;;  %v1466_v11 = vsub.f32 1.0, %v1465_v0  ;;  %vm1470_vm9 = vweird.f32 %v1869_v13  ;;  %vm1485_vm10 = vweird.f32 %v1871_v62 }
 0x33e   : > { %v1452_v3 = vmul.f32 %v1867_v53, %v1451_v14  ;;  %v1495_v22 = vmul.f32 %v1873_v63, %v2354_v45  ;;  %v1481_v24 = vsub.f32 1.0, %v1480_v4  ;;  %v1520_v25 = vand.u32 2147483648, %v2364_v49  ;;  %vm2416_vm12 = vmor %vm1469_vm15, %vm1470_vm9  ;;  %v1406_v45 = vld [vmem:[%s2490_s0 + $0x10] sm:$0xff] }
 0x33f   : > { %v1438_v7 = vadd.f32 %v1865_v38, %v1437_v60  ;;  %v1875_v26 = vpop.eup %1874  ;;  %v1467_v29 = vmul.f32 %v1869_v13, %v1466_v11  ;;  %vm1500_vm11 = vweird.f32 %v1873_v63 }
 0x340   : > { %v1453_v23 = vadd.f32 %v1867_v53, %v1452_v3  ;;  %v1496_v30 = vsub.f32 1.0, %v1495_v22  ;;  %v1482_v33 = vmul.f32 %v1871_v62, %v1481_v24  ;;  %v1510_v36 = vmul.f32 %v1875_v26, %v2364_v49  ;;  %vm2438_vm15 = vmor %vm1499_vm3, %vm1500_vm11 }
 0x341   : > { %v1442_v28 = vsel %vm2391_vm7, %v1865_v38, %v1438_v7  ;;  %v1468_v40 = vadd.f32 %v1869_v13, %v1467_v29 }
 0x342   : > { %v1447_v27 = vsel %vm2358_vm13, %v1446_v50, %v1442_v28  ;;  %v1457_v32 = vsel %vm2399_vm8, %v1867_v53, %v1453_v23  ;;  %vm2430_vm13 = vmor %vm1484_vm0, %vm1485_vm10  ;;  %v1497_v42 = vmul.f32 %v1873_v63, %v1496_v30  ;;  %v1483_v44 = vadd.f32 %v1871_v62, %v1482_v33 }
 0x343   : > { %v1524_v37 = vmul.f32 %v1447_v27, %v2329_v15  ;;  %v1462_v39 = vsel %vm2369_vm14, %v1461_v57, %v1457_v32  ;;  %v1511_v46 = vsub.f32 1.0, %v1510_v36  ;;  %vm1515_vm14 = vweird.f32 %v1875_v26 }
 0x344   : > { %v1525_v43 = vmul.f32 %v1462_v39, %v2331_v17  ;;  %v1472_v34 = vsel %vm2416_vm12, %v1869_v13, %v1468_v40  ;;  %v1498_v48 = vadd.f32 %v1873_v63, %v1497_v42  ;;  %vm2444_vm0 = vcmp.eq.f32.partialorder %v1503_v1, 8.507059e+37  ;;  %vm2466_vm1 = vmor %vm1514_vm6, %vm1515_vm14 }
 0x345   : > { %v1530_v47 = vadd.f32 %v1524_v37, %v1404_v31  ;;  %v1477_v50 = vsel %vm2376_vm2, %v1476_v54, %v1472_v34  ;;  %v1487_v51 = vsel %vm2430_vm13, %v1871_v62, %v1483_v44  ;;  %v1512_v52 = vmul.f32 %v1875_v26, %v1511_v46 }
 0x346   : > { %v1531_v17 = vadd.f32 %v1525_v43, %v1405_v19  ;;  %v1526_v53 = vmul.f32 %v1477_v50, %v2333_v9  ;;  %v1492_v56 = vsel %vm2382_vm5, %v1491_v16, %v1487_v51  ;;  %v1502_v57 = vsel %vm2438_vm15, %v1873_v63, %v1498_v48 }
 0x347   : > { %1536 = vst [vmem:[#allocation10] sm:$0xff] %v1530_v47  ;;  %v1521_v54 = vor.u32 1.1754944e-38, %v1520_v25  ;;  %v1527_v9 = vmul.f32 %v1492_v56, %v2335_v20  ;;  %v1507_v35 = vsel %vm2444_vm0, %v1506_v5, %v1502_v57  ;;  %v1513_v18 = vadd.f32 %v1875_v26, %v1512_v52  ;;  %v1409_v20 = vld [vmem:[%s2490_s0 + $0x28] sm:$0xff] }
 0x348   : > { %1537 = vst [vmem:[#allocation10 + $0x8] sm:$0xff] %v1531_v17  ;;  %vm1519_vm2 = vcmp.eq.f32.partialorder %v1518_v6, 8.507059e+37  ;;  %v1532_v13 = vadd.f32 %v1526_v53, %v1406_v45  ;;  %v1528_v49 = vmul.f32 %v1507_v35, %v2337_v12 }
 0x349   : > { %v1533_v14 = vadd.f32 %v1527_v9, %v1407_v55  ;;  %v1517_v61 = vsel %vm2466_vm1, %v1875_v26, %v1513_v18 }
 0x34a   : > { %1538 = vst [vmem:[#allocation10 + $0x10] sm:$0xff] %v1532_v13  ;;  %v1534_v16 = vadd.f32 %v1528_v49, %v1408_v59  ;;  %v1522_v62 = vsel %vm1519_vm2, %v1521_v54, %v1517_v61 }
 0x34b   : > { %1539 = vst [vmem:[#allocation10 + $0x18] sm:$0xff] %v1533_v14  ;;  %v1529_v60 = vmul.f32 %v1522_v62, %v2339_v21 }
 0x34c   : > { %1540 = vst [vmem:[#allocation10 + $0x20] sm:$0xff] %v1534_v16 }
 0x34d   : > { %v1535_v0 = vadd.f32 %v1529_v60, %v1409_v20 }
 0x34f   : > { %1541 = vst [vmem:[#allocation10 + $0x28] sm:$0xff] %v1535_v0 }
 0x350 PF: > { %p1792_p9 = scmp.eq.s32.totalorder %s2035_s25, 2  ;;  %s1958_s22 = smov [#allocation10]  }
 0x351   : > { %s1560_s24 = sshll.u32 %s1958_s22, 4  ;;  %s1562_s26 = sshll.u32 %s2500_s10, 4  ;;  %s1561_s24 = int_to_ptr.vmem [resolvable:$true] %s1560_s24  ;;  %s1563_s26 = int_to_ptr.hbm [resolvable:$true] %s1562_s26 }
 0x352   : > { %s1959_s28 = smov 128   ;;  %s1960_s29 = smov 8  }
 0x353   : > { %1783 = dma.vmem_to_hbm [thread:$0]  (%p1792_p9), %s1561_s24, 768, %s1563_s26, [#allocation9], %s1959_s28, %s1959_s28, %s1960_s29  }
 0x354   : > { %1943 = dma.done.wait (%p1792_p9), [#allocation9], 768  }
 0x355   : > { %1945 = vsyncadd (%p1792_p9), [#allocation9], 4294966528 }
 0x356 PF: > { %s25_s21 = sadd.s32 1, %s1948_s21  }
 0x357   : > { %p22_p10 = scmp.ge.s32.totalorder %s25_s21, 5  }
 0x359   :  { %24 = sbr.rel (!%p22_p10) target bundleno = 2 (0x2), region = 126 }
 0x35e   :  { %1597 = vsyncpa [#allocation8], 1 }
 0x35f   :  { %1599 = vsyncpa [#allocation8 + $0x1], 1 }
 0x360   :  { %1600 = vsyncpa [#allocation9], 1 }
 0x361   :  { %1602 = vsyncpa [#allocation9 + $0x1], 1 }

</bundles_post_ra>
